<compile_context>
chip_gen: v7x
topology: tpu7x:2x2x1
jax: 0.10.0
libtpu: 0.0.40
codegen_flags: <defaults>
</compile_context>

<pallas_src>
import functools

import jax
import jax.numpy as jnp
from jax.experimental import pallas as pl
from jax.experimental.pallas import tpu as pltpu


# ----------------------------- Pallas kernel -------------------------------- #

def _im2col_3x3(pad_ref, col_ref, n_ch, Ho, Wo, stride):
    """Scatter the 9 taps of a zero-padded (Hp, Wp, C) f32 VMEM buffer into the
    (Ho*Wo, 9*C) bf16 im2col scratch (tap-major columns, lane-aligned stores)."""
    xp = None if stride == 1 else pad_ref[...]
    for kh in range(3):
        for kw in range(3):
            t = kh * 3 + kw
            if stride == 1:
                tap = pad_ref[kh:kh + Ho, kw:kw + Wo, :]
            else:
                tap = jax.lax.slice(
                    xp, (kh, kw, 0),
                    (kh + stride * (Ho - 1) + 1,
                     kw + stride * (Wo - 1) + 1, n_ch),
                    (stride, stride, 1))
            col_ref[:, t * n_ch:(t + 1) * n_ch] = (
                tap.reshape(Ho * Wo, n_ch).astype(col_ref.dtype))


def _basic_block_kernel(x_ref, w1_ref, a1_ref, w2_ref, a2_ref, *rest,
                        stride, proj):
    """Fused BasicBlock forward for one batch element.

    x_ref:   (1, H, W, Cin)         f32  block input
    w1_ref:  (9*Cp, Pp)             bf16 conv1 weight (im2col layout, zero-padded)
    a1_ref:  (2, Pp)                f32  folded BN1 [scale; bias]
    w2_ref:  (9*Pp, Pp)             bf16 conv2 weight
    a2_ref:  (2, Pp)                f32  folded BN2 [scale; bias]
    (proj only)
    wsc_ref: (Cp, Pp)               bf16 1x1 shortcut weight
    asc_ref: (2, Pp)                f32  folded shortcut BN [scale; bias]
    o_ref:   (1, Ho, Wo, Pp)        f32  block output (channel-padded, lane-dense)
    xpad:    (H+2, W+2, Cp)         f32  scratch: halo- and channel-padded input
    hpad:    (Ho+2, Wo+2, Pp)       f32  scratch: halo-padded conv1 activation
    col:     (Ho*Wo, 9*max(Cp,Pp))  bf16 scratch: im2col slab (reused by both convs)
    """
    if proj:
        wsc_ref, asc_ref, o_ref, xpad, hpad, col = rest
    else:
        o_ref, xpad, hpad, col = rest

    _, H, W, Cin = x_ref.shape
    _, Ho, Wo, Pp = o_ref.shape
    Cp = xpad.shape[-1]
    HW = Ho * Wo

    # Stage the input: zero halo + zero channel padding, interior = x.
    xpad[...] = jnp.zeros_like(xpad)
    xpad[1:H + 1, 1:W + 1, :Cin] = x_ref[0]

    # ---- conv1 (3x3, stride) + BN1 + ReLU : one deep-K MXU matmul ----
    _im2col_3x3(xpad, col, Cp, Ho, Wo, stride)
    acc1 = jnp.dot(col[:, :9 * Cp], w1_ref[...],
                   preferred_element_type=jnp.float32)             # (HW, Pp) f32
    h1 = jnp.maximum(acc1 * a1_ref[0:1, :] + a1_ref[1:2, :], 0.0)

    # Stage conv1 output with a zero halo for conv2.
    hpad[...] = jnp.zeros_like(hpad)
    hpad[1:Ho + 1, 1:Wo + 1, :] = h1.reshape(Ho, Wo, Pp)

    # ---- conv2 (3x3, stride 1) + BN2 ----
    _im2col_3x3(hpad, col, Pp, Ho, Wo, 1)
    acc2 = jnp.dot(col[:, :9 * Pp], w2_ref[...],
                   preferred_element_type=jnp.float32)
    h2 = acc2 * a2_ref[0:1, :] + a2_ref[1:2, :]

    # ---- shortcut ----
    if proj:
        if stride == 1:
            xs = xpad[1:Ho + 1, 1:Wo + 1, :]
        else:
            xs = jax.lax.slice(xpad[...], (1, 1, 0),
                               (1 + stride * (Ho - 1) + 1,
                                1 + stride * (Wo - 1) + 1, Cp),
                               (stride, stride, 1))
        sc = jnp.dot(xs.reshape(HW, Cp).astype(jnp.bfloat16), wsc_ref[...],
                     preferred_element_type=jnp.float32)
        sc = sc * asc_ref[0:1, :] + asc_ref[1:2, :]
    else:
        # identity shortcut (stride == 1, Cin == planes): kept exact in f32
        x2d = x_ref[0].reshape(HW, Cin).astype(jnp.float32)
        if Pp > Cin:
            sc = jnp.concatenate(
                [x2d, jnp.zeros((HW, Pp - Cin), jnp.float32)], axis=1)
        else:
            sc = x2d

    out = jnp.maximum(h2 + sc, 0.0)
    o_ref[0] = out.reshape(Ho, Wo, Pp).astype(o_ref.dtype)


# ------------------------------ wrapper -------------------------------------- #

def _round_up(x, m):
    return (x + m - 1) // m * m


def _fold_bn(gamma, beta, mean, var, eps=1e-5):
    scale = gamma / jnp.sqrt(var + eps)
    bias = beta - mean * scale
    return scale, bias


def _fold_bn_padded(bn, n_pad, eps=1e-5):
    scale, bias = _fold_bn(*bn, eps=eps)
    c = scale.shape[0]
    scale = jnp.pad(scale, (0, n_pad - c), constant_values=1.0)
    bias = jnp.pad(bias, (0, n_pad - c), constant_values=0.0)
    return jnp.stack([scale, bias]).astype(jnp.float32)        # (2, n_pad)


def basic_block_forward(x_nhwc, params, *, stride=1):
    """Fused BasicBlock forward. x_nhwc: (N, H, W, Cin) float32."""
    N, H, W, Cin = x_nhwc.shape
    planes = params["w1"].shape[-1]
    proj = "w_sc" in params
    if not proj:
        assert stride == 1 and Cin == planes, "identity shortcut needs matching shapes"
    Ho = (H - 1) // stride + 1                 # 3x3, pad 1
    Wo = (W - 1) // stride + 1
    LANES = 128
    Cp = _round_up(Cin, LANES)                 # lane-dense (channel-padded) widths
    Pp = _round_up(planes, LANES)
    Cmax = max(Cp, Pp)

    a1 = _fold_bn_padded(params["bn1"], Pp)
    a2 = _fold_bn_padded(params["bn2"], Pp)
    w1 = jnp.pad(params["w1"], ((0, 0), (0, 0), (0, Cp - Cin), (0, Pp - planes)))
    w1 = w1.reshape(9 * Cp, Pp).astype(jnp.bfloat16)
    w2 = jnp.pad(params["w2"], ((0, 0), (0, 0), (0, Pp - planes), (0, Pp - planes)))
    w2 = w2.reshape(9 * Pp, Pp).astype(jnp.bfloat16)

    args = [x_nhwc.astype(jnp.float32), w1, a1, w2, a2]
    in_specs = [
        pl.BlockSpec((1, H, W, Cin), lambda n: (n, 0, 0, 0)),
        pl.BlockSpec((9 * Cp, Pp), lambda n: (0, 0)),
        pl.BlockSpec((2, Pp), lambda n: (0, 0)),
        pl.BlockSpec((9 * Pp, Pp), lambda n: (0, 0)),
        pl.BlockSpec((2, Pp), lambda n: (0, 0)),
    ]
    if proj:
        wsc = jnp.pad(params["w_sc"], ((0, Cp - Cin), (0, Pp - planes)))
        args += [wsc.astype(jnp.bfloat16), _fold_bn_padded(params["bn_sc"], Pp)]
        in_specs += [pl.BlockSpec((Cp, Pp), lambda n: (0, 0)),
                     pl.BlockSpec((2, Pp), lambda n: (0, 0))]

    kern = functools.partial(_basic_block_kernel, stride=stride, proj=proj)
    out = pl.pallas_call(
        kern,
        out_shape=jax.ShapeDtypeStruct((N, Ho, Wo, Pp), jnp.float32),
        grid=(N,),                                    # batch: parallel (v7x megacore)
        in_specs=in_specs,
        out_specs=pl.BlockSpec((1, Ho, Wo, Pp), lambda n: (n, 0, 0, 0)),
        scratch_shapes=[
            pltpu.VMEM((H + 2, W + 2, Cp), jnp.float32),      # padded input
            pltpu.VMEM((Ho + 2, Wo + 2, Pp), jnp.float32),    # padded conv1 activation
            pltpu.VMEM((Ho * Wo, 9 * Cmax), jnp.bfloat16),    # im2col slab (shared)
        ],
        compiler_params=pltpu.CompilerParams(
            dimension_semantics=("parallel",)),
    )(*args)
    # drop the lane padding (cheap XLA slice; keeps the in-kernel store lane-dense)
    return out[..., :planes]


# ------------------------------ reference ------------------------------------ #

def _ref_basic_block(x_nhwc, params, *, stride=1, mxu_dtype=jnp.bfloat16):
    """Pure-JAX reference (lax.conv). With mxu_dtype=bf16 it mirrors the kernel's
    quantization points (bf16 MXU operands, f32 accumulation/epilogue)."""
    def conv(x, w, s, pad):
        return jax.lax.conv_general_dilated(
            x.astype(mxu_dtype), w.astype(mxu_dtype),
            window_strides=(s, s), padding=pad,
            dimension_numbers=("NHWC", "HWIO", "NHWC"),
            preferred_element_type=jnp.float32)

    s1, b1 = _fold_bn(*params["bn1"])
    s2, b2 = _fold_bn(*params["bn2"])
    h = jnp.maximum(conv(x_nhwc, params["w1"], stride, ((1, 1), (1, 1))) * s1 + b1, 0.0)
    h = conv(h, params["w2"], 1, ((1, 1), (1, 1))) * s2 + b2
    if "w_sc" in params:
        ss, bs = _fold_bn(*params["bn_sc"])
        cin, cout = params["w_sc"].shape
        sc = conv(x_nhwc, params["w_sc"].reshape(1, 1, cin, cout),
                  stride, ((0, 0), (0, 0))) * ss + bs
    else:
        sc = x_nhwc
    return jnp.maximum(h + sc, 0.0)


# -------------------------------- params -------------------------------------- #

def _make_params(key, in_planes, planes, stride):
    keys = jax.random.split(key, 12)
    params = {
        "w1": 0.1 * jax.random.normal(keys[0], (3, 3, in_planes, planes), jnp.float32),
        "w2": 0.1 * jax.random.normal(keys[1], (3, 3, planes, planes), jnp.float32),
        "bn1": (1.0 + 0.1 * jax.random.normal(keys[2], (planes,), jnp.float32),
                0.1 * jax.random.normal(keys[3], (planes,), jnp.float32),
                0.1 * jax.random.normal(keys[4], (planes,), jnp.float32),
                jnp.abs(1.0 + 0.1 * jax.random.normal(keys[5], (planes,), jnp.float32))),
        "bn2": (1.0 + 0.1 * jax.random.normal(keys[6], (planes,), jnp.float32),
                0.1 * jax.random.normal(keys[7], (planes,), jnp.float32),
                0.1 * jax.random.normal(keys[8], (planes,), jnp.float32),
                jnp.abs(1.0 + 0.1 * jax.random.normal(keys[9], (planes,), jnp.float32))),
    }
    if stride != 1 or in_planes != planes:
        params["w_sc"] = 0.1 * jax.random.normal(keys[10], (in_planes, planes), jnp.float32)
        kk = jax.random.split(keys[11], 4)
        params["bn_sc"] = (1.0 + 0.1 * jax.random.normal(kk[0], (planes,), jnp.float32),
                           0.1 * jax.random.normal(kk[1], (planes,), jnp.float32),
                           0.1 * jax.random.normal(kk[2], (planes,), jnp.float32),
                           jnp.abs(1.0 + 0.1 * jax.random.normal(kk[3], (planes,), jnp.float32)))
    return params


# -------------------------------- main ----------------------------------------- #

if __name__ == "__main__":
    key = jax.random.PRNGKey(0)
    k_x1, k_p1, k_x2, k_p2 = jax.random.split(key, 4)

    # -- case 1: spec shape NCHW (2, 4, 16, 16), in_planes=4 != planes=8
    #            -> projection shortcut, stride 1.
    N, C_IN, H, W = 2, 4, 16, 16
    PLANES, STRIDE = 8, 1
    x_nchw = jax.random.normal(k_x1, (N, C_IN, H, W), jnp.float32)
    x_nhwc = jnp.transpose(x_nchw, (0, 2, 3, 1))            # glue: NCHW -> NHWC
    params = _make_params(k_p1, C_IN, PLANES, STRIDE)

    out = jax.block_until_ready(basic_block_forward(x_nhwc, params, stride=STRIDE))
    assert out.shape == (N, H // STRIDE, W // STRIDE, PLANES), out.shape

    ref = _ref_basic_block(x_nhwc, params, stride=STRIDE)           # bf16-matched ref
    err = float(jnp.max(jnp.abs(out - ref)))
    assert jnp.allclose(out, ref, atol=5e-4, rtol=5e-4), err

    ref32 = _ref_basic_block(x_nhwc, params, stride=STRIDE, mxu_dtype=jnp.float32)
    rel = float(jnp.linalg.norm(out - ref32) / jnp.linalg.norm(ref32))
    assert rel < 3e-2, rel                                          # coarse f32 sanity

    # -- case 2: identity shortcut (in_planes == planes, stride 1).
    params_id = _make_params(k_p2, PLANES, PLANES, 1)
    x2 = jax.random.normal(k_x2, (N, H, W, PLANES), jnp.float32)
    out2 = jax.block_until_ready(basic_block_forward(x2, params_id, stride=1))
    ref2 = _ref_basic_block(x2, params_id, stride=1)
    err2 = float(jnp.max(jnp.abs(out2 - ref2)))
    assert jnp.allclose(out2, ref2, atol=5e-4, rtol=5e-4), err2

    print("KERNEL_OK")
</pallas_src>

<mosaic_0001>
module attributes {stable_mosaic.version = 11 : i64} {
  func.func @_basic_block_kernel(%arg0: i32, %arg1: memref<1x16x16x4xf32, #tpu.memory_space<vmem>>, %arg2: memref<1152x128xbf16, #tpu.memory_space<vmem>>, %arg3: memref<2x128xf32, #tpu.memory_space<vmem>>, %arg4: memref<1152x128xbf16, #tpu.memory_space<vmem>>, %arg5: memref<2x128xf32, #tpu.memory_space<vmem>>, %arg6: memref<128x128xbf16, #tpu.memory_space<vmem>>, %arg7: memref<2x128xf32, #tpu.memory_space<vmem>>, %arg8: memref<1x16x16x128xf32, #tpu.memory_space<vmem>>, %arg9: memref<18x18x128xf32, #tpu.memory_space<vmem>>, %arg10: memref<18x18x128xf32, #tpu.memory_space<vmem>>, %arg11: memref<256x1152xbf16, #tpu.memory_space<vmem>>) attributes {dimension_semantics = [#tpu.dimension_semantics<parallel>], iteration_bounds = array<i64: 2>, scalar_prefetch = 0 : i64, scratch_operands = 3 : i64, tpu.core_type = #tpu.core_type<tc>, window_params = [{transform_indices = @transform_0, window_bounds = array<i64: 1, 16, 16, 4>}, {pipeline_mode = #tpu.pipeline_mode<synchronous>, transform_indices = @transform_1, window_bounds = array<i64: 1152, 128>}, {pipeline_mode = #tpu.pipeline_mode<synchronous>, transform_indices = @transform_2, window_bounds = array<i64: 2, 128>}, {pipeline_mode = #tpu.pipeline_mode<synchronous>, transform_indices = @transform_3, window_bounds = array<i64: 1152, 128>}, {pipeline_mode = #tpu.pipeline_mode<synchronous>, transform_indices = @transform_4, window_bounds = array<i64: 2, 128>}, {pipeline_mode = #tpu.pipeline_mode<synchronous>, transform_indices = @transform_5, window_bounds = array<i64: 128, 128>}, {pipeline_mode = #tpu.pipeline_mode<synchronous>, transform_indices = @transform_6, window_bounds = array<i64: 2, 128>}, {transform_indices = @transform_7, window_bounds = array<i64: 1, 16, 16, 128>}]} {
    %cst = arith.constant 0.000000e+00 : f32
    %0 = vector.broadcast %cst : f32 to vector<18x18x128xf32>
    %c0 = arith.constant 0 : index
    %c0_0 = arith.constant 0 : index
    %c0_1 = arith.constant 0 : index
    %1 = vector.load %arg9[%c0, %c0_0, %c0_1] : memref<18x18x128xf32, #tpu.memory_space<vmem>>, vector<18x18x128xf32>
    tpu.vector_store %arg9[%c0, %c0_0, %c0_1], %0 {strides = array<i32>} : memref<18x18x128xf32, #tpu.memory_space<vmem>>, vector<18x18x128xf32>,
    %c0_2 = arith.constant 0 : index
    %c0_3 = arith.constant 0 : index
    %c0_4 = arith.constant 0 : index
    %c0_5 = arith.constant 0 : index
    %2 = vector.load %arg1[%c0_2, %c0_3, %c0_4, %c0_5] : memref<1x16x16x4xf32, #tpu.memory_space<vmem>>, vector<1x16x16x4xf32>
    %3 = vector.shape_cast %2 : vector<1x16x16x4xf32> to vector<16x16x4xf32>
    %c1 = arith.constant 1 : index
    %c1_6 = arith.constant 1 : index
    %c0_7 = arith.constant 0 : index
    %4 = vector.load %arg9[%c1, %c1_6, %c0_7] : memref<18x18x128xf32, #tpu.memory_space<vmem>>, vector<16x16x4xf32>
    tpu.vector_store %arg9[%c1, %c1_6, %c0_7], %3 {strides = array<i32>} : memref<18x18x128xf32, #tpu.memory_space<vmem>>, vector<16x16x4xf32>,
    %c0_8 = arith.constant 0 : index
    %c0_9 = arith.constant 0 : index
    %c0_10 = arith.constant 0 : index
    %5 = vector.load %arg9[%c0_8, %c0_9, %c0_10] : memref<18x18x128xf32, #tpu.memory_space<vmem>>, vector<16x16x128xf32>
    %6 = vector.shape_cast %5 : vector<16x16x128xf32> to vector<256x128xf32>
    %7 = arith.truncf %6 : vector<256x128xf32> to vector<256x128xbf16>
    %c0_11 = arith.constant 0 : index
    %c0_12 = arith.constant 0 : index
    %8 = vector.load %arg11[%c0_11, %c0_12] : memref<256x1152xbf16, #tpu.memory_space<vmem>>, vector<256x128xbf16>
    tpu.vector_store %arg11[%c0_11, %c0_12], %7 {strides = array<i32>} : memref<256x1152xbf16, #tpu.memory_space<vmem>>, vector<256x128xbf16>,
    %c0_13 = arith.constant 0 : index
    %c1_14 = arith.constant 1 : index
    %c0_15 = arith.constant 0 : index
    %9 = vector.load %arg9[%c0_13, %c1_14, %c0_15] : memref<18x18x128xf32, #tpu.memory_space<vmem>>, vector<16x16x128xf32>
    %10 = vector.shape_cast %9 : vector<16x16x128xf32> to vector<256x128xf32>
    %11 = arith.truncf %10 : vector<256x128xf32> to vector<256x128xbf16>
    %c0_16 = arith.constant 0 : index
    %c128 = arith.constant 128 : index
    %12 = vector.load %arg11[%c0_16, %c128] : memref<256x1152xbf16, #tpu.memory_space<vmem>>, vector<256x128xbf16>
    tpu.vector_store %arg11[%c0_16, %c128], %11 {strides = array<i32>} : memref<256x1152xbf16, #tpu.memory_space<vmem>>, vector<256x128xbf16>,
    %c0_17 = arith.constant 0 : index
    %c2 = arith.constant 2 : index
    %c0_18 = arith.constant 0 : index
    %13 = vector.load %arg9[%c0_17, %c2, %c0_18] : memref<18x18x128xf32, #tpu.memory_space<vmem>>, vector<16x16x128xf32>
    %14 = vector.shape_cast %13 : vector<16x16x128xf32> to vector<256x128xf32>
    %15 = arith.truncf %14 : vector<256x128xf32> to vector<256x128xbf16>
    %c0_19 = arith.constant 0 : index
    %c256 = arith.constant 256 : index
    %16 = vector.load %arg11[%c0_19, %c256] : memref<256x1152xbf16, #tpu.memory_space<vmem>>, vector<256x128xbf16>
    tpu.vector_store %arg11[%c0_19, %c256], %15 {strides = array<i32>} : memref<256x1152xbf16, #tpu.memory_space<vmem>>, vector<256x128xbf16>,
    %c1_20 = arith.constant 1 : index
    %c0_21 = arith.constant 0 : index
    %c0_22 = arith.constant 0 : index
    %17 = vector.load %arg9[%c1_20, %c0_21, %c0_22] : memref<18x18x128xf32, #tpu.memory_space<vmem>>, vector<16x16x128xf32>
    %18 = vector.shape_cast %17 : vector<16x16x128xf32> to vector<256x128xf32>
    %19 = arith.truncf %18 : vector<256x128xf32> to vector<256x128xbf16>
    %c0_23 = arith.constant 0 : index
    %c384 = arith.constant 384 : index
    %20 = vector.load %arg11[%c0_23, %c384] : memref<256x1152xbf16, #tpu.memory_space<vmem>>, vector<256x128xbf16>
    tpu.vector_store %arg11[%c0_23, %c384], %19 {strides = array<i32>} : memref<256x1152xbf16, #tpu.memory_space<vmem>>, vector<256x128xbf16>,
    %c1_24 = arith.constant 1 : index
    %c1_25 = arith.constant 1 : index
    %c0_26 = arith.constant 0 : index
    %21 = vector.load %arg9[%c1_24, %c1_25, %c0_26] : memref<18x18x128xf32, #tpu.memory_space<vmem>>, vector<16x16x128xf32>
    %22 = vector.shape_cast %21 : vector<16x16x128xf32> to vector<256x128xf32>
    %23 = arith.truncf %22 : vector<256x128xf32> to vector<256x128xbf16>
    %c0_27 = arith.constant 0 : index
    %c512 = arith.constant 512 : index
    %24 = vector.load %arg11[%c0_27, %c512] : memref<256x1152xbf16, #tpu.memory_space<vmem>>, vector<256x128xbf16>
    tpu.vector_store %arg11[%c0_27, %c512], %23 {strides = array<i32>} : memref<256x1152xbf16, #tpu.memory_space<vmem>>, vector<256x128xbf16>,
    %c1_28 = arith.constant 1 : index
    %c2_29 = arith.constant 2 : index
    %c0_30 = arith.constant 0 : index
    %25 = vector.load %arg9[%c1_28, %c2_29, %c0_30] : memref<18x18x128xf32, #tpu.memory_space<vmem>>, vector<16x16x128xf32>
    %26 = vector.shape_cast %25 : vector<16x16x128xf32> to vector<256x128xf32>
    %27 = arith.truncf %26 : vector<256x128xf32> to vector<256x128xbf16>
    %c0_31 = arith.constant 0 : index
    %c640 = arith.constant 640 : index
    %28 = vector.load %arg11[%c0_31, %c640] : memref<256x1152xbf16, #tpu.memory_space<vmem>>, vector<256x128xbf16>
    tpu.vector_store %arg11[%c0_31, %c640], %27 {strides = array<i32>} : memref<256x1152xbf16, #tpu.memory_space<vmem>>, vector<256x128xbf16>,
    %c2_32 = arith.constant 2 : index
    %c0_33 = arith.constant 0 : index
    %c0_34 = arith.constant 0 : index
    %29 = vector.load %arg9[%c2_32, %c0_33, %c0_34] : memref<18x18x128xf32, #tpu.memory_space<vmem>>, vector<16x16x128xf32>
    %30 = vector.shape_cast %29 : vector<16x16x128xf32> to vector<256x128xf32>
    %31 = arith.truncf %30 : vector<256x128xf32> to vector<256x128xbf16>
    %c0_35 = arith.constant 0 : index
    %c768 = arith.constant 768 : index
    %32 = vector.load %arg11[%c0_35, %c768] : memref<256x1152xbf16, #tpu.memory_space<vmem>>, vector<256x128xbf16>
    tpu.vector_store %arg11[%c0_35, %c768], %31 {strides = array<i32>} : memref<256x1152xbf16, #tpu.memory_space<vmem>>, vector<256x128xbf16>,
    %c2_36 = arith.constant 2 : index
    %c1_37 = arith.constant 1 : index
    %c0_38 = arith.constant 0 : index
    %33 = vector.load %arg9[%c2_36, %c1_37, %c0_38] : memref<18x18x128xf32, #tpu.memory_space<vmem>>, vector<16x16x128xf32>
    %34 = vector.shape_cast %33 : vector<16x16x128xf32> to vector<256x128xf32>
    %35 = arith.truncf %34 : vector<256x128xf32> to vector<256x128xbf16>
    %c0_39 = arith.constant 0 : index
    %c896 = arith.constant 896 : index
    %36 = vector.load %arg11[%c0_39, %c896] : memref<256x1152xbf16, #tpu.memory_space<vmem>>, vector<256x128xbf16>
    tpu.vector_store %arg11[%c0_39, %c896], %35 {strides = array<i32>} : memref<256x1152xbf16, #tpu.memory_space<vmem>>, vector<256x128xbf16>,
    %c2_40 = arith.constant 2 : index
    %c2_41 = arith.constant 2 : index
    %c0_42 = arith.constant 0 : index
    %37 = vector.load %arg9[%c2_40, %c2_41, %c0_42] : memref<18x18x128xf32, #tpu.memory_space<vmem>>, vector<16x16x128xf32>
    %38 = vector.shape_cast %37 : vector<16x16x128xf32> to vector<256x128xf32>
    %39 = arith.truncf %38 : vector<256x128xf32> to vector<256x128xbf16>
    %c0_43 = arith.constant 0 : index
    %c1024 = arith.constant 1024 : index
    %40 = vector.load %arg11[%c0_43, %c1024] : memref<256x1152xbf16, #tpu.memory_space<vmem>>, vector<256x128xbf16>
    tpu.vector_store %arg11[%c0_43, %c1024], %39 {strides = array<i32>} : memref<256x1152xbf16, #tpu.memory_space<vmem>>, vector<256x128xbf16>,
    %c0_44 = arith.constant 0 : index
    %c0_45 = arith.constant 0 : index
    %41 = vector.load %arg11[%c0_44, %c0_45] : memref<256x1152xbf16, #tpu.memory_space<vmem>>, vector<256x1152xbf16>
    %c0_46 = arith.constant 0 : index
    %c0_47 = arith.constant 0 : index
    %42 = vector.load %arg2[%c0_46, %c0_47] : memref<1152x128xbf16, #tpu.memory_space<vmem>>, vector<1152x128xbf16>
    %cst_48 = arith.constant dense<0.000000e+00> : vector<256x128xf32>
    %43 = tpu.matmul %41, %42, %cst_48 {dimension_numbers = #tpu.dot_dimension_numbers<[1], [0], [0], [1], [0, 0, 1, 1], [], []>} : vector<256x1152xbf16>, vector<1152x128xbf16>, vector<256x128xf32> -> vector<256x128xf32>
    %c0_49 = arith.constant 0 : index
    %c0_50 = arith.constant 0 : index
    %44 = vector.load %arg3[%c0_49, %c0_50] : memref<2x128xf32, #tpu.memory_space<vmem>>, vector<1x128xf32>
    %45 = vector.broadcast %44 : vector<1x128xf32> to vector<256x128xf32>
    %46 = arith.mulf %43, %45 : vector<256x128xf32>
    %c1_51 = arith.constant 1 : index
    %c0_52 = arith.constant 0 : index
    %47 = vector.load %arg3[%c1_51, %c0_52] : memref<2x128xf32, #tpu.memory_space<vmem>>, vector<1x128xf32>
    %48 = vector.broadcast %47 : vector<1x128xf32> to vector<256x128xf32>
    %49 = arith.addf %46, %48 : vector<256x128xf32>
    %cst_53 = arith.constant 0.000000e+00 : f32
    %50 = vector.broadcast %cst_53 : f32 to vector<256x128xf32>
    %51 = arith.maximumf %49, %50 : vector<256x128xf32>
    %cst_54 = arith.constant 0.000000e+00 : f32
    %52 = vector.broadcast %cst_54 : f32 to vector<18x18x128xf32>
    %c0_55 = arith.constant 0 : index
    %c0_56 = arith.constant 0 : index
    %c0_57 = arith.constant 0 : index
    %53 = vector.load %arg10[%c0_55, %c0_56, %c0_57] : memref<18x18x128xf32, #tpu.memory_space<vmem>>, vector<18x18x128xf32>
    tpu.vector_store %arg10[%c0_55, %c0_56, %c0_57], %52 {strides = array<i32>} : memref<18x18x128xf32, #tpu.memory_space<vmem>>, vector<18x18x128xf32>,
    %54 = vector.shape_cast %51 : vector<256x128xf32> to vector<16x16x128xf32>
    %c1_58 = arith.constant 1 : index
    %c1_59 = arith.constant 1 : index
    %c0_60 = arith.constant 0 : index
    %55 = vector.load %arg10[%c1_58, %c1_59, %c0_60] : memref<18x18x128xf32, #tpu.memory_space<vmem>>, vector<16x16x128xf32>
    tpu.vector_store %arg10[%c1_58, %c1_59, %c0_60], %54 {strides = array<i32>} : memref<18x18x128xf32, #tpu.memory_space<vmem>>, vector<16x16x128xf32>,
    %c0_61 = arith.constant 0 : index
    %c0_62 = arith.constant 0 : index
    %c0_63 = arith.constant 0 : index
    %56 = vector.load %arg10[%c0_61, %c0_62, %c0_63] : memref<18x18x128xf32, #tpu.memory_space<vmem>>, vector<16x16x128xf32>
    %57 = vector.shape_cast %56 : vector<16x16x128xf32> to vector<256x128xf32>
    %58 = arith.truncf %57 : vector<256x128xf32> to vector<256x128xbf16>
    %c0_64 = arith.constant 0 : index
    %c0_65 = arith.constant 0 : index
    %59 = vector.load %arg11[%c0_64, %c0_65] : memref<256x1152xbf16, #tpu.memory_space<vmem>>, vector<256x128xbf16>
    tpu.vector_store %arg11[%c0_64, %c0_65], %58 {strides = array<i32>} : memref<256x1152xbf16, #tpu.memory_space<vmem>>, vector<256x128xbf16>,
    %c0_66 = arith.constant 0 : index
    %c1_67 = arith.constant 1 : index
    %c0_68 = arith.constant 0 : index
    %60 = vector.load %arg10[%c0_66, %c1_67, %c0_68] : memref<18x18x128xf32, #tpu.memory_space<vmem>>, vector<16x16x128xf32>
    %61 = vector.shape_cast %60 : vector<16x16x128xf32> to vector<256x128xf32>
    %62 = arith.truncf %61 : vector<256x128xf32> to vector<256x128xbf16>
    %c0_69 = arith.constant 0 : index
    %c128_70 = arith.constant 128 : index
    %63 = vector.load %arg11[%c0_69, %c128_70] : memref<256x1152xbf16, #tpu.memory_space<vmem>>, vector<256x128xbf16>
    tpu.vector_store %arg11[%c0_69, %c128_70], %62 {strides = array<i32>} : memref<256x1152xbf16, #tpu.memory_space<vmem>>, vector<256x128xbf16>,
    %c0_71 = arith.constant 0 : index
    %c2_72 = arith.constant 2 : index
    %c0_73 = arith.constant 0 : index
    %64 = vector.load %arg10[%c0_71, %c2_72, %c0_73] : memref<18x18x128xf32, #tpu.memory_space<vmem>>, vector<16x16x128xf32>
    %65 = vector.shape_cast %64 : vector<16x16x128xf32> to vector<256x128xf32>
    %66 = arith.truncf %65 : vector<256x128xf32> to vector<256x128xbf16>
    %c0_74 = arith.constant 0 : index
    %c256_75 = arith.constant 256 : index
    %67 = vector.load %arg11[%c0_74, %c256_75] : memref<256x1152xbf16, #tpu.memory_space<vmem>>, vector<256x128xbf16>
    tpu.vector_store %arg11[%c0_74, %c256_75], %66 {strides = array<i32>} : memref<256x1152xbf16, #tpu.memory_space<vmem>>, vector<256x128xbf16>,
    %c1_76 = arith.constant 1 : index
    %c0_77 = arith.constant 0 : index
    %c0_78 = arith.constant 0 : index
    %68 = vector.load %arg10[%c1_76, %c0_77, %c0_78] : memref<18x18x128xf32, #tpu.memory_space<vmem>>, vector<16x16x128xf32>
    %69 = vector.shape_cast %68 : vector<16x16x128xf32> to vector<256x128xf32>
    %70 = arith.truncf %69 : vector<256x128xf32> to vector<256x128xbf16>
    %c0_79 = arith.constant 0 : index
    %c384_80 = arith.constant 384 : index
    %71 = vector.load %arg11[%c0_79, %c384_80] : memref<256x1152xbf16, #tpu.memory_space<vmem>>, vector<256x128xbf16>
    tpu.vector_store %arg11[%c0_79, %c384_80], %70 {strides = array<i32>} : memref<256x1152xbf16, #tpu.memory_space<vmem>>, vector<256x128xbf16>,
    %c1_81 = arith.constant 1 : index
    %c1_82 = arith.constant 1 : index
    %c0_83 = arith.constant 0 : index
    %72 = vector.load %arg10[%c1_81, %c1_82, %c0_83] : memref<18x18x128xf32, #tpu.memory_space<vmem>>, vector<16x16x128xf32>
    %73 = vector.shape_cast %72 : vector<16x16x128xf32> to vector<256x128xf32>
    %74 = arith.truncf %73 : vector<256x128xf32> to vector<256x128xbf16>
    %c0_84 = arith.constant 0 : index
    %c512_85 = arith.constant 512 : index
    %75 = vector.load %arg11[%c0_84, %c512_85] : memref<256x1152xbf16, #tpu.memory_space<vmem>>, vector<256x128xbf16>
    tpu.vector_store %arg11[%c0_84, %c512_85], %74 {strides = array<i32>} : memref<256x1152xbf16, #tpu.memory_space<vmem>>, vector<256x128xbf16>,
    %c1_86 = arith.constant 1 : index
    %c2_87 = arith.constant 2 : index
    %c0_88 = arith.constant 0 : index
    %76 = vector.load %arg10[%c1_86, %c2_87, %c0_88] : memref<18x18x128xf32, #tpu.memory_space<vmem>>, vector<16x16x128xf32>
    %77 = vector.shape_cast %76 : vector<16x16x128xf32> to vector<256x128xf32>
    %78 = arith.truncf %77 : vector<256x128xf32> to vector<256x128xbf16>
    %c0_89 = arith.constant 0 : index
    %c640_90 = arith.constant 640 : index
    %79 = vector.load %arg11[%c0_89, %c640_90] : memref<256x1152xbf16, #tpu.memory_space<vmem>>, vector<256x128xbf16>
    tpu.vector_store %arg11[%c0_89, %c640_90], %78 {strides = array<i32>} : memref<256x1152xbf16, #tpu.memory_space<vmem>>, vector<256x128xbf16>,
    %c2_91 = arith.constant 2 : index
    %c0_92 = arith.constant 0 : index
    %c0_93 = arith.constant 0 : index
    %80 = vector.load %arg10[%c2_91, %c0_92, %c0_93] : memref<18x18x128xf32, #tpu.memory_space<vmem>>, vector<16x16x128xf32>
    %81 = vector.shape_cast %80 : vector<16x16x128xf32> to vector<256x128xf32>
    %82 = arith.truncf %81 : vector<256x128xf32> to vector<256x128xbf16>
    %c0_94 = arith.constant 0 : index
    %c768_95 = arith.constant 768 : index
    %83 = vector.load %arg11[%c0_94, %c768_95] : memref<256x1152xbf16, #tpu.memory_space<vmem>>, vector<256x128xbf16>
    tpu.vector_store %arg11[%c0_94, %c768_95], %82 {strides = array<i32>} : memref<256x1152xbf16, #tpu.memory_space<vmem>>, vector<256x128xbf16>,
    %c2_96 = arith.constant 2 : index
    %c1_97 = arith.constant 1 : index
    %c0_98 = arith.constant 0 : index
    %84 = vector.load %arg10[%c2_96, %c1_97, %c0_98] : memref<18x18x128xf32, #tpu.memory_space<vmem>>, vector<16x16x128xf32>
    %85 = vector.shape_cast %84 : vector<16x16x128xf32> to vector<256x128xf32>
    %86 = arith.truncf %85 : vector<256x128xf32> to vector<256x128xbf16>
    %c0_99 = arith.constant 0 : index
    %c896_100 = arith.constant 896 : index
    %87 = vector.load %arg11[%c0_99, %c896_100] : memref<256x1152xbf16, #tpu.memory_space<vmem>>, vector<256x128xbf16>
    tpu.vector_store %arg11[%c0_99, %c896_100], %86 {strides = array<i32>} : memref<256x1152xbf16, #tpu.memory_space<vmem>>, vector<256x128xbf16>,
    %c2_101 = arith.constant 2 : index
    %c2_102 = arith.constant 2 : index
    %c0_103 = arith.constant 0 : index
    %88 = vector.load %arg10[%c2_101, %c2_102, %c0_103] : memref<18x18x128xf32, #tpu.memory_space<vmem>>, vector<16x16x128xf32>
    %89 = vector.shape_cast %88 : vector<16x16x128xf32> to vector<256x128xf32>
    %90 = arith.truncf %89 : vector<256x128xf32> to vector<256x128xbf16>
    %c0_104 = arith.constant 0 : index
    %c1024_105 = arith.constant 1024 : index
    %91 = vector.load %arg11[%c0_104, %c1024_105] : memref<256x1152xbf16, #tpu.memory_space<vmem>>, vector<256x128xbf16>
    tpu.vector_store %arg11[%c0_104, %c1024_105], %90 {strides = array<i32>} : memref<256x1152xbf16, #tpu.memory_space<vmem>>, vector<256x128xbf16>,
    %c0_106 = arith.constant 0 : index
    %c0_107 = arith.constant 0 : index
    %92 = vector.load %arg11[%c0_106, %c0_107] : memref<256x1152xbf16, #tpu.memory_space<vmem>>, vector<256x1152xbf16>
    %c0_108 = arith.constant 0 : index
    %c0_109 = arith.constant 0 : index
    %93 = vector.load %arg4[%c0_108, %c0_109] : memref<1152x128xbf16, #tpu.memory_space<vmem>>, vector<1152x128xbf16>
    %cst_110 = arith.constant dense<0.000000e+00> : vector<256x128xf32>
    %94 = tpu.matmul %92, %93, %cst_110 {dimension_numbers = #tpu.dot_dimension_numbers<[1], [0], [0], [1], [0, 0, 1, 1], [], []>} : vector<256x1152xbf16>, vector<1152x128xbf16>, vector<256x128xf32> -> vector<256x128xf32>
    %c0_111 = arith.constant 0 : index
    %c0_112 = arith.constant 0 : index
    %95 = vector.load %arg5[%c0_111, %c0_112] : memref<2x128xf32, #tpu.memory_space<vmem>>, vector<1x128xf32>
    %96 = vector.broadcast %95 : vector<1x128xf32> to vector<256x128xf32>
    %97 = arith.mulf %94, %96 : vector<256x128xf32>
    %c1_113 = arith.constant 1 : index
    %c0_114 = arith.constant 0 : index
    %98 = vector.load %arg5[%c1_113, %c0_114] : memref<2x128xf32, #tpu.memory_space<vmem>>, vector<1x128xf32>
    %99 = vector.broadcast %98 : vector<1x128xf32> to vector<256x128xf32>
    %100 = arith.addf %97, %99 : vector<256x128xf32>
    %c1_115 = arith.constant 1 : index
    %c1_116 = arith.constant 1 : index
    %c0_117 = arith.constant 0 : index
    %101 = vector.load %arg9[%c1_115, %c1_116, %c0_117] : memref<18x18x128xf32, #tpu.memory_space<vmem>>, vector<16x16x128xf32>
    %102 = vector.shape_cast %101 : vector<16x16x128xf32> to vector<256x128xf32>
    %103 = arith.truncf %102 : vector<256x128xf32> to vector<256x128xbf16>
    %c0_118 = arith.constant 0 : index
    %c0_119 = arith.constant 0 : index
    %104 = vector.load %arg6[%c0_118, %c0_119] : memref<128x128xbf16, #tpu.memory_space<vmem>>, vector<128x128xbf16>
    %cst_120 = arith.constant dense<0.000000e+00> : vector<256x128xf32>
    %105 = tpu.matmul %103, %104, %cst_120 {dimension_numbers = #tpu.dot_dimension_numbers<[1], [0], [0], [1], [0, 0, 1, 1], [], []>} : vector<256x128xbf16>, vector<128x128xbf16>, vector<256x128xf32> -> vector<256x128xf32>
    %c0_121 = arith.constant 0 : index
    %c0_122 = arith.constant 0 : index
    %106 = vector.load %arg7[%c0_121, %c0_122] : memref<2x128xf32, #tpu.memory_space<vmem>>, vector<1x128xf32>
    %107 = vector.broadcast %106 : vector<1x128xf32> to vector<256x128xf32>
    %108 = arith.mulf %105, %107 : vector<256x128xf32>
    %c1_123 = arith.constant 1 : index
    %c0_124 = arith.constant 0 : index
    %109 = vector.load %arg7[%c1_123, %c0_124] : memref<2x128xf32, #tpu.memory_space<vmem>>, vector<1x128xf32>
    %110 = vector.broadcast %109 : vector<1x128xf32> to vector<256x128xf32>
    %111 = arith.addf %108, %110 : vector<256x128xf32>
    %112 = arith.addf %100, %111 : vector<256x128xf32>
    %cst_125 = arith.constant 0.000000e+00 : f32
    %113 = vector.broadcast %cst_125 : f32 to vector<256x128xf32>
    %114 = arith.maximumf %112, %113 : vector<256x128xf32>
    %115 = vector.shape_cast %114 : vector<256x128xf32> to vector<16x16x128xf32>
    %c0_126 = arith.constant 0 : index
    %c0_127 = arith.constant 0 : index
    %c0_128 = arith.constant 0 : index
    %c0_129 = arith.constant 0 : index
    %116 = vector.load %arg8[%c0_126, %c0_127, %c0_128, %c0_129] : memref<1x16x16x128xf32, #tpu.memory_space<vmem>>, vector<1x16x16x128xf32>
    %117 = vector.shape_cast %116 : vector<1x16x16x128xf32> to vector<16x16x128xf32>
    %118 = vector.shape_cast %115 : vector<16x16x128xf32> to vector<1x16x16x128xf32>
    tpu.vector_store %arg8[%c0_126, %c0_127, %c0_128, %c0_129], %118 {strides = array<i32>} : memref<1x16x16x128xf32, #tpu.memory_space<vmem>>, vector<1x16x16x128xf32>,
    return
  }
  func.func @transform_0(%arg0: i32) -> (i32, i32, i32, i32) {
    %c0_i32 = arith.constant 0 : i32
    %c0_i32_0 = arith.constant 0 : i32
    %c0_i32_1 = arith.constant 0 : i32
    %c0_i32_2 = arith.constant 0 : i32
    return %arg0, %c0_i32, %c0_i32_0, %c0_i32_1 : i32, i32, i32, i32
  }
  func.func @transform_1(%arg0: i32) -> (i32, i32) {
    %c0_i32 = arith.constant 0 : i32
    %c0_i32_0 = arith.constant 0 : i32
    %c0_i32_1 = arith.constant 0 : i32
    return %c0_i32, %c0_i32_0 : i32, i32
  }
  func.func @transform_2(%arg0: i32) -> (i32, i32) {
    %c0_i32 = arith.constant 0 : i32
    %c0_i32_0 = arith.constant 0 : i32
    %c0_i32_1 = arith.constant 0 : i32
    return %c0_i32, %c0_i32_0 : i32, i32
  }
  func.func @transform_3(%arg0: i32) -> (i32, i32) {
    %c0_i32 = arith.constant 0 : i32
    %c0_i32_0 = arith.constant 0 : i32
    %c0_i32_1 = arith.constant 0 : i32
    return %c0_i32, %c0_i32_0 : i32, i32
  }
  func.func @transform_4(%arg0: i32) -> (i32, i32) {
    %c0_i32 = arith.constant 0 : i32
    %c0_i32_0 = arith.constant 0 : i32
    %c0_i32_1 = arith.constant 0 : i32
    return %c0_i32, %c0_i32_0 : i32, i32
  }
  func.func @transform_5(%arg0: i32) -> (i32, i32) {
    %c0_i32 = arith.constant 0 : i32
    %c0_i32_0 = arith.constant 0 : i32
    %c0_i32_1 = arith.constant 0 : i32
    return %c0_i32, %c0_i32_0 : i32, i32
  }
  func.func @transform_6(%arg0: i32) -> (i32, i32) {
    %c0_i32 = arith.constant 0 : i32
    %c0_i32_0 = arith.constant 0 : i32
    %c0_i32_1 = arith.constant 0 : i32
    return %c0_i32, %c0_i32_0 : i32, i32
  }
  func.func @transform_7(%arg0: i32) -> (i32, i32, i32, i32) {
    %c0_i32 = arith.constant 0 : i32
    %c0_i32_0 = arith.constant 0 : i32
    %c0_i32_1 = arith.constant 0 : i32
    %c0_i32_2 = arith.constant 0 : i32
    return %arg0, %c0_i32, %c0_i32_0, %c0_i32_1 : i32, i32, i32, i32
  }
}

</mosaic_0001>

<bundles_post_ra>
// kernel: tpu_custom_call.1
= control target key start
LH: loop header
LB: loop body
LE: loop exit
PB: predicated region body
PF: predicated region fallthrough
CT: control target
= control target key end

     0   :  { %12 = vsyncpa [#allocation6], 0  ;;  %s8869_s0 = inlined_call_operand.vmem [shape: f32[2,16,16,4], index: 0, kind: input, shape index: {}]   ;;  %s8870_s1 = inlined_call_operand.vmem [shape: bf16[1152,128], index: 1, kind: input, shape index: {}]   ;;  %s8871_s2 = inlined_call_operand.vmem [shape: f32[2,128], index: 2, kind: input, shape index: {}]   ;;  %s8872_s3 = inlined_call_operand.hbm [shape: bf16[1152,128], index: 3, kind: input, shape index: {}]   ;;  %s8873_s4 = inlined_call_operand.vmem [shape: f32[2,128], index: 4, kind: input, shape index: {}]   ;;  %s8874_s5 = inlined_call_operand.vmem [shape: bf16[128,128], index: 5, kind: input, shape index: {}]   ;;  %s8875_s6 = inlined_call_operand.vmem [shape: f32[2,128], index: 6, kind: input, shape index: {}]   ;;  %s8876_s7 = inlined_call_operand.hbm [shape: f32[2,16,16,128], index: 7, kind: output, shape index: {}]  }
   0x1   :  { %13 = vsyncpa [#allocation7], 0 }
   0x2   :  { %15 = vsyncpa [#allocation7 + $0x1], 0  ;;  %s7070_s24 = smov 0   ;;  %s7072_s25 = smov 0  }
   0x3   :  { %s7074_s26 = smov 0   ;;  %s7076_s27 = smov 0  }
   0x4 LB: > { %s7091_s28 = sadd.s32 4294967295, %s7020_s27   ;;  %s5415_s29 = sadd.s32 4294967294, %s7020_s27   ;;  %s7020_s27 = sphi %s7076_s27, %s8892_s27   ;;  %s7016_s26 = sphi %s7074_s26, %s8891_s26   ;;  %s7012_s25 = sphi %s7072_s25, %s8890_s25   ;;  %s7008_s24 = sphi %s7070_s24, %s8889_s24  }
   0x5   : > { %s7095_s30 = sadd.s32 1, %s7020_s27   ;;  %s180_s8 = sadd.s32 1, %s7016_s26 }
   0x6   : > { %s177_s9 = ssub.s32 %s7020_s27, %s7095_s30  ;;  %p190_p0 = scmp.ne.s32.totalorder %s7016_s26, %s7012_s25 }
   0x7   : > { %p178_p1 = scmp.eq.s32.totalorder %s177_s9, 0  ;;  %p191_p2 = scmp.eq.s32.totalorder %s7091_s28, 1 }
   0x8   : > { %p196_p3 = scmp.ne.s32.totalorder %s7012_s25, %s7008_s24  ;;  %p197_p4 = scmp.eq.s32.totalorder %s5415_s29, 1 }
   0x9   : > { %s7106_s10 = scalar_select %p178_p1, %s7016_s26, %s180_s8  }
   0xa   : > { %p7108_p5 = por %p191_p2, %p190_p0  ;;  %p7112_p6 = por %p197_p4, %p196_p3 }
   0xb   : > { %p5416_p7 = scmp.ge.s32.totalorder %s7020_s27, 1  ;;  %p204_p8 = scmp.lt.s32.totalorder %s7020_s27, 3 }
   0xc   : > { %s8880_s11 = scalar_select %p7108_p5, 1, 0 }
   0xd   : > { %s8881_s12 = scalar_select %p7112_p6, 1, 0 }
   0xe   : > { %p8877_p9 = scmp.eq.s32.totalorder %s7091_s28, 0  ;;  %p7119_p10 = pnand %p5416_p7, %p204_p8 }
   0xf   : > { %s7022_s14 = smov [#allocation5]   ;;  %s6926_s19 = scalar_lea.hbm %s8872_s3, 9216 }
  0x10   : > { %s8882_s13 = scalar_select %p7119_p10, 1, 0 }
  0x11   : > { %s222_s15 = sshll.u32 %s7022_s14, 4  ;;  %p6723_p11 = pneg %p7119_p10  ;;  %s223_s15 = int_to_ptr.vmem [resolvable:$true] %s222_s15 }
  0x12   : > { %p6927_p13 = scmp.ne.s32.totalorder %s8872_s3, %s6926_s19  ;;  %p6933_p3 = scmp.lt.u32.totalorder %s6926_s19, %s8872_s3 }
  0x13   : > { %p7127_p12 = pnand %p8877_p9, %p6723_p11 }
  0x15   : > { %p6928_p0 = pneg %p7127_p12 }
  0x17   : > { %p6929_p1 = pnand %p6928_p0, %p6927_p13 }
  0x19   : > { %p6930_p2 = pneg %p6929_p1 }
  0x1b   : > { %p6935_p4 = pnand %p6933_p3, %p6930_p2 }
  0x1d   : > { %6938 = shalt.err (!%p6935_p4)
}
  0x1e   : > { %s6939_s29 = scalar_lea.vmem %s223_s15, 9216  ;;  %p6947_p9 = scmp.lt.s32.totalorder %s223_s15, %s223_s15 }
  0x1f   : > { %p6940_p7 = scmp.ne.s32.totalorder %s223_s15, %s6939_s29  ;;  %p6948_p6 = scmp.lt.s32.totalorder %s6939_s29, %s6939_s29 }
  0x21   : > { %p6942_p8 = pnand %p6940_p7, %p6928_p0  ;;  %p6949_p5 = por %p6948_p6, %p6947_p9 }
  0x23   : > { %p6943_p11 = pneg %p6942_p8 }
  0x25   : > { %p6950_p10 = pnand %p6949_p5, %p6943_p11 }
  0x27   : > { %6953 = shalt.err (!%p6950_p10)
}
  0x28   : > { %s7023_s8 = smov 64   ;;  %s7024_s9 = smov 4  }
  0x29   : > { %6726 = dma.hbm_to_vmem [thread:$0]  (!%p7127_p12), %s8872_s3, 9216, %s223_s15, [#allocation6], %s7023_s8, %s7023_s8, %s7024_s9  }
  0x2a   : > { %p8884_p13 = scmp.ne.s32.totalorder %s8882_s13, 0 }
  0x2b   : > { %p8885_p1 = scmp.eq.s32.totalorder (!%p8884_p13), %s7091_s28, 0 }
  0x2c   : > { %255 = sbr.rel (%p8884_p13) target bundleno = 1122 (0x462), region = 48 }
  0x33   : > { %6999 = dma.done.wait (%p8885_p1), [#allocation6], 9216   ;;  %p8886_p0 = pmov %p8885_p1 }
  0x34   : > { %v7025_v0 = vmov 0.0   ;;  %v6772_v1 = vld [vmem:[%s8870_s1 + $0x40] sm:$0xff]   ;;  %v6774_v3 = vld [vmem:[%s8870_s1 + $0x48] sm:$0xff]   ;;  %p287_p5 = scmp.lt.s32.totalorder %s7091_s28, 1  ;;  %v6776_v5 = vld [vmem:[%s8870_s1 + $0x50] sm:$0xff]   ;;  %vm380_vm0 = vcmask 31744  }
  0x35   : > { %7001 = vsyncadd (%p8886_p0), [#allocation6], 4294958080  ;;  %293 = vst [vmem:[#allocation2] sm:$0xff] %v7025_v0  ;;  %v6773_v2 = vld [vmem:[%s8870_s1] sm:$0xff]   ;;  %5589 = vmatprep.subr.bf16.mxu0 %v6772_v1  ;;  %6701 = vmatprep.subr.bf16.mxu1 %v6772_v1  ;;  %v6775_v4 = vld [vmem:[%s8870_s1 + $0x8] sm:$0xff]   ;;  %v7026_v48 = vmov 0.0|0.0  }
  0x36   : > { %294 = vst [vmem:[#allocation2 + $0x8] sm:$0xff] %v7025_v0  ;;  %295 = vst [vmem:[#allocation2 + $0x10] sm:$0x3] %v7025_v0  ;;  %5590 = vmatpush3.bf16.msra.mxu0 %v6773_v2  ;;  %6709 = vmatpush3.bf16.msra.mxu1 %v6773_v2  ;;  %s288_s8 = scalar_select %p287_p5, %s7091_s28, 1  ;;  %v6777_v6 = vld [vmem:[%s8870_s1 + $0x10] sm:$0xff]   ;;  %v6778_v7 = vld [vmem:[%s8870_s1 + $0x58] sm:$0xff]  }
  0x37   : > { %296 = vst [vmem:[#allocation2 + $0x18] sm:$0xff] %v7025_v0  ;;  %297 = vst [vmem:[#allocation2 + $0x20] sm:$0xff] %v7025_v0  ;;  %5591 = vmatprep.subr.bf16.mxu0 %v6774_v3  ;;  %6702 = vmatprep.subr.bf16.mxu1 %v6774_v3  ;;  %v6779_v8 = vld [vmem:[%s8870_s1 + $0x18] sm:$0xff]   ;;  %v6780_v9 = vld [vmem:[%s8870_s1 + $0x60] sm:$0xff]   ;;  %s284_s13 = sand.u32 1, %s7012_s25   ;;  %s5588_s20 = sshll.u32 %s7091_s28, 12 }
  0x38   : > { %298 = vst [vmem:[#allocation2 + $0x28] sm:$0x3] %v7025_v0  ;;  %299 = vst [vmem:[#allocation2 + $0x30] sm:$0xff] %v7025_v0  ;;  %s5587_s15 = sshll.u32 %s288_s8, 8  ;;  %v6781_v10 = vld [vmem:[%s8870_s1 + $0x20] sm:$0xff]   ;;  %v6782_v11 = vld [vmem:[%s8870_s1 + $0x68] sm:$0xff]   ;;  %s8819_s9 = scalar_lea.hbm %s8876_s7, %s5588_s20 }
  0x39   : > { %300 = vst [vmem:[#allocation2 + $0x38] sm:$0xff] %v7025_v0  ;;  %301 = vst [vmem:[#allocation2 + $0x40] sm:$0x3] %v7025_v0  ;;  %s7293_s23 = scalar_lea.vmem %s8869_s0, %s5587_s15  ;;  %v6783_v17 = vld [vmem:[%s8870_s1 + $0x28] sm:$0xff]   ;;  %v6784_v18 = vld [vmem:[%s8870_s1 + $0x70] sm:$0xff]   ;;  %s5421_s18 = sshll.u32 %s284_s13, 8 }
  0x3a   : > { %302 = vst [vmem:[#allocation2 + $0x48] sm:$0xff] %v7025_v0  ;;  %303 = vst [vmem:[#allocation2 + $0x50] sm:$0xff] %v7025_v0  ;;  %5592 = vmatpush3.bf16.msra.mxu0 %v6775_v4  ;;  %6710 = vmatpush3.bf16.msra.mxu1 %v6775_v4  ;;  %v369_v14 = vld [vmem:[%s7293_s23 + $0xb0] sm:$0xff]  ;;  %v370_v16 = vld [vmem:[%s7293_s23 + $0xb8] sm:$0xff]  ;;  %s8650_s19 = scalar_lea.vmem [#allocation8], %s5421_s18  ;;  %s8828_s28 = scalar_lea.sflag [#allocation7], %s284_s13 }
  0x3b   : > { %304 = vst [vmem:[#allocation2 + $0x58] sm:$0x3] %v7025_v0  ;;  %305 = vst [vmem:[#allocation2 + $0x60] sm:$0xff] %v7025_v0  ;;  %5593 = vmatprep.subr.bf16.mxu0 %v6776_v5  ;;  %6703 = vmatprep.subr.bf16.mxu1 %v6776_v5  ;;  %v6785_v19 = vld [vmem:[%s8870_s1 + $0x30] sm:$0xff]   ;;  %v347_v20 = vld [vmem:[%s7293_s23] sm:$0xff]  ;;  %s5341_s21 = sshll.u32 %s8650_s19, 4  ;;  %s8821_s21 = int_to_ptr.vmem [resolvable:$true] %s5341_s21 }
  0x3c   : > { %306 = vst [vmem:[#allocation2 + $0x68] sm:$0xff] %v7025_v0  ;;  %307 = vst [vmem:[#allocation2 + $0x70] sm:$0x3] %v7025_v0  ;;  %v348_v21 = vld [vmem:[%s7293_s23 + $0x8] sm:$0xff]  ;;  %v6786_v22 = vld [vmem:[%s8870_s1 + $0x78] sm:$0xff]   ;;  %p8887_p9 = scmp.ne.s32.totalorder %s8880_s11, 0 }
  0x3d   : > { %308 = vst [vmem:[#allocation2 + $0x78] sm:$0xff] %v7025_v0  ;;  %309 = vst [vmem:[#allocation2 + $0x80] sm:$0xff] %v7025_v0  ;;  %v477_v12 = vld [vmem:[#allocation2 + $0x1] sm:$0xff]  ;;  %v478_v13 = vld [vmem:[#allocation2 + $0x9] sm:$0xff]  ;;  %s7027_s8 = smov [#allocation8]  }
  0x3e   : > { %310 = vst [vmem:[#allocation2 + $0x88] sm:$0x3] %v7025_v0  ;;  %311 = vst [vmem:[#allocation2 + $0x90] sm:$0xff] %v7025_v0  ;;  %5594 = vmatpush3.bf16.msra.mxu0 %v6777_v6  ;;  %6711 = vmatpush3.bf16.msra.mxu1 %v6777_v6  ;;  %v509_v15 = vpack.c.bf16 %v478_v13, %v477_v12  ;;  %v371_v24 = vld [vmem:[%s7293_s23 + $0xc0] sm:$0xff]  ;;  %v6787_v25 = vld [vmem:[%s8870_s1 + $0x38] sm:$0xff]   ;;  %s6958_s14 = sshll.u32 %s7027_s8, 4  ;;  %s6959_s14 = int_to_ptr.vmem [resolvable:$false] %s6958_s14 }
  0x3f   : > { %312 = vst [vmem:[#allocation2 + $0x98] sm:$0xff] %v7025_v0  ;;  %313 = vst [vmem:[#allocation2 + $0xa0] sm:$0x3] %v7025_v0  ;;  %5595 = vmatprep.subr.bf16.mxu0 %v6778_v7  ;;  %6704 = vmatprep.subr.bf16.mxu1 %v6778_v7  ;;  %v372_v27 = vld [vmem:[%s7293_s23 + $0xc8] sm:$0xff]  ;;  %v6788_v30 = vld [vmem:[%s8870_s1 + $0xc0] sm:$0xff]   ;;  %s6960_s17 = scalar_lea.vmem %s6959_s14, 8192  ;;  %p6961_p2 = scmp.lt.s32.totalorder %s8821_s21, %s6959_s14 }
  0x40   : > { %314 = vst [vmem:[#allocation2 + $0xa8] sm:$0xff] %v7025_v0  ;;  %315 = vst [vmem:[#allocation2 + $0xb0] sm:$0xff] %v7025_v0  ;;  %1742 = vmatprep.mubr.bf16.mxu0 %v509_v15  ;;  %v6789_v32 = vld [vmem:[%s8870_s1 + $0x140] sm:$0xff]   ;;  %v6792_v38 = vld [vmem:[%s8870_s1 + $0xc8] sm:$0xff]  }
  0x41   : > { %316 = vst [vmem:[#allocation2 + $0xb8] sm:$0x3] %v7025_v0  ;;  %317 = vst [vmem:[#allocation2 + $0xc0] sm:$0xff] %v7025_v0  ;;  %v6790_v34 = vld [vmem:[%s8870_s1 + $0x80] sm:$0xff]   ;;  %v6797_v41 = vld [vmem:[%s8870_s1 + $0x148] sm:$0xff]  }
  0x42   : > { %318 = vst [vmem:[#allocation2 + $0xc8] sm:$0xff] %v7025_v0  ;;  %319 = vst [vmem:[#allocation2 + $0xd0] sm:$0x3] %v7025_v0  ;;  %5596 = vmatpush3.bf16.msra.mxu0 %v6779_v8  ;;  %6712 = vmatpush3.bf16.msra.mxu1 %v6779_v8  ;;  %v6791_v35 = vld [vmem:[%s8870_s1 + $0x100] sm:$0xff]   ;;  %v6793_v42 = vld [vmem:[%s8870_s1 + $0x88] sm:$0xff]  }
  0x43   : > { %320 = vst [vmem:[#allocation2 + $0xd8] sm:$0xff] %v7025_v0  ;;  %321 = vst [vmem:[#allocation2 + $0xe0] sm:$0xff] %v7025_v0  ;;  %5597 = vmatprep.subr.bf16.mxu0 %v6780_v9  ;;  %6705 = vmatprep.subr.bf16.mxu1 %v6780_v9  ;;  %v6799_v50 = vld [vmem:[%s8870_s1 + $0x108] sm:$0xff]   ;;  %v349_v51 = vld [vmem:[%s7293_s23 + $0x10] sm:$0xff] }
  0x44   : > { %322 = vst [vmem:[#allocation2 + $0xe8] sm:$0x3] %v7025_v0  ;;  %323 = vst [vmem:[#allocation2 + $0xf0] sm:$0xff] %v7025_v0  ;;  %v350_v52 = vld [vmem:[%s7293_s23 + $0x18] sm:$0xff]  ;;  %v373_v53 = vld [vmem:[%s7293_s23 + $0xd0] sm:$0xff] }
  0x45   : > { %324 = vst [vmem:[#allocation2 + $0xf8] sm:$0xff] %v7025_v0  ;;  %325 = vst [vmem:[#allocation2 + $0x100] sm:$0x3] %v7025_v0  ;;  %v374_v54 = vld [vmem:[%s7293_s23 + $0xd8] sm:$0xff]  ;;  %v6794_v55 = vld [vmem:[%s8870_s1 + $0xd0] sm:$0xff]  }
  0x46   : > { %326 = vst [vmem:[#allocation2 + $0x108] sm:$0xff] %v7025_v0  ;;  %327 = vst [vmem:[#allocation2 + $0x110] sm:$0xff] %v7025_v0  ;;  %5598 = vmatpush3.bf16.msra.mxu0 %v6781_v10  ;;  %6713 = vmatpush3.bf16.msra.mxu1 %v6781_v10  ;;  %v6795_v58 = vld [vmem:[%s8870_s1 + $0x90] sm:$0xff]   ;;  %v6796_v59 = vld [vmem:[%s8870_s1 + $0xd8] sm:$0xff]  }
  0x47   : > { %328 = vst [vmem:[#allocation2 + $0x118] sm:$0x3] %v7025_v0  ;;  %329 = vst [vmem:[#allocation2 + $0x120] sm:$0xff] %v7025_v0  ;;  %5599 = vmatprep.subr.bf16.mxu0 %v6782_v11  ;;  %6706 = vmatprep.subr.bf16.mxu1 %v6782_v11  ;;  %v351_v60 = vld [vmem:[%s7293_s23 + $0x20] sm:$0xff]  ;;  %v352_v61 = vld [vmem:[%s7293_s23 + $0x28] sm:$0xff] }
  0x48   : > { %330 = vst [vmem:[#allocation2 + $0x128] sm:$0xff] %v7025_v0  ;;  %331 = vst [vmem:[#allocation2 + $0x130] sm:$0x3] %v7025_v0  ;;  %v375_v62 = vld [vmem:[%s7293_s23 + $0xe0] sm:$0xff]  ;;  %v6798_v63 = vld [vmem:[%s8870_s1 + $0x98] sm:$0xff]  }
  0x49   : > { %332 = vst [vmem:[#allocation2 + $0x138] sm:$0xff] %v7025_v0  ;;  %333 = vst [vmem:[#allocation2 + $0x140] sm:$0xff] %v7025_v0  ;;  %v6800_v3 = vld [vmem:[%s8870_s1 + $0xe0] sm:$0xff]   ;;  %v6805_v13 = vld [vmem:[%s8870_s1 + $0x150] sm:$0xff]  }
  0x4a   : > { %334 = vst [vmem:[#allocation2 + $0x148] sm:$0x3] %v7025_v0  ;;  %335 = vst [vmem:[#allocation2 + $0x150] sm:$0xff] %v7025_v0  ;;  %5600 = vmatpush3.bf16.msra.mxu0 %v6783_v17  ;;  %6714 = vmatpush3.bf16.msra.mxu1 %v6783_v17  ;;  %v6801_v12 = vld [vmem:[%s8870_s1 + $0xa0] sm:$0xff]   ;;  %v6807_v17 = vld [vmem:[%s8870_s1 + $0x110] sm:$0xff]  }
  0x4b   : > { %336 = vst [vmem:[#allocation2 + $0x158] sm:$0xff] %v7025_v0  ;;  %337 = vst [vmem:[#allocation2 + $0x160] sm:$0x3] %v7025_v0  ;;  %5601 = vmatprep.subr.bf16.mxu0 %v6784_v18  ;;  %6707 = vmatprep.subr.bf16.mxu1 %v6784_v18 }
  0x4c   : > { %338 = vst [vmem:[#allocation2 + $0x168] sm:$0xff] %v7025_v0  ;;  %339 = vst [vmem:[#allocation2 + $0x170] sm:$0xff] %v7025_v0 }
  0x4d   : > { %340 = vst [vmem:[#allocation2 + $0x178] sm:$0x3] %v7025_v0  ;;  %341 = vst [vmem:[#allocation2 + $0x180] sm:$0xff] %v7025_v0 }
  0x4e   : > { %342 = vst [vmem:[#allocation2 + $0x188] sm:$0xff] %v7025_v0  ;;  %343 = vst [vmem:[#allocation2 + $0x190] sm:$0x3] %v7025_v0  ;;  %5602 = vmatpush3.bf16.msra.mxu0 %v6785_v19  ;;  %6715 = vmatpush3.bf16.msra.mxu1 %v6785_v19 }
  0x4f   : > { %344 = vst [vmem:[#allocation2 + $0x198] sm:$0xff] %v7025_v0  ;;  %345 = vst [vmem:[#allocation2 + $0x1a0] sm:$0xff] %v7025_v0  ;;  %5603 = vmatprep.subr.bf16.mxu0 %v6786_v22  ;;  %6708 = vmatprep.subr.bf16.mxu1 %v6786_v22 }
  0x50   : > { %346 = vst [vmem:[#allocation2 + $0x1a8] sm:$0x3] %v7025_v0  ;;  %2621 = vst [vmem:[#allocation3] sm:$0xff] %v7025_v0 }
  0x51   : > { %2622 = vst [vmem:[#allocation3 + $0x8] sm:$0xff] %v7025_v0  ;;  %2623 = vst [vmem:[#allocation3 + $0x10] sm:$0x3] %v7025_v0 }
  0x52   : > { %2624 = vst [vmem:[#allocation3 + $0x18] sm:$0xff] %v7025_v0  ;;  %2625 = vst [vmem:[#allocation3 + $0x20] sm:$0xff] %v7025_v0  ;;  %5604 = vmatpush3.bf16.msra.mxu0 %v6787_v25  ;;  %6716 = vmatpush3.bf16.msra.mxu1 %v6787_v25 }
  0x53   : > { %2626 = vst [vmem:[#allocation3 + $0x28] sm:$0x3] %v7025_v0  ;;  %2627 = vst [vmem:[#allocation3 + $0x30] sm:$0xff] %v7025_v0  ;;  %5701 = vmatprep.subr.bf16.mxu1 %v6788_v30  ;;  %5813 = vmatprep.subr.bf16.mxu0 %v6789_v32  ;;  %v353_v30 = vld [vmem:[%s7293_s23 + $0x30] sm:$0xff]  ;;  %v354_v32 = vld [vmem:[%s7293_s23 + $0x38] sm:$0xff] }
  0x54   : > { %2628 = vst [vmem:[#allocation3 + $0x38] sm:$0xff] %v7025_v0  ;;  %2629 = vst [vmem:[#allocation3 + $0x40] sm:$0x3] %v7025_v0 }
  0x55   : > { %2630 = vst [vmem:[#allocation3 + $0x48] sm:$0xff] %v7025_v0  ;;  %2631 = vst [vmem:[#allocation3 + $0x50] sm:$0xff] %v7025_v0  ;;  %1743 = vmatmul.mubr.bf16.vlgmr.msra.gmra.mrb[0].mxu0 %v7026_v48 }
  0x56   : > { %2632 = vst [vmem:[#allocation3 + $0x58] sm:$0x3] %v7025_v0  ;;  %2633 = vst [vmem:[#allocation3 + $0x60] sm:$0xff] %v7025_v0  ;;  %5814 = vmatpush3.bf16.msra.mxu0 %v6791_v35 }
  0x57   : > { %2634 = vst [vmem:[#allocation3 + $0x68] sm:$0xff] %v7025_v0  ;;  %2635 = vst [vmem:[#allocation3 + $0x70] sm:$0x3] %v7025_v0  ;;  %5815 = vmatprep.subr.bf16.mxu0 %v6797_v41  ;;  %v356_v41 = vld [vmem:[%s7293_s23 + $0x48] sm:$0xff] }
  0x58   : > { %2636 = vst [vmem:[#allocation3 + $0x78] sm:$0xff] %v7025_v0  ;;  %2637 = vst [vmem:[#allocation3 + $0x80] sm:$0xff] %v7025_v0 }
  0x59   : > { %2638 = vst [vmem:[#allocation3 + $0x88] sm:$0x3] %v7025_v0  ;;  %2639 = vst [vmem:[#allocation3 + $0x90] sm:$0xff] %v7025_v0 }
  0x5a   : > { %2640 = vst [vmem:[#allocation3 + $0x98] sm:$0xff] %v7025_v0  ;;  %2641 = vst [vmem:[#allocation3 + $0xa0] sm:$0x3] %v7025_v0  ;;  %5816 = vmatpush3.bf16.msra.mxu0 %v6799_v50 }
  0x5b   : > { %2642 = vst [vmem:[#allocation3 + $0xa8] sm:$0xff] %v7025_v0  ;;  %2643 = vst [vmem:[#allocation3 + $0xb0] sm:$0xff] %v7025_v0  ;;  %5817 = vmatprep.subr.bf16.mxu0 %v6805_v13 }
  0x5c   : > { %2644 = vst [vmem:[#allocation3 + $0xb8] sm:$0x3] %v7025_v0  ;;  %2645 = vst [vmem:[#allocation3 + $0xc0] sm:$0xff] %v7025_v0 }
  0x5d   : > { %2646 = vst [vmem:[#allocation3 + $0xc8] sm:$0xff] %v7025_v0  ;;  %2647 = vst [vmem:[#allocation3 + $0xd0] sm:$0x3] %v7025_v0 }
  0x5e   : > { %2648 = vst [vmem:[#allocation3 + $0xd8] sm:$0xff] %v7025_v0  ;;  %2649 = vst [vmem:[#allocation3 + $0xe0] sm:$0xff] %v7025_v0  ;;  %5818 = vmatpush3.bf16.msra.mxu0 %v6807_v17 }
  0x5f   : > { %2650 = vst [vmem:[#allocation3 + $0xe8] sm:$0x3] %v7025_v0  ;;  %2651 = vst [vmem:[#allocation3 + $0xf0] sm:$0xff] %v7025_v0 }
  0x60   : > { %2652 = vst [vmem:[#allocation3 + $0xf8] sm:$0xff] %v7025_v0  ;;  %2653 = vst [vmem:[#allocation3 + $0x100] sm:$0x3] %v7025_v0 }
  0x61   : > { %2654 = vst [vmem:[#allocation3 + $0x108] sm:$0xff] %v7025_v0  ;;  %2655 = vst [vmem:[#allocation3 + $0x110] sm:$0xff] %v7025_v0 }
  0x62   : > { %2656 = vst [vmem:[#allocation3 + $0x118] sm:$0x3] %v7025_v0  ;;  %2657 = vst [vmem:[#allocation3 + $0x120] sm:$0xff] %v7025_v0 }
  0x63   : > { %2658 = vst [vmem:[#allocation3 + $0x128] sm:$0xff] %v7025_v0  ;;  %2659 = vst [vmem:[#allocation3 + $0x130] sm:$0x3] %v7025_v0 }
  0x64   : > { %2660 = vst [vmem:[#allocation3 + $0x138] sm:$0xff] %v7025_v0  ;;  %2661 = vst [vmem:[#allocation3 + $0x140] sm:$0xff] %v7025_v0 }
  0x65   : > { %2662 = vst [vmem:[#allocation3 + $0x148] sm:$0x3] %v7025_v0  ;;  %2663 = vst [vmem:[#allocation3 + $0x150] sm:$0xff] %v7025_v0 }
  0x66   : > { %2664 = vst [vmem:[#allocation3 + $0x158] sm:$0xff] %v7025_v0  ;;  %2665 = vst [vmem:[#allocation3 + $0x160] sm:$0x3] %v7025_v0 }
  0x67   : > { %2666 = vst [vmem:[#allocation3 + $0x168] sm:$0xff] %v7025_v0  ;;  %2667 = vst [vmem:[#allocation3 + $0x170] sm:$0xff] %v7025_v0 }
  0x68   : > { %2668 = vst [vmem:[#allocation3 + $0x178] sm:$0x3] %v7025_v0  ;;  %2669 = vst [vmem:[#allocation3 + $0x180] sm:$0xff] %v7025_v0 }
  0x69   : > { %2670 = vst [vmem:[#allocation3 + $0x188] sm:$0xff] %v7025_v0  ;;  %2671 = vst [vmem:[#allocation3 + $0x190] sm:$0x3] %v7025_v0 }
  0x6a   : > { %2672 = vst [vmem:[#allocation3 + $0x198] sm:$0xff] %v7025_v0  ;;  %2673 = vst [vmem:[#allocation3 + $0x1a0] sm:$0xff] %v7025_v0 }
  0x6b   : > { %2674 = vst [vmem:[#allocation3 + $0x1a8] sm:$0x3] %v7025_v0  ;;  %403 = vst.msk [vmem:[#allocation2 + $0x121] sm:$0xff] %vm380_vm0, %v369_v14  ;;  %v376_v0 = vld [vmem:[%s7293_s23 + $0xe8] sm:$0xff] }
  0x6c   : > { %404 = vst.msk [vmem:[#allocation2 + $0x129] sm:$0xff] %vm380_vm0, %v370_v16  ;;  %381 = vst.msk [vmem:[#allocation2 + $0x19] sm:$0xff] %vm380_vm0, %v347_v20  ;;  %v6802_v16 = vld [vmem:[%s8870_s1 + $0xe8] sm:$0xff]  }
  0x6d   : > { %382 = vst.msk [vmem:[#allocation2 + $0x21] sm:$0xff] %vm380_vm0, %v348_v21  ;;  %405 = vst.msk [vmem:[#allocation2 + $0x139] sm:$0xff] %vm380_vm0, %v371_v24  ;;  %v6803_v21 = vld [vmem:[%s8870_s1 + $0xa8] sm:$0xff]  }
  0x6e   : > { %406 = vst.msk [vmem:[#allocation2 + $0x141] sm:$0xff] %vm380_vm0, %v372_v27  ;;  %383 = vst.msk [vmem:[#allocation2 + $0x31] sm:$0xff] %vm380_vm0, %v349_v51 }
  0x6f   : > { %384 = vst.msk [vmem:[#allocation2 + $0x39] sm:$0xff] %vm380_vm0, %v350_v52  ;;  %407 = vst.msk [vmem:[#allocation2 + $0x151] sm:$0xff] %vm380_vm0, %v373_v53  ;;  %v6813_v52 = vld [vmem:[%s8870_s1 + $0x120] sm:$0xff]  }
  0x70   : > { %408 = vst.msk [vmem:[#allocation2 + $0x159] sm:$0xff] %vm380_vm0, %v374_v54  ;;  %385 = vst.msk [vmem:[#allocation2 + $0x49] sm:$0xff] %vm380_vm0, %v351_v60 }
  0x71   : > { %386 = vst.msk [vmem:[#allocation2 + $0x51] sm:$0xff] %vm380_vm0, %v352_v61  ;;  %409 = vst.msk [vmem:[#allocation2 + $0x169] sm:$0xff] %vm380_vm0, %v375_v62 }
  0x72   : > { %v501_v23 = vld [vmem:[#allocation2 + $0x121] sm:$0xff]  ;;  %410 = vst.msk [vmem:[#allocation2 + $0x171] sm:$0xff] %vm380_vm0, %v376_v0  ;;  %387 = vst.msk [vmem:[#allocation2 + $0x61] sm:$0xff] %vm380_vm0, %v353_v30 }
  0x73   : > { %v502_v26 = vld [vmem:[#allocation2 + $0x129] sm:$0xff]  ;;  %v437_v29 = vld [vmem:[#allocation2 + $0x120] sm:$0xff]  ;;  %v415_v44 = vld [vmem:[#allocation2 + $0x18] sm:$0xff]  ;;  %388 = vst.msk [vmem:[#allocation2 + $0x69] sm:$0xff] %vm380_vm0, %v354_v32 }
  0x74   : > { %v521_v28 = vpack.c.bf16 %v502_v26, %v501_v23  ;;  %v438_v31 = vld [vmem:[#allocation2 + $0x128] sm:$0xff]  ;;  %v479_v36 = vld [vmem:[#allocation2 + $0x19] sm:$0xff]  ;;  %390 = vst.msk [vmem:[#allocation2 + $0x81] sm:$0xff] %vm380_vm0, %v356_v41 }
  0x75   : > { %v7334_v33 = vpack.c.bf16 %v438_v31, %v437_v29  ;;  %v480_v37 = vld [vmem:[#allocation2 + $0x21] sm:$0xff]  ;;  %v503_v40 = vld [vmem:[#allocation2 + $0x139] sm:$0xff]  ;;  %v481_v1 = vld [vmem:[#allocation2 + $0x31] sm:$0xff] }
  0x76   : > { %1838 = vmatprep.mubr.bf16.mxu1 %v521_v28  ;;  %v7345_v39 = vpack.c.bf16 %v480_v37, %v479_v36  ;;  %v504_v43 = vld [vmem:[#allocation2 + $0x141] sm:$0xff]  ;;  %v439_v46 = vld [vmem:[#allocation2 + $0x138] sm:$0xff]  ;;  %v417_v2 = vld [vmem:[#allocation2 + $0x30] sm:$0xff] }
  0x77   : > { %v416_v45 = vld [vmem:[#allocation2 + $0x20] sm:$0xff]  ;;  %1839 = vmatmul.mubr.bf16.vlgmr.msra.gmra.mrb[0].mxu1 %v7334_v33  ;;  %v522_v49 = vpack.c.bf16 %v504_v43, %v503_v40  ;;  %v505_v5 = vld [vmem:[#allocation2 + $0x151] sm:$0xff]  ;;  %v483_v18 = vld [vmem:[#allocation2 + $0x49] sm:$0xff] }
  0x78   : > { %v440_v47 = vld [vmem:[#allocation2 + $0x140] sm:$0xff]  ;;  %5702 = vmatpush3.bf16.msra.mxu1 %v6790_v34  ;;  %1750 = vmatprep.mubr.bf16.mxu0 %v7345_v39  ;;  %v7369_v56 = vpack.c.bf16 %v416_v45, %v415_v44  ;;  %v418_v9 = vld [vmem:[#allocation2 + $0x38] sm:$0xff]  ;;  %v441_v10 = vld [vmem:[#allocation2 + $0x150] sm:$0xff] }
  0x79   : > { %5703 = vmatprep.subr.bf16.mxu1 %v6792_v38  ;;  %1846 = vmatprep.mubr.bf16.mxu1 %v522_v49  ;;  %v7371_v57 = vpack.c.bf16 %v440_v47, %v439_v46  ;;  %v482_v4 = vld [vmem:[#allocation2 + $0x39] sm:$0xff]  ;;  %v7404_v14 = vpack.c.bf16 %v418_v9, %v417_v2  ;;  %v484_v19 = vld [vmem:[#allocation2 + $0x51] sm:$0xff]  ;;  %v507_v20 = vld [vmem:[#allocation2 + $0x169] sm:$0xff] }
  0x7a   : > { %1751 = vmatmul.mubr.bf16.gmra.mrb[4].mxu0 %v7369_v56  ;;  %v506_v6 = vld [vmem:[#allocation2 + $0x159] sm:$0xff]  ;;  %v7395_v7 = vpack.c.bf16 %v482_v4, %v481_v1  ;;  %v7417_v22 = vpack.c.bf16 %v484_v19, %v483_v18  ;;  %v508_v23 = vld [vmem:[#allocation2 + $0x171] sm:$0xff]  ;;  %v419_v24 = vld [vmem:[#allocation2 + $0x48] sm:$0xff] }
  0x7b   : > { %v523_v8 = vpack.c.bf16 %v506_v6, %v505_v5  ;;  %v442_v11 = vld [vmem:[#allocation2 + $0x158] sm:$0xff]  ;;  %v524_v25 = vpack.c.bf16 %v508_v23, %v507_v20  ;;  %v420_v26 = vld [vmem:[#allocation2 + $0x50] sm:$0xff]  ;;  %v443_v27 = vld [vmem:[#allocation2 + $0x168] sm:$0xff] }
  0x7c   : > { %5704 = vmatpush3.bf16.msra.mxu1 %v6793_v42  ;;  %1758 = vmatprep.mubr.bf16.mxu0 %v7395_v7  ;;  %v7406_v15 = vpack.c.bf16 %v442_v11, %v441_v10  ;;  %v444_v28 = vld [vmem:[#allocation2 + $0x170] sm:$0xff]  ;;  %v7431_v34 = vpack.c.bf16 %v420_v26, %v419_v24  ;;  %v6810_v36 = vld [vmem:[%s8870_s1 + $0x158] sm:$0xff]   ;;  %v355_v40 = vld [vmem:[%s7293_s23 + $0x40] sm:$0xff] }
  0x7d   : > { %5705 = vmatprep.subr.bf16.mxu1 %v6794_v55  ;;  %v6804_v29 = vld [vmem:[%s8870_s1 + $0xf0] sm:$0xff]   ;;  %v7433_v35 = vpack.c.bf16 %v444_v28, %v443_v27  ;;  %v6811_v37 = vld [vmem:[%s8870_s1 + $0x118] sm:$0xff]   ;;  %5819 = vmatprep.subr.bf16.mxu0 %v6810_v36  ;;  %389 = vst.msk [vmem:[#allocation2 + $0x79] sm:$0xff] %vm380_vm0, %v355_v40  ;;  %v541_v45 = vld [vmem:[#allocation2 + $0x2] sm:$0xff] }
  0x7e   : > { %v6806_v31 = vld [vmem:[%s8870_s1 + $0xb0] sm:$0xff]   ;;  %v6808_v38 = vld [vmem:[%s8870_s1 + $0xf8] sm:$0xff]   ;;  %5820 = vmatpush3.bf16.msra.mxu0 %v6811_v37  ;;  %v6812_v47 = vld [vmem:[%s8870_s1 + $0x160] sm:$0xff]  }
  0x7f   : > { %1847 = vmatmul.mubr.bf16.gmra.mrb[4].mxu1 %v7371_v57  ;;  %v6809_v42 = vld [vmem:[%s8870_s1 + $0xb8] sm:$0xff]   ;;  %v357_v43 = vld [vmem:[%s7293_s23 + $0x50] sm:$0xff]  ;;  %v485_v48 = vld [vmem:[#allocation2 + $0x61] sm:$0xff]  ;;  %5821 = vmatprep.subr.bf16.mxu0 %v6812_v47 }
  0x80   : > { %5706 = vmatpush3.bf16.msra.mxu1 %v6795_v58  ;;  %1854 = vmatprep.mubr.bf16.mxu1 %v523_v8  ;;  %v358_v44 = vld [vmem:[%s7293_s23 + $0x58] sm:$0xff]  ;;  %v542_v46 = vld [vmem:[#allocation2 + $0xa] sm:$0xff]  ;;  %391 = vst.msk [vmem:[#allocation2 + $0x91] sm:$0xff] %vm380_vm0, %v357_v43  ;;  %v421_v49 = vld [vmem:[#allocation2 + $0x60] sm:$0xff] }
  0x81   : > { %5707 = vmatprep.subr.bf16.mxu1 %v6796_v59  ;;  %392 = vst.msk [vmem:[#allocation2 + $0x99] sm:$0xff] %vm380_vm0, %v358_v44  ;;  %v486_v50 = vld [vmem:[#allocation2 + $0x69] sm:$0xff]  ;;  %v573_v55 = vpack.c.bf16 %v542_v46, %v541_v45  ;;  %v488_v60 = vld [vmem:[#allocation2 + $0x81] sm:$0xff]  ;;  %v362_v8 = vld [vmem:[%s7293_s23 + $0x78] sm:$0xff] }
  0x82   : > { %1759 = vmatmul.mubr.bf16.gmra.mrb[8].mxu0 %v7404_v14  ;;  %v422_v51 = vld [vmem:[#allocation2 + $0x68] sm:$0xff]  ;;  %v7465_v53 = vpack.c.bf16 %v486_v50, %v485_v48  ;;  %v361_v6 = vld [vmem:[%s7293_s23 + $0x70] sm:$0xff]  ;;  %396 = vst.msk [vmem:[#allocation2 + $0xc9] sm:$0xff] %vm380_vm0, %v362_v8  ;;  %v363_v9 = vld [vmem:[%s7293_s23 + $0x80] sm:$0xff] }
  0x83   : > { %1766 = vmatprep.mubr.bf16.mxu0 %v7417_v22  ;;  %v7467_v54 = vpack.c.bf16 %v422_v51, %v421_v49  ;;  %v360_v58 = vld [vmem:[%s7293_s23 + $0x68] sm:$0xff]  ;;  %5822 = vmatpush3.bf16.msra.mxu0 %v6813_v52  ;;  %395 = vst.msk [vmem:[#allocation2 + $0xc1] sm:$0xff] %vm380_vm0, %v361_v6  ;;  %397 = vst.msk [vmem:[#allocation2 + $0xd9] sm:$0xff] %vm380_vm0, %v363_v9  ;;  %v545_v17 = vld [vmem:[#allocation2 + $0x32] sm:$0xff] }
  0x84   : > { %5708 = vmatpush3.bf16.msra.mxu1 %v6798_v63  ;;  %394 = vst.msk [vmem:[#allocation2 + $0xb1] sm:$0xff] %vm380_vm0, %v360_v58  ;;  %v487_v59 = vld [vmem:[#allocation2 + $0x79] sm:$0xff]  ;;  %v544_v0 = vld [vmem:[#allocation2 + $0x22] sm:$0xff]  ;;  %v6817_v19 = vld [vmem:[%s8870_s1 + $0x130] sm:$0xff]  }
  0x85   : > { %5709 = vmatprep.subr.bf16.mxu1 %v6800_v3  ;;  %v7474_v61 = vpack.c.bf16 %v488_v60, %v487_v59  ;;  %v423_v62 = vld [vmem:[#allocation2 + $0x78] sm:$0xff]  ;;  %v424_v1 = vld [vmem:[#allocation2 + $0x80] sm:$0xff]  ;;  %v6814_v3 = vld [vmem:[%s8870_s1 + $0x168] sm:$0xff]  }
  0x86   : > { %v543_v63 = vld [vmem:[#allocation2 + $0x1a] sm:$0xff]  ;;  %v6815_v4 = vld [vmem:[%s8870_s1 + $0x128] sm:$0xff]   ;;  %5823 = vmatprep.subr.bf16.mxu0 %v6814_v3  ;;  %v7491_v11 = vpack.c.bf16 %v424_v1, %v423_v62  ;;  %v548_v41 = vld [vmem:[#allocation2 + $0x52] sm:$0xff] }
  0x87   : > { %1855 = vmatmul.mubr.bf16.gmra.mrb[8].mxu1 %v7406_v15  ;;  %v489_v2 = vld [vmem:[#allocation2 + $0x91] sm:$0xff]  ;;  %5824 = vmatpush3.bf16.msra.mxu0 %v6815_v4  ;;  %v364_v10 = vld [vmem:[%s7293_s23 + $0x88] sm:$0xff]  ;;  %v546_v18 = vld [vmem:[#allocation2 + $0x3a] sm:$0xff] }
  0x88   : > { %5710 = vmatpush3.bf16.msra.mxu1 %v6801_v12  ;;  %1862 = vmatprep.mubr.bf16.mxu1 %v524_v25  ;;  %v490_v5 = vld [vmem:[#allocation2 + $0x99] sm:$0xff]  ;;  %v7493_v12 = vpack.c.bf16 %v544_v0, %v543_v63  ;;  %398 = vst.msk [vmem:[#allocation2 + $0xe1] sm:$0xff] %vm380_vm0, %v364_v10  ;;  %v425_v20 = vld [vmem:[#allocation2 + $0x90] sm:$0xff]  ;;  %v7515_v28 = vpack.c.bf16 %v546_v18, %v545_v17  ;;  %v368_v36 = vld [vmem:[%s7293_s23 + $0xa8] sm:$0xff] }
  0x89   : > { %5711 = vmatprep.subr.bf16.mxu1 %v6802_v16  ;;  %v7497_v13 = vpack.c.bf16 %v490_v5, %v489_v2  ;;  %v6816_v16 = vld [vmem:[%s8870_s1 + $0x170] sm:$0xff]   ;;  %v366_v23 = vld [vmem:[%s7293_s23 + $0x98] sm:$0xff]  ;;  %v367_v32 = vld [vmem:[%s7293_s23 + $0xa0] sm:$0xff]  ;;  %402 = vst.msk [vmem:[#allocation2 + $0x111] sm:$0xff] %vm380_vm0, %v368_v36 }
  0x8a   : > { %1767 = vmatmul.mubr.bf16.gmra.mrb[12].mxu0 %v7431_v34  ;;  %v426_v24 = vld [vmem:[#allocation2 + $0x98] sm:$0xff]  ;;  %400 = vst.msk [vmem:[#allocation2 + $0xf9] sm:$0xff] %vm380_vm0, %v366_v23  ;;  %5825 = vmatprep.subr.bf16.mxu0 %v6816_v16  ;;  %v547_v37 = vld [vmem:[#allocation2 + $0x4a] sm:$0xff]  ;;  %401 = vst.msk [vmem:[#allocation2 + $0x109] sm:$0xff] %vm380_vm0, %v367_v32 }
  0x8b   : > { %1774 = vmatprep.mubr.bf16.mxu0 %v7465_v53  ;;  %v492_v26 = vld [vmem:[#allocation2 + $0xb1] sm:$0xff]  ;;  %5826 = vmatpush3.bf16.msra.mxu0 %v6817_v19  ;;  %v7513_v27 = vpack.c.bf16 %v426_v24, %v425_v20  ;;  %v6820_v43 = vld [vmem:[%s8870_s1 + $0x1c0] sm:$0xff]   ;;  %v494_v44 = vld [vmem:[#allocation2 + $0xc9] sm:$0xff]  ;;  %v7541_v47 = vpack.c.bf16 %v548_v41, %v547_v37 }
  0x8c   : > { %5712 = vmatpush3.bf16.msra.mxu1 %v6803_v21  ;;  %v365_v21 = vld [vmem:[%s7293_s23 + $0x90] sm:$0xff]  ;;  %v6821_v45 = vld [vmem:[%s8870_s1 + $0x180] sm:$0xff]   ;;  %v6823_v50 = vld [vmem:[%s8870_s1 + $0x1c8] sm:$0xff]  }
  0x8d   : > { %5713 = vmatprep.subr.bf16.mxu1 %v6804_v29  ;;  %399 = vst.msk [vmem:[#allocation2 + $0xf1] sm:$0xff] %vm380_vm0, %v365_v21  ;;  %v6818_v29 = vld [vmem:[%s8870_s1 + $0x178] sm:$0xff]   ;;  %v7546_v48 = vld [vmem:[%s8870_s1 + $0x200] sm:$0xff]   ;;  %v430_v58 = vld [vmem:[#allocation2 + $0xc8] sm:$0xff] }
  0x8e   : > { %5827 = vmatprep.subr.bf16.mxu0 %v6818_v29  ;;  %v549_v51 = vld [vmem:[#allocation2 + $0x62] sm:$0xff]  ;;  %v495_v59 = vld [vmem:[#allocation2 + $0xd9] sm:$0xff]  ;;  %v6826_v62 = vld [vmem:[%s8870_s1 + $0x1d0] sm:$0xff]  }
  0x8f   : > { %1863 = vmatmul.mubr.bf16.gmra.mrb[12].mxu1 %v7433_v35  ;;  %v429_v52 = vld [vmem:[#allocation2 + $0xc0] sm:$0xff]  ;;  %v6827_v1 = vld [vmem:[%s8870_s1 + $0x190] sm:$0xff]   ;;  %v431_v3 = vld [vmem:[#allocation2 + $0xd8] sm:$0xff] }
  0x90   : > { %5714 = vmatpush3.bf16.msra.mxu1 %v6806_v31  ;;  %1903 = vmatprep.mubr.bf16.mxu1 %v7369_v56  ;;  %v359_v56 = vld [vmem:[%s7293_s23 + $0x60] sm:$0xff]  ;;  %v6819_v31 = vld [vmem:[%s8870_s1 + $0x138] sm:$0xff]   ;;  %v7564_v63 = vpack.c.bf16 %v430_v58, %v429_v52  ;;  %v6834_v23 = vld [vmem:[%s8870_s1 + $0x1e8] sm:$0xff]  }
  0x91   : > { %5715 = vmatprep.subr.bf16.mxu1 %v6808_v38  ;;  %393 = vst.msk [vmem:[#allocation2 + $0xa9] sm:$0xff] %vm380_vm0, %v359_v56  ;;  %5828 = vmatpush3.bf16.msra.mxu0 %v6819_v31  ;;  %v6824_v56 = vld [vmem:[%s8870_s1 + $0x188] sm:$0xff]   ;;  %v432_v4 = vld [vmem:[#allocation2 + $0xe0] sm:$0xff]  ;;  %v6829_v8 = vld [vmem:[%s8870_s1 + $0x1d8] sm:$0xff]  }
  0x92   : > { %1775 = vmatmul.mubr.bf16.gmra.mrb[16].mxu0 %v7467_v54  ;;  %6557 = vmatprep.subr.bf16.mxu0 %v7546_v48  ;;  %v496_v60 = vld [vmem:[#allocation2 + $0xe1] sm:$0xff]  ;;  %v6830_v9 = vld [vmem:[%s8870_s1 + $0x198] sm:$0xff]   ;;  %v7586_v18 = vpack.c.bf16 %v432_v4, %v431_v3  ;;  %v377_v24 = vld [vmem:[%s7293_s23 + $0xf0] sm:$0xff] }
  0x93   : > { %1782 = vmatprep.mubr.bf16.mxu0 %v7474_v61  ;;  %v7571_v2 = vpack.c.bf16 %v496_v60, %v495_v59  ;;  %v551_v5 = vld [vmem:[#allocation2 + $0x7a] sm:$0xff]  ;;  %v552_v6 = vld [vmem:[#allocation2 + $0x82] sm:$0xff]  ;;  %v553_v29 = vld [vmem:[#allocation2 + $0x92] sm:$0xff]  ;;  %411 = vst.msk [vmem:[#allocation2 + $0x181] sm:$0xff] %vm380_vm0, %v377_v24 }
  0x94   : > { %5716 = vmatpush3.bf16.msra.mxu1 %v6809_v42  ;;  %v493_v42 = vld [vmem:[#allocation2 + $0xc1] sm:$0xff]  ;;  %v497_v10 = vld [vmem:[#allocation2 + $0xf1] sm:$0xff]  ;;  %v498_v16 = vld [vmem:[#allocation2 + $0xf9] sm:$0xff]  ;;  %v7588_v19 = vpack.c.bf16 %v552_v6, %v551_v5 }
  0x95   : > { %5925 = vmatprep.subr.bf16.mxu1 %v6820_v43  ;;  %v7548_v49 = vpack.c.bf16 %v494_v44, %v493_v42  ;;  %v6831_v17 = vld [vmem:[%s8870_s1 + $0x1e0] sm:$0xff]   ;;  %v7593_v21 = vpack.c.bf16 %v498_v16, %v497_v10  ;;  %v6835_v32 = vld [vmem:[%s8870_s1 + $0x1a8] sm:$0xff]   ;;  %v378_v36 = vld [vmem:[%s7293_s23 + $0xf8] sm:$0xff]  ;;  %s6954_s23 = scalar_lea.vmem %s8821_s21, 4096 }
  0x96   : > { %v6833_v20 = vld [vmem:[%s8870_s1 + $0x1a0] sm:$0xff]   ;;  %412 = vst.msk [vmem:[#allocation2 + $0x189] sm:$0xff] %vm380_vm0, %v378_v36  ;;  %v6836_v37 = vld [vmem:[%s8870_s1 + $0x1f0] sm:$0xff]   ;;  %v435_v52 = vld [vmem:[#allocation2 + $0x108] sm:$0xff]  ;;  %p6955_p6 = scmp.ne.s32.totalorder %s8821_s21, %s6954_s23  ;;  %p6962_p3 = scmp.lt.s32.totalorder %s6960_s17, %s6954_s23 }
  0x97   : > { %1904 = vmatmul.mubr.bf16.vlgmr.msra.gmra.mrb[16].mxu1 %v573_v55  ;;  %v550_v55 = vld [vmem:[#allocation2 + $0x6a] sm:$0xff]  ;;  %v554_v31 = vld [vmem:[#allocation2 + $0x9a] sm:$0xff]  ;;  %v557_v60 = vld [vmem:[#allocation2 + $0xc2] sm:$0xff] }
  0x98   : > { %1911 = vmatprep.mubr.bf16.mxu1 %v7404_v14  ;;  %v491_v25 = vld [vmem:[#allocation2 + $0xa9] sm:$0xff]  ;;  %5926 = vmatpush3.bf16.msra.mxu1 %v6821_v45  ;;  %v7566_v0 = vpack.c.bf16 %v550_v55, %v549_v51  ;;  %v7617_v43 = vpack.c.bf16 %v554_v31, %v553_v29  ;;  %v6838_v45 = vld [vmem:[%s8870_s1 + $0x1f8] sm:$0xff]   ;;  %p6956_p10 = pnand %p6955_p6, %p8887_p9  ;;  %p6963_p4 = por %p6962_p3, %p6961_p2 }
  0x99   : > { %v7520_v30 = vpack.c.bf16 %v492_v26, %v491_v25  ;;  %v427_v38 = vld [vmem:[#allocation2 + $0xa8] sm:$0xff]  ;;  %v428_v40 = vld [vmem:[#allocation2 + $0xb0] sm:$0xff]  ;;  %5927 = vmatprep.subr.bf16.mxu1 %v6823_v50  ;;  %v434_v26 = vld [vmem:[#allocation2 + $0xf8] sm:$0xff] }
  0x9a   : > { %1783 = vmatmul.mubr.bf16.gmra.mrb[20].mxu0 %v7491_v11  ;;  %v7539_v46 = vpack.c.bf16 %v428_v40, %v427_v38  ;;  %v433_v25 = vld [vmem:[#allocation2 + $0xf0] sm:$0xff]  ;;  %v6839_v50 = vld [vmem:[%s8870_s1 + $0x1b8] sm:$0xff]   ;;  %v6825_v3 = vld [vmem:[%s8870_s1 + $0x208] sm:$0xff]   ;;  %p6957_p12 = pneg %p6956_p10 }
  0x9b   : > { %1790 = vmatprep.mubr.bf16.mxu0 %v7497_v13  ;;  %v499_v38 = vld [vmem:[#allocation2 + $0x109] sm:$0xff]  ;;  %v500_v40 = vld [vmem:[#allocation2 + $0x111] sm:$0xff]  ;;  %v7615_v42 = vpack.c.bf16 %v434_v26, %v433_v25  ;;  %v559_v4 = vld [vmem:[#allocation2 + $0xda] sm:$0xff] }
  0x9c   : > { %5928 = vmatpush3.bf16.msra.mxu1 %v6824_v56  ;;  %v6837_v41 = vld [vmem:[%s8870_s1 + $0x1b0] sm:$0xff]   ;;  %v7619_v44 = vpack.c.bf16 %v500_v40, %v499_v38  ;;  %v560_v5 = vld [vmem:[#allocation2 + $0xe2] sm:$0xff]  ;;  %v6843_v24 = vld [vmem:[%s8870_s1 + $0x238] sm:$0xff]   ;;  %p6964_p7 = pnand %p6963_p4, %p6957_p12 }
  0x9d   : > { %5929 = vmatprep.subr.bf16.mxu1 %v6826_v62  ;;  %v555_v51 = vld [vmem:[#allocation2 + $0xaa] sm:$0xff]  ;;  %v556_v56 = vld [vmem:[#allocation2 + $0xb2] sm:$0xff]  ;;  %v565_v25 = vld [vmem:[#allocation2 + $0x122] sm:$0xff] }
  0x9e   : > { %v436_v55 = vld [vmem:[#allocation2 + $0x110] sm:$0xff]  ;;  %v7633_v59 = vpack.c.bf16 %v556_v56, %v555_v51  ;;  %v6841_v10 = vld [vmem:[%s8870_s1 + $0x228] sm:$0xff]   ;;  %v567_v29 = vld [vmem:[#allocation2 + $0x13a] sm:$0xff] }
  0x9f   : > { %1912 = vmatmul.mubr.bf16.gmra.mrb[20].mxu1 %v7493_v12  ;;  %v7631_v58 = vpack.c.bf16 %v436_v55, %v435_v52  ;;  %v558_v62 = vld [vmem:[#allocation2 + $0xca] sm:$0xff]  ;;  %v568_v31 = vld [vmem:[#allocation2 + $0x142] sm:$0xff]  ;;  %v570_v36 = vld [vmem:[#allocation2 + $0x15a] sm:$0xff] }
  0xa0   : > { %1919 = vmatprep.mubr.bf16.mxu1 %v7431_v34  ;;  %5930 = vmatpush3.bf16.msra.mxu1 %v6827_v1  ;;  %v7639_v1 = vpack.c.bf16 %v558_v62, %v557_v60  ;;  %v6828_v6 = vld [vmem:[%s8870_s1 + $0x210] sm:$0xff]   ;;  %v636_v38 = vld [vmem:[#allocation2 + $0x188] sm:$0xff]  ;;  %v6844_v52 = vld [vmem:[#allocation5 + $0x40] sm:$0xff]  }
  0xa1   : > { %5931 = vmatprep.subr.bf16.mxu1 %v6829_v8  ;;  %v6832_v8 = vld [vmem:[%s8870_s1 + $0x218] sm:$0xff]   ;;  %v563_v16 = vld [vmem:[#allocation2 + $0x10a] sm:$0xff]  ;;  %v763_v55 = vld [vmem:[#allocation2 + $0x182] sm:$0xff] }
  0xa2   : > { %1791 = vmatmul.mubr.bf16.gmra.mrb[24].mxu0 %v7513_v27  ;;  %v566_v26 = vld [vmem:[#allocation2 + $0x12a] sm:$0xff]  ;;  %v926_v62 = vld [vmem:[#allocation2 + $0x32] sm:$0xff] }
  0xa3   : > { %1798 = vmatprep.mubr.bf16.mxu0 %v7520_v30  ;;  %v764_v56 = vld [vmem:[#allocation2 + $0x18a] sm:$0xff] }
  0xa4   : > { %5932 = vmatpush3.bf16.msra.mxu1 %v6830_v9  ;;  %v562_v9 = vld [vmem:[#allocation2 + $0xfa] sm:$0xff]  ;;  %v7743_v60 = vpack.c.bf16 %v764_v56, %v763_v55 }
  0xa5   : > { %5933 = vmatprep.subr.bf16.mxu1 %v6831_v17  ;;  %v564_v17 = vld [vmem:[#allocation2 + $0x112] sm:$0xff] }
  0xa7   : > { %1920 = vmatmul.mubr.bf16.gmra.mrb[24].mxu1 %v7515_v28 }
  0xa8   : > { %1927 = vmatprep.mubr.bf16.mxu1 %v7467_v54  ;;  %5934 = vmatpush3.bf16.msra.mxu1 %v6833_v20  ;;  %v6842_v20 = vld [vmem:[%s8870_s1 + $0x230] sm:$0xff]  }
  0xa9   : > { %5935 = vmatprep.subr.bf16.mxu1 %v6834_v23  ;;  %v7676_v23 = vpack.c.bf16 %v564_v17, %v563_v16 }
  0xaa   : > { %1799 = vmatmul.mubr.bf16.gmra.mrb[28].mxu0 %v7539_v46 }
  0xab   : > { %1806 = vmatprep.mubr.bf16.mxu0 %v7548_v49 }
  0xac   : > { %5936 = vmatpush3.bf16.msra.mxu1 %v6835_v32  ;;  %v7691_v32 = vpack.c.bf16 %v568_v31, %v567_v29 }
  0xad   : > { %5937 = vmatprep.subr.bf16.mxu1 %v6836_v37  ;;  %v635_v37 = vld [vmem:[#allocation2 + $0x180] sm:$0xff] }
  0xaf   : > { %1928 = vmatmul.mubr.bf16.gmra.mrb[28].mxu1 %v7541_v47 }
  0xb0   : > { %1935 = vmatprep.mubr.bf16.mxu1 %v7491_v11  ;;  %5938 = vmatpush3.bf16.msra.mxu1 %v6837_v41  ;;  %v7699_v41 = vpack.c.bf16 %v636_v38, %v635_v37 }
  0xb1   : > { %5939 = vmatprep.subr.bf16.mxu1 %v6838_v45  ;;  %v572_v45 = vld [vmem:[#allocation2 + $0x172] sm:$0xff] }
  0xb2   : > { %1807 = vmatmul.mubr.bf16.gmra.mrb[32].mxu0 %v7564_v63 }
  0xb3   : > { %1814 = vmatprep.mubr.bf16.mxu0 %v7571_v2 }
  0xb4   : > { %5940 = vmatpush3.bf16.msra.mxu1 %v6839_v50 }
  0xb5   : > { %6061 = vmatprep.subr.bf16.mxu1 %v6844_v52 }
  0xb7   : > { %1936 = vmatmul.mubr.bf16.gmra.mrb[32].mxu1 %v7566_v0 }
  0xb8   : > { %1943 = vmatprep.mubr.bf16.mxu1 %v7513_v27 }
  0xba   : > { %1815 = vmatmul.mubr.bf16.gmra.mrb[36].mxu0 %v7586_v18 }
  0xbb   : > { %1822 = vmatprep.mubr.bf16.mxu0 %v7593_v21 }
  0xbf   : > { %1944 = vmatmul.mubr.bf16.gmra.mrb[36].mxu1 %v7588_v19 }
  0xc0   : > { %1951 = vmatprep.mubr.bf16.mxu1 %v7539_v46 }
  0xc2   : > { %1823 = vmatmul.mubr.bf16.gmra.mrb[40].mxu0 %v7615_v42 }
  0xc3   : > { %1830 = vmatprep.mubr.bf16.mxu0 %v7619_v44 }
  0xc7   : > { %1952 = vmatmul.mubr.bf16.gmra.mrb[40].mxu1 %v7617_v43 }
  0xc8   : > { %1959 = vmatprep.mubr.bf16.mxu1 %v7564_v63 }
  0xca   : > { %1831 = vmatmul.mubr.bf16.gmra.mrb[44].mxu0 %v7631_v58 }
  0xcb   : > { %2064 = vmatprep.mubr.bf16.mxu0 %v7493_v12  ;;  %v7652_v12 = vpack.c.bf16 %v560_v5, %v559_v4 }
  0xcf   : > { %1960 = vmatmul.mubr.bf16.gmra.mrb[44].mxu1 %v7633_v59 }
  0xd0   : > { %1967 = vmatprep.mubr.bf16.mxu1 %v7586_v18 }
  0xd2   : > { %2065 = vmatmul.mubr.bf16.vlgmr.msra.gmra.mrb[48].mxu0 %v7345_v39  ;;  %v561_v39 = vld [vmem:[#allocation2 + $0xf2] sm:$0xff] }
  0xd3   : > { %6558 = vmatpush3.bf16.msra.mxu0 %v7546_v48  ;;  %2072 = vmatprep.mubr.bf16.mxu0 %v7515_v28  ;;  %v6840_v28 = vld [vmem:[%s8870_s1 + $0x220] sm:$0xff]   ;;  %v7664_v48 = vpack.c.bf16 %v562_v9, %v561_v39 }
  0xd4   : > { %6559 = vmatprep.subr.bf16.mxu0 %v6825_v3 }
  0xd7   : > { %1968 = vmatmul.mubr.bf16.gmra.mrb[48].mxu1 %v7639_v1  ;;  %6560 = vmatpush3.bf16.msra.mxu0 %v6825_v3  ;;  %v927_v3 = vld [vmem:[#allocation2 + $0x3a] sm:$0xff] }
  0xd8   : > { %1975 = vmatprep.mubr.bf16.mxu1 %v7615_v42  ;;  %6561 = vmatprep.subr.bf16.mxu0 %v6828_v6 }
  0xda   : > { %2073 = vmatmul.mubr.bf16.gmra.mrb[52].mxu0 %v7395_v7 }
  0xdb   : > { %2080 = vmatprep.mubr.bf16.mxu0 %v7541_v47  ;;  %6562 = vmatpush3.bf16.msra.mxu0 %v6828_v6 }
  0xdc   : > { %6563 = vmatprep.subr.bf16.mxu0 %v6832_v8 }
  0xdf   : > { %1976 = vmatmul.mubr.bf16.gmra.mrb[52].mxu1 %v7652_v12  ;;  %6564 = vmatpush3.bf16.msra.mxu0 %v6832_v8 }
  0xe0   : > { %1983 = vmatprep.mubr.bf16.mxu1 %v7631_v58  ;;  %6565 = vmatprep.subr.bf16.mxu0 %v6840_v28 }
  0xe2   : > { %2081 = vmatmul.mubr.bf16.gmra.mrb[56].mxu0 %v7417_v22 }
  0xe3   : > { %2088 = vmatprep.mubr.bf16.mxu0 %v7566_v0  ;;  %6566 = vmatpush3.bf16.msra.mxu0 %v6840_v28 }
  0xe4   : > { %6567 = vmatprep.subr.bf16.mxu0 %v6841_v10 }
  0xe7   : > { %1984 = vmatmul.mubr.bf16.gmra.mrb[56].mxu1 %v7664_v48  ;;  %6568 = vmatpush3.bf16.msra.mxu0 %v6841_v10  ;;  %v958_v10 = vpack.c.bf16 %v927_v3, %v926_v62 }
  0xe8   : > { %1991 = vmatprep.mubr.bf16.mxu1 %v7334_v33  ;;  %6569 = vmatprep.subr.bf16.mxu0 %v6842_v20  ;;  %v7685_v33 = vpack.c.bf16 %v566_v26, %v565_v25  ;;  %v6846_v25 = vld [vmem:[#allocation5 + $0x48] sm:$0xff]  }
  0xe9   : > { %v6847_v26 = vld [vmem:[#allocation5 + $0x8] sm:$0xff]  }
  0xea   : > { %2089 = vmatmul.mubr.bf16.gmra.mrb[60].mxu0 %v7465_v53 }
  0xeb   : > { %2096 = vmatprep.mubr.bf16.mxu0 %v7588_v19  ;;  %6570 = vmatpush3.bf16.msra.mxu0 %v6842_v20 }
  0xec   : > { %6571 = vmatprep.subr.bf16.mxu0 %v6843_v24 }
  0xef   : > { %1992 = vmatmul.mubr.bf16.gmra.mrb[60].mxu1 %v7676_v23  ;;  %6572 = vmatpush3.bf16.msra.mxu0 %v6843_v24 }
  0xf0   : > { %1999 = vmatprep.mubr.bf16.mxu1 %v7371_v57  ;;  %v569_v57 = vld [vmem:[#allocation2 + $0x152] sm:$0xff] }
  0xf1   : > { %v7697_v40 = vpack.c.bf16 %v570_v36, %v569_v57 }
  0xf2   : > { %2097 = vmatmul.mubr.bf16.gmra.mrb[64].mxu0 %v7474_v61 }
  0xf3   : > { %2104 = vmatprep.mubr.bf16.mxu0 %v7617_v43 }
  0xf7   : > { %2000 = vmatmul.mubr.bf16.gmra.mrb[64].mxu1 %v7685_v33 }
  0xf8   : > { %2007 = vmatprep.mubr.bf16.mxu1 %v7406_v15  ;;  %v571_v15 = vld [vmem:[#allocation2 + $0x16a] sm:$0xff] }
  0xf9   : > { %v7705_v50 = vpack.c.bf16 %v572_v45, %v571_v15 }
  0xfa   : > { %2105 = vmatmul.mubr.bf16.gmra.mrb[68].mxu0 %v7497_v13 }
  0xfb   : > { %2112 = vmatprep.mubr.bf16.mxu0 %v7633_v59 }
  0xff   : > { %2008 = vmatmul.mubr.bf16.gmra.mrb[68].mxu1 %v7691_v32 }
 0x100   : > { %2015 = vmatprep.mubr.bf16.mxu1 %v7433_v35 }
 0x102   : > { %2113 = vmatmul.mubr.bf16.gmra.mrb[72].mxu0 %v7520_v30 }
 0x103   : > { %2120 = vmatprep.mubr.bf16.mxu0 %v7639_v1 }
 0x107   : > { %2016 = vmatmul.mubr.bf16.gmra.mrb[72].mxu1 %v7697_v40 }
 0x108   : > { %2023 = vmatprep.mubr.bf16.mxu1 %v7699_v41 }
 0x10a   : > { %2121 = vmatmul.mubr.bf16.gmra.mrb[76].mxu0 %v7548_v49 }
 0x10b   : > { %2128 = vmatprep.mubr.bf16.mxu0 %v7652_v12 }
 0x10f   : > { %2024 = vmatmul.mubr.bf16.gmra.mrb[76].mxu1 %v7705_v50 }
 0x110   : > { %2225 = vmatprep.mubr.bf16.mxu1 %v7395_v7  ;;  %v691_v7 = vld [vmem:[#allocation2 + $0x121] sm:$0xff] }
 0x112   : > { %2129 = vmatmul.mubr.bf16.gmra.mrb[80].mxu0 %v7571_v2 }
 0x113   : > { %2136 = vmatprep.mubr.bf16.mxu0 %v7664_v48 }
 0x117   : > { %2226 = vmatmul.mubr.bf16.vlgmr.msra.gmra.mrb[80].mxu1 %v7404_v14  ;;  %v692_v14 = vld [vmem:[#allocation2 + $0x129] sm:$0xff] }
 0x118   : > { %2233 = vmatprep.mubr.bf16.mxu1 %v7417_v22  ;;  %v7723_v35 = vpack.c.bf16 %v692_v14, %v691_v7  ;;  %v693_v22 = vld [vmem:[#allocation2 + $0x139] sm:$0xff] }
 0x11a   : > { %2137 = vmatmul.mubr.bf16.gmra.mrb[84].mxu0 %v7593_v21 }
 0x11b   : > { %2144 = vmatprep.mubr.bf16.mxu0 %v7676_v23 }
 0x11f   : > { %2234 = vmatmul.mubr.bf16.gmra.mrb[84].mxu1 %v7431_v34  ;;  %v694_v34 = vld [vmem:[#allocation2 + $0x141] sm:$0xff] }
 0x120   : > { %2241 = vmatprep.mubr.bf16.mxu1 %v7465_v53  ;;  %v7729_v53 = vpack.c.bf16 %v694_v34, %v693_v22 }
 0x122   : > { %2145 = vmatmul.mubr.bf16.gmra.mrb[88].mxu0 %v7619_v44 }
 0x123   : > { %2152 = vmatprep.mubr.bf16.mxu0 %v7685_v33 }
 0x127   : > { %2242 = vmatmul.mubr.bf16.gmra.mrb[88].mxu1 %v7467_v54  ;;  %v695_v54 = vld [vmem:[#allocation2 + $0x151] sm:$0xff] }
 0x128   : > { %2249 = vmatprep.mubr.bf16.mxu1 %v7474_v61  ;;  %v696_v61 = vld [vmem:[#allocation2 + $0x159] sm:$0xff]  ;;  %v5605_v4 = vpop.f32.mrb[0].mxu0 }
 0x129   : > { %v7735_v51 = vpack.c.bf16 %v696_v61, %v695_v54  ;;  %v5606_v6 = vpop.f32.mrb[1].mxu0 }
 0x12a   : > { %2153 = vmatmul.mubr.bf16.gmra.mrb[92].mxu0 %v7723_v35  ;;  %v7751_v9 = vadd.f32 %v5606_v6, %v5605_v4  ;;  %v5608_v28 = vpop.f32.mrb[2].mxu0 }
 0x12b   : > { %2160 = vmatprep.mubr.bf16.mxu0 %v7691_v32  ;;  %v5609_v17 = vpop.f32.mrb[3].mxu0 }
 0x12f   : > { %2250 = vmatmul.mubr.bf16.gmra.mrb[92].mxu1 %v7491_v11  ;;  %v697_v11 = vld [vmem:[#allocation2 + $0x169] sm:$0xff] }
 0x130   : > { %2257 = vmatprep.mubr.bf16.mxu1 %v7497_v13  ;;  %v698_v13 = vld [vmem:[#allocation2 + $0x171] sm:$0xff] }
 0x132   : > { %2161 = vmatmul.mubr.bf16.gmra.mrb[96].mxu0 %v7729_v53 }
 0x133   : > { %2168 = vmatprep.mubr.bf16.mxu0 %v7697_v40 }
 0x137   : > { %2258 = vmatmul.mubr.bf16.gmra.mrb[96].mxu1 %v7513_v27  ;;  %v6845_v27 = vld [vmem:[#allocation5] sm:$0xff]  }
 0x138   : > { %2265 = vmatprep.mubr.bf16.mxu1 %v7520_v30  ;;  %v7741_v30 = vpack.c.bf16 %v698_v13, %v697_v11  ;;  %6062 = vmatpush3.bf16.msra.mxu1 %v6845_v27 }
 0x139   : > { %6063 = vmatprep.subr.bf16.mxu1 %v6846_v25 }
 0x13a   : > { %2169 = vmatmul.mubr.bf16.gmra.mrb[100].mxu0 %v7735_v51 }
 0x13b   : > { %2176 = vmatprep.mubr.bf16.mxu0 %v7705_v50 }
 0x13c   : > { %6064 = vmatpush3.bf16.msra.mxu1 %v6847_v26 }
 0x13f   : > { %2266 = vmatmul.mubr.bf16.gmra.mrb[100].mxu1 %v7539_v46  ;;  %v699_v46 = vld [vmem:[#allocation2 + $0x181] sm:$0xff] }
 0x140   : > { %2273 = vmatprep.mubr.bf16.mxu1 %v7548_v49  ;;  %v700_v49 = vld [vmem:[#allocation2 + $0x189] sm:$0xff] }
 0x141   : > { %v7749_v8 = vpack.c.bf16 %v700_v49, %v699_v46  ;;  %v6849_v49 = vld [vmem:[#allocation5 + $0x10] sm:$0xff]  }
 0x142   : > { %2177 = vmatmul.mubr.bf16.gmra.mrb[104].mxu0 %v7741_v30 }
 0x143   : > { %2184 = vmatprep.mubr.bf16.mxu0 %v7743_v60 }
 0x147   : > { %2274 = vmatmul.mubr.bf16.gmra.mrb[104].mxu1 %v7564_v63 }
 0x148   : > { %2281 = vmatprep.mubr.bf16.mxu1 %v7571_v2  ;;  %v7755_v2 = vadd.f32 %v5609_v17, %v5608_v28  ;;  %v820_v17 = vld [vmem:[#allocation2 + $0x138] sm:$0xff] }
 0x14a   : > { %v5677_v5 = vpop.f32.mrb[0].mxu1  ;;  %2185 = vmatmul.mubr.bf16.gmra.mrb[108].mxu0 %v7749_v8 }
 0x14b   : > { %v5678_v39 = vpop.f32.mrb[1].mxu1  ;;  %6573 = vmatprep.mubr.bf16.mxu0 %v958_v10 }
 0x14c   : > { %v7753_v16 = vadd.f32 %v5678_v39, %v5677_v5  ;;  %v5680_v63 = vpop.f32.mrb[2].mxu1 }
 0x14d   : > { %v5681_v20 = vpop.f32.mrb[3].mxu1  ;;  %v5611_v29 = vpop.f32.mrb[4].mxu0 }
 0x14e   : > { %v7757_v24 = vadd.f32 %v5681_v20, %v5680_v63  ;;  %v5612_v57 = vpop.f32.mrb[5].mxu0  ;;  %v821_v20 = vld [vmem:[#allocation2 + $0x140] sm:$0xff] }
 0x14f   : > { %2282 = vmatmul.mubr.bf16.gmra.mrb[108].mxu1 %v7586_v18  ;;  %v7762_v37 = vadd.f32 %v5612_v57, %v5611_v29  ;;  %v5614_v38 = vpop.f32.mrb[6].mxu0  ;;  %v841_v57 = vpack.c.bf16 %v821_v20, %v820_v17 }
 0x150   : > { %2289 = vmatprep.mubr.bf16.mxu1 %v7593_v21  ;;  %v5615_v7 = vpop.f32.mrb[7].mxu0 }
 0x151   : > { %v7766_v18 = vadd.f32 %v5615_v7, %v5614_v38 }
 0x152   : > { %v5683_v31 = vpop.f32.mrb[4].mxu1  ;;  %6574 = vmatmul.mubr.bf16.vlgmr.msra.gmra.mrb[112].mxu0 %v7541_v47  ;;  %v818_v47 = vld [vmem:[#allocation2 + $0x120] sm:$0xff] }
 0x153   : > { %v5684_v36 = vpop.f32.mrb[5].mxu1  ;;  %6577 = vmatprep.mubr.bf16.mxu0 %v7566_v0  ;;  %v819_v0 = vld [vmem:[#allocation2 + $0x128] sm:$0xff] }
 0x154   : > { %v7764_v15 = vadd.f32 %v5684_v36, %v5683_v31  ;;  %v5686_v45 = vpop.f32.mrb[6].mxu1  ;;  %v840_v6 = vpack.c.bf16 %v819_v0, %v818_v47 }
 0x155   : > { %v5687_v14 = vpop.f32.mrb[7].mxu1  ;;  %v5617_v22 = vpop.f32.mrb[8].mxu0 }
 0x156   : > { %v7768_v21 = vadd.f32 %v5687_v14, %v5686_v45  ;;  %v5618_v54 = vpop.f32.mrb[9].mxu0 }
 0x157   : > { %2290 = vmatmul.mubr.bf16.gmra.mrb[112].mxu1 %v7615_v42  ;;  %v7774_v11 = vadd.f32 %v5618_v54, %v5617_v22  ;;  %v5620_v13 = vpop.f32.mrb[10].mxu0  ;;  %v823_v54 = vld [vmem:[#allocation2 + $0x158] sm:$0xff] }
 0x158   : > { %2297 = vmatprep.mubr.bf16.mxu1 %v7619_v44  ;;  %v5621_v55 = vpop.f32.mrb[11].mxu0  ;;  %v6848_v44 = vld [vmem:[#allocation5 + $0x50] sm:$0xff]  }
 0x159   : > { %v7778_v46 = vadd.f32 %v5621_v55, %v5620_v13  ;;  %6065 = vmatprep.subr.bf16.mxu1 %v6848_v44  ;;  %v6850_v13 = vld [vmem:[#allocation5 + $0x58] sm:$0xff]  }
 0x15a   : > { %v5689_v34 = vpop.f32.mrb[8].mxu1  ;;  %6578 = vmatmul.mubr.bf16.gmra.mrb[116].mxu0 %v7588_v19  ;;  %6066 = vmatpush3.bf16.msra.mxu1 %v6849_v49 }
 0x15b   : > { %v5690_v61 = vpop.f32.mrb[9].mxu1  ;;  %6581 = vmatprep.mubr.bf16.mxu0 %v7617_v43  ;;  %6067 = vmatprep.subr.bf16.mxu1 %v6850_v13 }
 0x15c   : > { %v7776_v52 = vadd.f32 %v5690_v61, %v5689_v34  ;;  %v5692_v27 = vpop.f32.mrb[10].mxu1 }
 0x15d   : > { %v5693_v56 = vpop.f32.mrb[11].mxu1  ;;  %v5623_v62 = vpop.f32.mrb[12].mxu0 }
 0x15e   : > { %v7780_v42 = vadd.f32 %v5693_v56, %v5692_v27  ;;  %v5624_v4 = vpop.f32.mrb[13].mxu0  ;;  %v6851_v27 = vld [vmem:[#allocation5 + $0x18] sm:$0xff]  }
 0x15f   : > { %2298 = vmatmul.mubr.bf16.gmra.mrb[116].mxu1 %v7631_v58  ;;  %v7786_v39 = vadd.f32 %v5624_v4, %v5623_v62  ;;  %v5626_v58 = vpop.f32.mrb[14].mxu0 }
 0x160   : > { %2305 = vmatprep.mubr.bf16.mxu1 %v7723_v35  ;;  %v5627_v10 = vpop.f32.mrb[15].mxu0  ;;  %6068 = vmatpush3.bf16.msra.mxu1 %v6851_v27 }
 0x161   : > { %v7790_v63 = vadd.f32 %v5627_v10, %v5626_v58 }
 0x162   : > { %v5695_v3 = vpop.f32.mrb[12].mxu1  ;;  %6582 = vmatmul.mubr.bf16.gmra.mrb[120].mxu0 %v7633_v59 }
 0x163   : > { %v5696_v5 = vpop.f32.mrb[13].mxu1  ;;  %6585 = vmatprep.mubr.bf16.mxu0 %v7639_v1  ;;  %v822_v1 = vld [vmem:[#allocation2 + $0x150] sm:$0xff] }
 0x164   : > { %v7788_v28 = vadd.f32 %v5696_v5, %v5695_v3  ;;  %v5698_v19 = vpop.f32.mrb[14].mxu1  ;;  %v842_v0 = vpack.c.bf16 %v823_v54, %v822_v1  ;;  %v824_v5 = vld [vmem:[#allocation2 + $0x168] sm:$0xff] }
 0x165   : > { %v5699_v35 = vpop.f32.mrb[15].mxu1  ;;  %v5629_v25 = vpop.f32.mrb[16].mxu0 }
 0x166   : > { %v7792_v43 = vadd.f32 %v5699_v35, %v5698_v19  ;;  %v5630_v29 = vpop.f32.mrb[17].mxu0 }
 0x167   : > { %2306 = vmatmul.mubr.bf16.gmra.mrb[120].mxu1 %v840_v6  ;;  %v7797_v36 = vadd.f32 %v5630_v29, %v5629_v25  ;;  %v5632_v45 = vpop.f32.mrb[18].mxu0  ;;  %v825_v6 = vld [vmem:[#allocation2 + $0x170] sm:$0xff] }
 0x168   : > { %2313 = vmatprep.mubr.bf16.mxu1 %v7729_v53  ;;  %v5633_v14 = vpop.f32.mrb[19].mxu0  ;;  %v843_v20 = vpack.c.bf16 %v825_v6, %v824_v5  ;;  %v6857_v5 = vld [vmem:[#allocation5 + $0x88] sm:$0xff]  }
 0x169   : > { %v7799_v34 = vadd.f32 %v5633_v14, %v5632_v45  ;;  %v6853_v45 = vld [vmem:[#allocation5 + $0x20] sm:$0xff]  }
 0x16a   : > { %v5717_v26 = vpop.f32.mrb[16].mxu1  ;;  %6586 = vmatmul.mubr.bf16.gmra.mrb[124].mxu0 %v7652_v12  ;;  %v892_v14 = vld [vmem:[#allocation2 + $0x199] sm:$0xff] }
 0x16b   : > { %v5718_v31 = vpop.f32.mrb[17].mxu1  ;;  %6589 = vmatprep.mubr.bf16.mxu0 %v7664_v48 }
 0x16c   : > { %v5719_v38 = vadd.f32 %v5718_v31, %v5717_v26  ;;  %v5720_v7 = vpop.f32.mrb[18].mxu1 }
 0x16d   : > { %v5721_v22 = vpop.f32.mrb[19].mxu1  ;;  %v5635_v55 = vpop.f32.mrb[20].mxu0 }
 0x16e   : > { %v5722_v59 = vadd.f32 %v5721_v22, %v5720_v7  ;;  %v7802_v53 = vadd.f32 %v5719_v38, %v7751_v9  ;;  %v5636_v47 = vpop.f32.mrb[21].mxu0  ;;  %v6852_v38 = vld [vmem:[#allocation5 + $0x60] sm:$0xff]  }
 0x16f   : > { %2314 = vmatmul.mubr.bf16.gmra.mrb[124].mxu1 %v841_v57  ;;  %v7810_v44 = vadd.f32 %v5636_v47, %v5635_v55  ;;  %v5638_v49 = vpop.f32.mrb[22].mxu0  ;;  %v6854_v7 = vld [vmem:[#allocation5 + $0xc0] sm:$0xff]   ;;  %6069 = vmatprep.subr.bf16.mxu1 %v6852_v38  ;;  %v6860_v38 = vld [vmem:[#allocation5 + $0xd0] sm:$0xff]  }
 0x170   : > { %2321 = vmatprep.mubr.bf16.mxu1 %v7735_v51  ;;  %v7808_v61 = vadd.f32 %v5722_v59, %v7755_v2  ;;  %v5639_v62 = vpop.f32.mrb[23].mxu0  ;;  %v893_v22 = vld [vmem:[#allocation2 + $0x1a1] sm:$0xff]  ;;  %6173 = vmatprep.subr.bf16.mxu0 %v6854_v7 }
 0x171   : > { %v7812_v3 = vadd.f32 %v5639_v62, %v5638_v49  ;;  %6070 = vmatpush3.bf16.msra.mxu1 %v6853_v45  ;;  %v957_v49 = vld [vmem:[#allocation2 + $0x1a2] sm:$0xff] }
 0x172   : > { %v5723_v56 = vpop.f32.mrb[20].mxu1  ;;  %6590 = vmatmul.mubr.bf16.gmra.mrb[128].mxu0 %v7676_v23  ;;  %v6856_v62 = vld [vmem:[#allocation5 + $0xc8] sm:$0xff]  }
 0x173   : > { %v5724_v9 = vpop.f32.mrb[21].mxu1  ;;  %6593 = vmatprep.mubr.bf16.mxu0 %v7685_v33 }
 0x174   : > { %v5725_v12 = vadd.f32 %v5724_v9, %v5723_v56  ;;  %v5726_v51 = vpop.f32.mrb[22].mxu1 }
 0x175   : > { %v5727_v48 = vpop.f32.mrb[23].mxu1  ;;  %v5641_v19 = vpop.f32.mrb[24].mxu0 }
 0x176   : > { %v5728_v2 = vadd.f32 %v5727_v48, %v5726_v51  ;;  %v7815_v4 = vadd.f32 %v5725_v12, %v7762_v37  ;;  %v5642_v35 = vpop.f32.mrb[25].mxu0  ;;  %v956_v12 = vld [vmem:[#allocation2 + $0x19a] sm:$0xff] }
 0x177   : > { %2322 = vmatmul.mubr.bf16.gmra.mrb[128].mxu1 %v842_v0  ;;  %v7823_v25 = vadd.f32 %v5642_v35, %v5641_v19  ;;  %v5644_v26 = vpop.f32.mrb[26].mxu0  ;;  %v6924_v19 = vld [vmem:[#allocation2] sm:$0xff] }
 0x178   : > { %2329 = vmatprep.mubr.bf16.mxu1 %v7741_v30  ;;  %v7821_v58 = vadd.f32 %v5728_v2, %v7766_v18  ;;  %v5645_v23 = vpop.f32.mrb[27].mxu0 }
 0x179   : > { %v7825_v30 = vadd.f32 %v5645_v23, %v5644_v26 }
 0x17a   : > { %v5729_v10 = vpop.f32.mrb[24].mxu1  ;;  %6594 = vmatmul.mubr.bf16.gmra.mrb[132].mxu0 %v7691_v32 }
 0x17b   : > { %v5730_v17 = vpop.f32.mrb[25].mxu1  ;;  %6597 = vmatprep.mubr.bf16.mxu0 %v7697_v40 }
 0x17c   : > { %v5731_v37 = vadd.f32 %v5730_v17, %v5729_v10  ;;  %v5732_v29 = vpop.f32.mrb[26].mxu1  ;;  %v7849_v10 = vpack.c.bf16 %v6924_v19, %v6924_v19 }
 0x17d   : > { %v5733_v31 = vpop.f32.mrb[27].mxu1  ;;  %v5647_v59 = vpop.f32.mrb[28].mxu0 }
 0x17e   : > { %v5734_v33 = vadd.f32 %v5733_v31, %v5732_v29  ;;  %v7828_v57 = vadd.f32 %v5731_v37, %v7774_v11  ;;  %v6855_v11 = vld [vmem:[#allocation5 + $0x80] sm:$0xff]   ;;  %v5648_v54 = vpop.f32.mrb[29].mxu0  ;;  %v6858_v31 = vld [vmem:[#allocation5 + $0x68] sm:$0xff]  }
 0x17f   : > { %2330 = vmatmul.mubr.bf16.gmra.mrb[132].mxu1 %v843_v20  ;;  %v7836_v32 = vadd.f32 %v5648_v54, %v5647_v59  ;;  %v5650_v40 = vpop.f32.mrb[30].mxu0  ;;  %6174 = vmatpush3.bf16.msra.mxu0 %v6855_v11 }
 0x180   : > { %2337 = vmatprep.mubr.bf16.mxu1 %v7749_v8  ;;  %v7834_v18 = vadd.f32 %v5734_v33, %v7778_v46  ;;  %v909_v46 = vpack.c.bf16 %v893_v22, %v892_v14  ;;  %v5651_v55 = vpop.f32.mrb[31].mxu0  ;;  %6175 = vmatprep.subr.bf16.mxu0 %v6856_v62  ;;  %v6859_v33 = vld [vmem:[#allocation5 + $0x28] sm:$0xff]   ;;  %v6861_v14 = vld [vmem:[#allocation5 + $0x90] sm:$0xff]  }
 0x181   : > { %v7838_v47 = vadd.f32 %v5651_v55, %v5650_v40  ;;  %6071 = vmatprep.subr.bf16.mxu1 %v6858_v31  ;;  %v6862_v55 = vld [vmem:[#allocation5 + $0xd8] sm:$0xff]   ;;  %v6867_v31 = vld [vmem:[#allocation5 + $0xa0] sm:$0xff]  }
 0x182   : > { %v5735_v1 = vpop.f32.mrb[28].mxu1  ;;  %6598 = vmatmul.mubr.bf16.gmra.mrb[136].mxu0 %v7705_v50  ;;  %6072 = vmatpush3.bf16.msra.mxu1 %v6859_v33 }
 0x183   : > { %v5736_v13 = vpop.f32.mrb[29].mxu1  ;;  %6601 = vmatprep.mubr.bf16.mxu0 %v7743_v60  ;;  %6176 = vmatpush3.bf16.msra.mxu0 %v6857_v5 }
 0x184   : > { %v5737_v8 = vadd.f32 %v5736_v13, %v5735_v1  ;;  %v5738_v27 = vpop.f32.mrb[30].mxu1  ;;  %6177 = vmatprep.subr.bf16.mxu0 %v6860_v38 }
 0x185   : > { %v5739_v56 = vpop.f32.mrb[31].mxu1  ;;  %v5653_v48 = vpop.f32.mrb[32].mxu0 }
 0x186   : > { %v5740_v9 = vadd.f32 %v5739_v56, %v5738_v27  ;;  %v7841_v0 = vadd.f32 %v5737_v8, %v7786_v39  ;;  %v5654_v6 = vpop.f32.mrb[33].mxu0 }
 0x187   : > { %2338 = vmatmul.mubr.bf16.gmra.mrb[136].mxu1 %v7699_v41  ;;  %v973_v41 = vpack.c.bf16 %v957_v49, %v956_v12  ;;  %v7851_v50 = vadd.f32 %v5654_v6, %v5653_v48  ;;  %v5656_v60 = vpop.f32.mrb[34].mxu0  ;;  %6178 = vmatpush3.bf16.msra.mxu0 %v6861_v14  ;;  %v6863_v12 = vld [vmem:[#allocation5 + $0x98] sm:$0xff]  }
 0x188   : > { %2345 = vmatprep.mubr.bf16.mxu1 %v909_v46  ;;  %v7847_v51 = vadd.f32 %v5740_v9, %v7790_v63  ;;  %v5657_v20 = vpop.f32.mrb[35].mxu0  ;;  %6179 = vmatprep.subr.bf16.mxu0 %v6862_v55 }
 0x189   : > { %v7853_v37 = vadd.f32 %v5657_v20, %v5656_v60  ;;  %v6864_v60 = vld [vmem:[#allocation5 + $0x70] sm:$0xff]   ;;  %v6866_v20 = vld [vmem:[#allocation5 + $0xe0] sm:$0xff]  }
 0x18a   : > { %v5741_v2 = vpop.f32.mrb[32].mxu1  ;;  %6602 = vmatmul.mubr.bf16.gmra.mrb[140].mxu0 %v973_v41  ;;  %6073 = vmatprep.subr.bf16.mxu1 %v6864_v60  ;;  %v6870_v60 = vld [vmem:[#allocation5 + $0x78] sm:$0xff]  }
 0x18b   : > { %v5742_v39 = vpop.f32.mrb[33].mxu1  ;;  %6180 = vmatpush3.bf16.msra.mxu0 %v6863_v12 }
 0x18c   : > { %v5743_v35 = vadd.f32 %v5742_v39, %v5741_v2  ;;  %v5744_v17 = vpop.f32.mrb[34].mxu1  ;;  %6181 = vmatprep.subr.bf16.mxu0 %v6866_v20 }
 0x18d   : > { %v5745_v63 = vpop.f32.mrb[35].mxu1  ;;  %v5659_v45 = vpop.f32.mrb[36].mxu0 }
 0x18e   : > { %v5746_v26 = vadd.f32 %v5745_v63, %v5744_v17  ;;  %v7856_v29 = vadd.f32 %v5743_v35, %v7797_v36  ;;  %v5660_v22 = vpop.f32.mrb[37].mxu0  ;;  %v6865_v17 = vld [vmem:[#allocation5 + $0x30] sm:$0xff]  }
 0x18f   : > { %2346 = vmatmul.mubr.bf16.gmra.mrb[140].mxu1 %v7849_v10  ;;  %v7862_v1 = vadd.f32 %v5660_v22, %v5659_v45  ;;  %v5662_v11 = vpop.f32.mrb[38].mxu0  ;;  %6182 = vmatpush3.bf16.msra.mxu0 %v6867_v31 }
 0x190   : > { %v7860_v23 = vadd.f32 %v5746_v26, %v7799_v34  ;;  %v5663_v13 = vpop.f32.mrb[39].mxu0  ;;  %6074 = vmatpush3.bf16.msra.mxu1 %v6865_v17 }
 0x191   : > { %v7864_v8 = vadd.f32 %v5663_v13, %v5662_v11  ;;  %v6868_v13 = vld [vmem:[#allocation5 + $0xe8] sm:$0xff]   ;;  %6075 = vmatprep.subr.bf16.mxu1 %v6870_v60  ;;  %v6875_v60 = vld [vmem:[#allocation5 + $0xb8] sm:$0xff]  }
 0x192   : > { %v5747_v7 = vpop.f32.mrb[36].mxu1  ;;  %6183 = vmatprep.subr.bf16.mxu0 %v6868_v13 }
 0x193   : > { %v5748_v59 = vpop.f32.mrb[37].mxu1 }
 0x194   : > { %v5749_v36 = vadd.f32 %v5748_v59, %v5747_v7  ;;  %v5750_v54 = vpop.f32.mrb[38].mxu1 }
 0x195   : > { %v5751_v34 = vpop.f32.mrb[39].mxu1  ;;  %v5665_v56 = vpop.f32.mrb[40].mxu0 }
 0x196   : > { %v5752_v40 = vadd.f32 %v5751_v34, %v5750_v54  ;;  %v7867_v27 = vadd.f32 %v5749_v36, %v7810_v44  ;;  %v5666_v49 = vpop.f32.mrb[41].mxu0 }
 0x197   : > { %v7872_v48 = vadd.f32 %v5666_v49, %v5665_v56  ;;  %v5668_v5 = vpop.f32.mrb[42].mxu0 }
 0x198   : > { %v7870_v46 = vadd.f32 %v5752_v40, %v7812_v3  ;;  %v5669_v39 = vpop.f32.mrb[43].mxu0 }
 0x199   : > { %v7874_v44 = vadd.f32 %v5669_v39, %v5668_v5 }
 0x19a   : > { %v5753_v9 = vpop.f32.mrb[40].mxu1 }
 0x19b   : > { %v5754_v62 = vpop.f32.mrb[41].mxu1 }
 0x19c   : > { %v5755_v2 = vadd.f32 %v5754_v62, %v5753_v9  ;;  %v5756_v6 = vpop.f32.mrb[42].mxu1 }
 0x19d   : > { %v5757_v19 = vpop.f32.mrb[43].mxu1  ;;  %v5671_v63 = vpop.f32.mrb[44].mxu0 }
 0x19e   : > { %v5758_v41 = vadd.f32 %v5757_v19, %v5756_v6  ;;  %v7877_v3 = vadd.f32 %v5755_v2, %v7823_v25  ;;  %v5672_v33 = vpop.f32.mrb[45].mxu0 }
 0x19f   : > { %v7882_v45 = vadd.f32 %v5672_v33, %v5671_v63  ;;  %v5674_v14 = vpop.f32.mrb[46].mxu0  ;;  %v6871_v63 = vld [vmem:[#allocation5 + $0x38] sm:$0xff]   ;;  %v6869_v33 = vld [vmem:[#allocation5 + $0xa8] sm:$0xff]  }
 0x1a0   : > { %v7880_v35 = vadd.f32 %v5758_v41, %v7825_v30  ;;  %v5675_v22 = vpop.f32.mrb[47].mxu0  ;;  %6076 = vmatpush3.bf16.msra.mxu1 %v6871_v63  ;;  %6184 = vmatpush3.bf16.msra.mxu0 %v6869_v33 }
 0x1a1   : > { %v7884_v59 = vadd.f32 %v5675_v22, %v5674_v14 }
 0x1a2   : > { %v5759_v26 = vpop.f32.mrb[44].mxu1 }
 0x1a3   : > { %v5760_v38 = vpop.f32.mrb[45].mxu1 }
 0x1a4   : > { %v5761_v7 = vadd.f32 %v5760_v38, %v5759_v26  ;;  %v5762_v25 = vpop.f32.mrb[46].mxu1  ;;  %v2773_v38 = vld [vmem:[#allocation3 + $0x9] sm:$0xff] }
 0x1a5   : > { %v5763_v30 = vpop.f32.mrb[47].mxu1  ;;  %v5829_v40 = vpop.f32.mrb[48].mxu0 }
 0x1a6   : > { %v5764_v36 = vadd.f32 %v5763_v30, %v5762_v25  ;;  %v7887_v11 = vadd.f32 %v5761_v7, %v7836_v32  ;;  %v5830_v56 = vpop.f32.mrb[49].mxu0 }
 0x1a7   : > { %v5831_v12 = vadd.f32 %v5830_v56, %v5829_v40  ;;  %v5832_v62 = vpop.f32.mrb[50].mxu0  ;;  %v6872_v40 = vld [vmem:[#allocation5 + $0xf0] sm:$0xff]  }
 0x1a8   : > { %v7890_v54 = vadd.f32 %v5764_v36, %v7838_v47  ;;  %v5833_v5 = vpop.f32.mrb[51].mxu0  ;;  %6185 = vmatprep.subr.bf16.mxu0 %v6872_v40  ;;  %v6878_v40 = vld [vmem:[#allocation5 + $0x1c0] sm:$0xff]  }
 0x1a9   : > { %v7896_v32 = vadd.f32 %v5831_v12, %v7802_v53  ;;  %v5834_v39 = vadd.f32 %v5833_v5, %v5832_v62  ;;  %v6874_v62 = vld [vmem:[#allocation5 + $0xf8] sm:$0xff]  }
 0x1aa   : > { %v5765_v34 = vpop.f32.mrb[48].mxu1 }
 0x1ab   : > { %v5766_v55 = vpop.f32.mrb[49].mxu1  ;;  %v7902_v41 = vadd.f32 %v5834_v39, %v7808_v61 }
 0x1ac   : > { %v5767_v9 = vadd.f32 %v5766_v55, %v5765_v34  ;;  %v5768_v49 = vpop.f32.mrb[50].mxu1 }
 0x1ad   : > { %v5769_v2 = vpop.f32.mrb[51].mxu1  ;;  %v5835_v20 = vpop.f32.mrb[52].mxu0 }
 0x1ae   : > { %v7893_v6 = vadd.f32 %v5767_v9, %v7851_v50  ;;  %v5770_v47 = vadd.f32 %v5769_v2, %v5768_v49  ;;  %v5836_v31 = vpop.f32.mrb[53].mxu0  ;;  %v2772_v50 = vld [vmem:[#allocation3 + $0x1] sm:$0xff] }
 0x1af   : > { %v5837_v7 = vadd.f32 %v5836_v31, %v5835_v20  ;;  %v5838_v25 = vpop.f32.mrb[54].mxu0  ;;  %v6873_v9 = vld [vmem:[#allocation5 + $0xb0] sm:$0xff]  }
 0x1b0   : > { %v7899_v19 = vadd.f32 %v5770_v47, %v7853_v37  ;;  %v2804_v37 = vpack.c.bf16 %v2773_v38, %v2772_v50  ;;  %v5839_v30 = vpop.f32.mrb[55].mxu0  ;;  %6186 = vmatpush3.bf16.msra.mxu0 %v6873_v9 }
 0x1b1   : > { %v7908_v36 = vadd.f32 %v5837_v7, %v7815_v4  ;;  %v5840_v34 = vadd.f32 %v5839_v30, %v5838_v25  ;;  %6187 = vmatprep.subr.bf16.mxu0 %v6874_v62 }
 0x1b2   : > { %v5771_v17 = vpop.f32.mrb[52].mxu1  ;;  %4037 = vmatprep.mubr.bf16.mxu1 %v2804_v37 }
 0x1b3   : > { %v5772_v26 = vpop.f32.mrb[53].mxu1  ;;  %4038 = vmatmul.mubr.bf16.vlgmr.msra.gmra.mrb[144].mxu1 %v7849_v10  ;;  %v7915_v56 = vadd.f32 %v5840_v34, %v7821_v58  ;;  %v6877_v34 = vld [vmem:[#allocation5 + $0x100] sm:$0xff]  }
 0x1b4   : > { %v5773_v53 = vadd.f32 %v5772_v26, %v5771_v17  ;;  %v5774_v14 = vpop.f32.mrb[54].mxu1  ;;  %6188 = vmatpush3.bf16.msra.mxu0 %v6875_v60 }
 0x1b5   : > { %v5775_v22 = vpop.f32.mrb[55].mxu1  ;;  %6397 = vmatprep.subr.bf16.mxu0 %v6878_v40 }
 0x1b6   : > { %v7905_v61 = vadd.f32 %v5773_v53, %v7862_v1  ;;  %v5776_v13 = vadd.f32 %v5775_v22, %v5774_v14  ;;  %v5841_v1 = vpop.f32.mrb[56].mxu0 }
 0x1b7   : > { %v5842_v4 = vpop.f32.mrb[57].mxu0 }
 0x1b8   : > { %v7912_v55 = vadd.f32 %v5776_v13, %v7864_v8  ;;  %v5843_v5 = vadd.f32 %v5842_v4, %v5841_v1  ;;  %v5844_v39 = vpop.f32.mrb[58].mxu0 }
 0x1b9   : > { %v5845_v17 = vpop.f32.mrb[59].mxu0 }
 0x1ba   : > { %v5777_v12 = vpop.f32.mrb[56].mxu1  ;;  %v7921_v58 = vadd.f32 %v5843_v5, %v7828_v57  ;;  %v5846_v63 = vadd.f32 %v5845_v17, %v5844_v39 }
 0x1bb   : > { %v5778_v49 = vpop.f32.mrb[57].mxu1 }
 0x1bc   : > { %v5779_v2 = vadd.f32 %v5778_v49, %v5777_v12  ;;  %v5780_v47 = vpop.f32.mrb[58].mxu1  ;;  %v7927_v31 = vadd.f32 %v5846_v63, %v7834_v18  ;;  %v6876_v18 = vld [vmem:[#allocation5 + $0x140] sm:$0xff]  }
 0x1bd   : > { %v5781_v10 = vpop.f32.mrb[59].mxu1  ;;  %v5847_v50 = vpop.f32.mrb[60].mxu0  ;;  %6285 = vmatprep.subr.bf16.mxu1 %v6876_v18 }
 0x1be   : > { %v7918_v8 = vadd.f32 %v5779_v2, %v7872_v48  ;;  %v5782_v20 = vadd.f32 %v5781_v10, %v5780_v47  ;;  %v5848_v53 = vpop.f32.mrb[61].mxu0  ;;  %6286 = vmatpush3.bf16.msra.mxu1 %v6877_v34 }
 0x1bf   : > { %v5849_v14 = vadd.f32 %v5848_v53, %v5847_v50  ;;  %v5850_v25 = vpop.f32.mrb[62].mxu0 }
 0x1c0   : > { %v7924_v26 = vadd.f32 %v5782_v20, %v7874_v44  ;;  %v5851_v57 = vpop.f32.mrb[63].mxu0 }
 0x1c1   : > { %v7933_v30 = vadd.f32 %v5849_v14, %v7841_v0  ;;  %v5852_v13 = vadd.f32 %v5851_v57, %v5850_v25 }
 0x1c2   : > { %v5783_v33 = vpop.f32.mrb[60].mxu1 }
 0x1c3   : > { %v5784_v38 = vpop.f32.mrb[61].mxu1  ;;  %v7939_v12 = vadd.f32 %v5852_v13, %v7847_v51 }
 0x1c4   : > { %v5785_v7 = vadd.f32 %v5784_v38, %v5783_v33  ;;  %v5786_v48 = vpop.f32.mrb[62].mxu1 }
 0x1c5   : > { %v5787_v37 = vpop.f32.mrb[63].mxu1 }
 0x1c6   : > { %v7930_v22 = vadd.f32 %v5785_v7, %v7882_v45  ;;  %v5788_v44 = vadd.f32 %v5787_v37, %v5786_v48  ;;  %v5853_v45 = vpop.f32.mrb[64].mxu0 }
 0x1c7   : > { %v5854_v4 = vpop.f32.mrb[65].mxu0 }
 0x1c8   : > { %v7936_v9 = vadd.f32 %v5788_v44, %v7884_v59  ;;  %v5855_v62 = vadd.f32 %v5854_v4, %v5853_v45  ;;  %v5856_v5 = vpop.f32.mrb[66].mxu0  ;;  %v6881_v44 = vld [vmem:[#allocation5 + $0x108] sm:$0xff]  }
 0x1c9   : > { %v5857_v39 = vpop.f32.mrb[67].mxu0 }
 0x1ca   : > { %v5789_v1 = vpop.f32.mrb[64].mxu1  ;;  %v7945_v59 = vadd.f32 %v5855_v62, %v7856_v29  ;;  %v5858_v10 = vadd.f32 %v5857_v39, %v5856_v5 }
 0x1cb   : > { %v5790_v49 = vpop.f32.mrb[65].mxu1 }
 0x1cc   : > { %v5791_v0 = vadd.f32 %v5790_v49, %v5789_v1  ;;  %v5792_v2 = vpop.f32.mrb[66].mxu1  ;;  %v7951_v20 = vadd.f32 %v5858_v10, %v7860_v23  ;;  %v6880_v23 = vld [vmem:[#allocation5 + $0x148] sm:$0xff]  }
 0x1cd   : > { %v5793_v47 = vpop.f32.mrb[67].mxu1  ;;  %v5859_v33 = vpop.f32.mrb[68].mxu0  ;;  %6287 = vmatprep.subr.bf16.mxu1 %v6880_v23 }
 0x1ce   : > { %v7942_v60 = vadd.f32 %v5791_v0, %v7753_v16  ;;  %v5794_v51 = vadd.f32 %v5793_v47, %v5792_v2  ;;  %v5860_v38 = vpop.f32.mrb[69].mxu0  ;;  %6288 = vmatpush3.bf16.msra.mxu1 %v6881_v44 }
 0x1cf   : > { %v5861_v7 = vadd.f32 %v5860_v38, %v5859_v33  ;;  %v5862_v16 = vpop.f32.mrb[70].mxu0 }
 0x1d0   : > { %v7948_v17 = vadd.f32 %v5794_v51, %v7757_v24  ;;  %v5863_v25 = vpop.f32.mrb[71].mxu0 }
 0x1d1   : > { %v7957_v37 = vadd.f32 %v5861_v7, %v7867_v27  ;;  %v5864_v57 = vadd.f32 %v5863_v25, %v5862_v16  ;;  %v6885_v25 = vld [vmem:[#allocation5 + $0x110] sm:$0xff]  }
 0x1d2   : > { %v5795_v63 = vpop.f32.mrb[68].mxu1 }
 0x1d3   : > { %v5796_v50 = vpop.f32.mrb[69].mxu1  ;;  %v7963_v18 = vadd.f32 %v5864_v57, %v7870_v46 }
 0x1d4   : > { %v5797_v53 = vadd.f32 %v5796_v50, %v5795_v63  ;;  %v5798_v14 = vpop.f32.mrb[70].mxu1 }
 0x1d5   : > { %v5799_v48 = vpop.f32.mrb[71].mxu1  ;;  %v5865_v40 = vpop.f32.mrb[72].mxu0 }
 0x1d6   : > { %v7954_v29 = vadd.f32 %v5797_v53, %v7764_v15  ;;  %v5800_v24 = vadd.f32 %v5799_v48, %v5798_v14  ;;  %v5866_v15 = vpop.f32.mrb[73].mxu0 }
 0x1d7   : > { %v5867_v49 = vadd.f32 %v5866_v15, %v5865_v40  ;;  %v5868_v4 = vpop.f32.mrb[74].mxu0 }
 0x1d8   : > { %v7960_v13 = vadd.f32 %v5800_v24, %v7768_v21  ;;  %v5869_v62 = vpop.f32.mrb[75].mxu0 }
 0x1d9   : > { %v7969_v21 = vadd.f32 %v5867_v49, %v7877_v3  ;;  %v5870_v5 = vadd.f32 %v5869_v62, %v5868_v4 }
 0x1da   : > { %v5801_v34 = vpop.f32.mrb[72].mxu1 }
 0x1db   : > { %v5802_v1 = vpop.f32.mrb[73].mxu1  ;;  %v7975_v39 = vadd.f32 %v5870_v5, %v7880_v35  ;;  %v6884_v35 = vld [vmem:[#allocation5 + $0x150] sm:$0xff]  }
 0x1dc   : > { %v5803_v45 = vadd.f32 %v5802_v1, %v5801_v34  ;;  %v5804_v27 = vpop.f32.mrb[74].mxu1  ;;  %6289 = vmatprep.subr.bf16.mxu1 %v6884_v35 }
 0x1dd   : > { %v5805_v0 = vpop.f32.mrb[75].mxu1  ;;  %v5871_v10 = vpop.f32.mrb[76].mxu0  ;;  %6290 = vmatpush3.bf16.msra.mxu1 %v6885_v25 }
 0x1de   : > { %v7966_v2 = vadd.f32 %v5803_v45, %v7776_v52  ;;  %v5806_v46 = vadd.f32 %v5805_v0, %v5804_v27  ;;  %v5872_v33 = vpop.f32.mrb[77].mxu0 }
 0x1df   : > { %v5873_v38 = vadd.f32 %v5872_v33, %v5871_v10  ;;  %v5874_v52 = vpop.f32.mrb[78].mxu0  ;;  %v6889_v10 = vld [vmem:[#allocation5 + $0x118] sm:$0xff]  }
 0x1e0   : > { %v7972_v47 = vadd.f32 %v5806_v46, %v7780_v42  ;;  %v5875_v14 = vpop.f32.mrb[79].mxu0 }
 0x1e1   : > { %v7981_v16 = vadd.f32 %v5873_v38, %v7887_v11  ;;  %v5876_v48 = vadd.f32 %v5875_v14, %v5874_v52 }
 0x1e2   : > { %v5807_v51 = vpop.f32.mrb[76].mxu1 }
 0x1e3   : > { %v5808_v63 = vpop.f32.mrb[77].mxu1  ;;  %v7987_v57 = vadd.f32 %v5876_v48, %v7890_v54 }
 0x1e4   : > { %v5809_v50 = vadd.f32 %v5808_v63, %v5807_v51  ;;  %v5810_v53 = vpop.f32.mrb[78].mxu1  ;;  %v6888_v51 = vld [vmem:[#allocation5 + $0x158] sm:$0xff]  }
 0x1e5   : > { %v5811_v7 = vpop.f32.mrb[79].mxu1  ;;  %v5877_v23 = vpop.f32.mrb[80].mxu0  ;;  %6291 = vmatprep.subr.bf16.mxu1 %v6888_v51 }
 0x1e6   : > { %v7978_v3 = vadd.f32 %v5809_v50, %v7788_v28  ;;  %v5812_v42 = vadd.f32 %v5811_v7, %v5810_v53  ;;  %v5878_v34 = vpop.f32.mrb[81].mxu0  ;;  %6292 = vmatpush3.bf16.msra.mxu1 %v6889_v10 }
 0x1e7   : > { %v5879_v40 = vadd.f32 %v5878_v34, %v5877_v23  ;;  %v5880_v11 = vpop.f32.mrb[82].mxu0  ;;  %v6892_v23 = vld [vmem:[#allocation5 + $0x160] sm:$0xff]  }
 0x1e8   : > { %v7984_v24 = vadd.f32 %v5812_v42, %v7792_v43  ;;  %v5881_v45 = vpop.f32.mrb[83].mxu0  ;;  %6293 = vmatprep.subr.bf16.mxu1 %v6892_v23 }
 0x1e9   : > { %v7990_v27 = vadd.f32 %v5879_v40, %v7893_v6  ;;  %v5882_v43 = vadd.f32 %v5881_v45, %v5880_v11 }
 0x1ea   : > { %v5941_v44 = vpop.f32.mrb[80].mxu1 }
 0x1eb   : > { %v5942_v28 = vpop.f32.mrb[81].mxu1  ;;  %v7996_v0 = vadd.f32 %v5882_v43, %v7899_v19 }
 0x1ec   : > { %v5943_v1 = vadd.f32 %v5942_v28, %v5941_v44  ;;  %v5944_v15 = vpop.f32.mrb[82].mxu1  ;;  %v6893_v44 = vld [vmem:[#allocation5 + $0x120] sm:$0xff]  }
 0x1ed   : > { %v5945_v49 = vpop.f32.mrb[83].mxu1  ;;  %v5883_v46 = vpop.f32.mrb[84].mxu0  ;;  %6294 = vmatpush3.bf16.msra.mxu1 %v6893_v44 }
 0x1ee   : > { %v5946_v4 = vadd.f32 %v5945_v49, %v5944_v15  ;;  %v7993_v54 = vadd.f32 %v5943_v1, %v7896_v32  ;;  %v5884_v63 = vpop.f32.mrb[85].mxu0 }
 0x1ef   : > { %v5885_v50 = vadd.f32 %v5884_v63, %v5883_v46  ;;  %v5886_v38 = vpop.f32.mrb[86].mxu0 }
 0x1f0   : > { %v7999_v62 = vadd.f32 %v5946_v4, %v7902_v41  ;;  %v5887_v52 = vpop.f32.mrb[87].mxu0 }
 0x1f1   : > { %v8002_v19 = vadd.f32 %v5885_v50, %v7905_v61  ;;  %v5888_v7 = vadd.f32 %v5887_v52, %v5886_v38 }
 0x1f2   : > { %v5947_v5 = vpop.f32.mrb[84].mxu1 }
 0x1f3   : > { %v5948_v33 = vpop.f32.mrb[85].mxu1  ;;  %v8008_v42 = vadd.f32 %v5888_v7, %v7912_v55 }
 0x1f4   : > { %v5949_v6 = vadd.f32 %v5948_v33, %v5947_v5  ;;  %v5950_v53 = vpop.f32.mrb[86].mxu1 }
 0x1f5   : > { %v5951_v32 = vpop.f32.mrb[87].mxu1  ;;  %v5889_v35 = vpop.f32.mrb[88].mxu0 }
 0x1f6   : > { %v5952_v41 = vadd.f32 %v5951_v32, %v5950_v53  ;;  %v8005_v14 = vadd.f32 %v5949_v6, %v7908_v36  ;;  %v5890_v34 = vpop.f32.mrb[89].mxu0 }
 0x1f7   : > { %v5891_v40 = vadd.f32 %v5890_v34, %v5889_v35  ;;  %v5892_v1 = vpop.f32.mrb[90].mxu0  ;;  %v6896_v35 = vld [vmem:[#allocation5 + $0x168] sm:$0xff]  }
 0x1f8   : > { %v8011_v48 = vadd.f32 %v5952_v41, %v7915_v56  ;;  %v5893_v15 = vpop.f32.mrb[91].mxu0  ;;  %6295 = vmatprep.subr.bf16.mxu1 %v6896_v35 }
 0x1f9   : > { %v8014_v55 = vadd.f32 %v5891_v40, %v7918_v8  ;;  %v5894_v45 = vadd.f32 %v5893_v15, %v5892_v1 }
 0x1fa   : > { %v5953_v25 = vpop.f32.mrb[88].mxu1 }
 0x1fb   : > { %v5954_v28 = vpop.f32.mrb[89].mxu1  ;;  %v8020_v43 = vadd.f32 %v5894_v45, %v7924_v26 }
 0x1fc   : > { %v5955_v61 = vadd.f32 %v5954_v28, %v5953_v25  ;;  %v5956_v11 = vpop.f32.mrb[90].mxu1  ;;  %v6897_v25 = vld [vmem:[#allocation5 + $0x128] sm:$0xff]  }
 0x1fd   : > { %v5957_v36 = vpop.f32.mrb[91].mxu1  ;;  %v5895_v46 = vpop.f32.mrb[92].mxu0  ;;  %6296 = vmatpush3.bf16.msra.mxu1 %v6897_v25 }
 0x1fe   : > { %v5958_v56 = vadd.f32 %v5957_v36, %v5956_v11  ;;  %v8017_v49 = vadd.f32 %v5955_v61, %v7921_v58  ;;  %v5896_v51 = vpop.f32.mrb[93].mxu0 }
 0x1ff   : > { %v5897_v63 = vadd.f32 %v5896_v51, %v5895_v46  ;;  %v5898_v50 = vpop.f32.mrb[94].mxu0 }
 0x200   : > { %v8023_v4 = vadd.f32 %v5958_v56, %v7927_v31  ;;  %v5899_v6 = vpop.f32.mrb[95].mxu0 }
 0x201   : > { %v8026_v53 = vadd.f32 %v5897_v63, %v7930_v22  ;;  %v5900_v58 = vadd.f32 %v5899_v6, %v5898_v50 }
 0x202   : > { %v5959_v5 = vpop.f32.mrb[92].mxu1 }
 0x203   : > { %v5960_v10 = vpop.f32.mrb[93].mxu1  ;;  %v8032_v31 = vadd.f32 %v5900_v58, %v7936_v9 }
 0x204   : > { %v5961_v33 = vadd.f32 %v5960_v10, %v5959_v5  ;;  %v5962_v8 = vpop.f32.mrb[94].mxu1 }
 0x205   : > { %v5963_v38 = vpop.f32.mrb[95].mxu1  ;;  %v5901_v7 = vpop.f32.mrb[96].mxu0 }
 0x206   : > { %v5964_v52 = vadd.f32 %v5963_v38, %v5962_v8  ;;  %v8029_v26 = vadd.f32 %v5961_v33, %v7933_v30  ;;  %v5902_v23 = vpop.f32.mrb[97].mxu0 }
 0x207   : > { %v5903_v34 = vadd.f32 %v5902_v23, %v5901_v7  ;;  %v5904_v28 = vpop.f32.mrb[98].mxu0  ;;  %v6900_v7 = vld [vmem:[#allocation5 + $0x170] sm:$0xff]  }
 0x208   : > { %v8035_v32 = vadd.f32 %v5964_v52, %v7939_v12  ;;  %v5905_v61 = vpop.f32.mrb[99].mxu0  ;;  %6297 = vmatprep.subr.bf16.mxu1 %v6900_v7 }
 0x209   : > { %v8038_v9 = vadd.f32 %v5903_v34, %v7942_v60  ;;  %v5906_v1 = vadd.f32 %v5905_v61, %v5904_v28 }
 0x20a   : > { %v5965_v41 = vpop.f32.mrb[96].mxu1 }
 0x20b   : > { %v5966_v44 = vpop.f32.mrb[97].mxu1  ;;  %v8044_v15 = vadd.f32 %v5906_v1, %v7948_v17 }
 0x20c   : > { %v5967_v22 = vadd.f32 %v5966_v44, %v5965_v41  ;;  %v5968_v40 = vpop.f32.mrb[98].mxu1  ;;  %v6901_v41 = vld [vmem:[#allocation5 + $0x130] sm:$0xff]  }
 0x20d   : > { %v5969_v30 = vpop.f32.mrb[99].mxu1  ;;  %v5907_v45 = vpop.f32.mrb[100].mxu0  ;;  %6298 = vmatpush3.bf16.msra.mxu1 %v6901_v41 }
 0x20e   : > { %v5970_v12 = vadd.f32 %v5969_v30, %v5968_v40  ;;  %v8041_v11 = vadd.f32 %v5967_v22, %v7945_v59  ;;  %v5908_v46 = vpop.f32.mrb[101].mxu0 }
 0x20f   : > { %v5909_v51 = vadd.f32 %v5908_v46, %v5907_v45  ;;  %v5910_v63 = vpop.f32.mrb[102].mxu0 }
 0x210   : > { %v8047_v36 = vadd.f32 %v5970_v12, %v7951_v20  ;;  %v5911_v33 = vpop.f32.mrb[103].mxu0 }
 0x211   : > { %v8050_v8 = vadd.f32 %v5909_v51, %v7954_v29  ;;  %v5912_v59 = vadd.f32 %v5911_v33, %v5910_v63 }
 0x212   : > { %v5971_v56 = vpop.f32.mrb[100].mxu1 }
 0x213   : > { %v5972_v5 = vpop.f32.mrb[101].mxu1  ;;  %v8056_v20 = vadd.f32 %v5912_v59, %v7960_v13 }
 0x214   : > { %v5973_v10 = vadd.f32 %v5972_v5, %v5971_v56  ;;  %v5974_v60 = vpop.f32.mrb[102].mxu1 }
 0x215   : > { %v5975_v50 = vpop.f32.mrb[103].mxu1  ;;  %v5913_v58 = vpop.f32.mrb[104].mxu0 }
 0x216   : > { %v5976_v6 = vadd.f32 %v5975_v50, %v5974_v60  ;;  %v8053_v17 = vadd.f32 %v5973_v10, %v7957_v37  ;;  %v5914_v35 = vpop.f32.mrb[105].mxu0 }
 0x217   : > { %v5915_v23 = vadd.f32 %v5914_v35, %v5913_v58  ;;  %v5916_v44 = vpop.f32.mrb[106].mxu0  ;;  %v8088_v58 = vld [vmem:[%s8871_s2] ss:$0 sm:$0xff] }
 0x218   : > { %v8059_v38 = vadd.f32 %v5976_v6, %v7963_v18  ;;  %v5917_v22 = vpop.f32.mrb[107].mxu0 }
 0x219   : > { %v8062_v13 = vadd.f32 %v5915_v23, %v7966_v2  ;;  %v5918_v28 = vadd.f32 %v5917_v22, %v5916_v44 }
 0x21a   : > { %v5977_v52 = vpop.f32.mrb[104].mxu1 }
 0x21b   : > { %v5978_v25 = vpop.f32.mrb[105].mxu1  ;;  %v8068_v61 = vadd.f32 %v5918_v28, %v7972_v47 }
 0x21c   : > { %v5979_v29 = vadd.f32 %v5978_v25, %v5977_v52  ;;  %v5980_v34 = vpop.f32.mrb[106].mxu1  ;;  %v6905_v52 = vld [vmem:[#allocation5 + $0x138] sm:$0xff]  }
 0x21d   : > { %v5981_v37 = vpop.f32.mrb[107].mxu1  ;;  %v5919_v1 = vpop.f32.mrb[108].mxu0 }
 0x21e   : > { %v5982_v18 = vadd.f32 %v5981_v37, %v5980_v34  ;;  %v8065_v40 = vadd.f32 %v5979_v29, %v7969_v21  ;;  %v5920_v45 = vpop.f32.mrb[109].mxu0 }
 0x21f   : > { %v5921_v46 = vadd.f32 %v5920_v45, %v5919_v1  ;;  %v5922_v51 = vpop.f32.mrb[110].mxu0 }
 0x220   : > { %v8071_v30 = vadd.f32 %v5982_v18, %v7975_v39  ;;  %v5923_v10 = vpop.f32.mrb[111].mxu0 }
 0x221   : > { %v8074_v60 = vadd.f32 %v5921_v46, %v7978_v3  ;;  %v5924_v21 = vadd.f32 %v5923_v10, %v5922_v51  ;;  %v6904_v3 = vld [vmem:[#allocation5 + $0x178] sm:$0xff]  }
 0x222   : > { %v5983_v12 = vpop.f32.mrb[108].mxu1  ;;  %6299 = vmatprep.subr.bf16.mxu1 %v6904_v3 }
 0x223   : > { %v5984_v56 = vpop.f32.mrb[109].mxu1  ;;  %v8080_v39 = vadd.f32 %v5924_v21, %v7984_v24  ;;  %v8094_v24 = vld [vmem:[%s8871_s2 + $0x1] ss:$0 sm:$0xff]  ;;  %6300 = vmatpush3.bf16.msra.mxu1 %v6905_v52 }
 0x224   : > { %v5985_v5 = vadd.f32 %v5984_v56, %v5983_v12  ;;  %v5986_v2 = vpop.f32.mrb[110].mxu1 }
 0x225   : > { %v5987_v63 = vpop.f32.mrb[111].mxu1  ;;  %v6575_v6 = vpop.f32.mrb[112].mxu0 }
 0x226   : > { %v5988_v33 = vadd.f32 %v5987_v63, %v5986_v2  ;;  %v8077_v47 = vadd.f32 %v5985_v5, %v7981_v16  ;;  %v2397_v7 = vadd.f32 %v6575_v6, %v8005_v14  ;;  %v2388_v16 = vpop.f32.mrb[113].mxu0 }
 0x227   : > { %v2389_v35 = vadd.f32 %v2388_v16, %v7993_v54  ;;  %v6576_v23 = vpop.f32.mrb[114].mxu0 }
 0x228   : > { %v8083_v50 = vadd.f32 %v5988_v33, %v7987_v57  ;;  %v2522_v29 = vmul.f32 %v8088_v58, %v2397_v7  ;;  %v2400_v44 = vadd.f32 %v6576_v23, %v8011_v48  ;;  %v2391_v22 = vpop.f32.mrb[115].mxu0 }
 0x229   : > { %v2520_v14 = vmul.f32 %v8088_v58, %v2389_v35  ;;  %v2392_v28 = vadd.f32 %v2391_v22, %v7999_v62 }
 0x22a   : > { %v5989_v59 = vpop.f32.mrb[112].mxu1  ;;  %v2559_v54 = vadd.f32 %v8094_v24, %v2522_v29  ;;  %v2523_v1 = vmul.f32 %v8088_v58, %v2400_v44 }
 0x22b   : > { %v5990_v41 = vpop.f32.mrb[113].mxu1  ;;  %v2557_v12 = vadd.f32 %v8094_v24, %v2520_v14  ;;  %v2521_v45 = vmul.f32 %v8088_v58, %v2392_v28 }
 0x22c   : > { %v5991_v57 = vadd.f32 %v5990_v41, %v5989_v59  ;;  %v5992_v25 = vpop.f32.mrb[114].mxu1  ;;  %v2591_v56 = vmax.f32 %v2559_v54, 0.0  ;;  %v2560_v46 = vadd.f32 %v8094_v24, %v2523_v1 }
 0x22d   : > { %v5993_v34 = vpop.f32.mrb[115].mxu1  ;;  %v2589_v5 = vmax.f32 %v2557_v12, 0.0  ;;  %v2558_v62 = vadd.f32 %v8094_v24, %v2521_v45  ;;  %v2836_v12 = vld [vmem:[#allocation3 + $0x2] sm:$0xff]  ;;  %v2837_v45 = vld [vmem:[#allocation3 + $0xa] sm:$0xff] }
 0x22e   : > { %v5994_v37 = vadd.f32 %v5993_v34, %v5992_v25  ;;  %v8102_v18 = vadd.f32 %v5991_v57, %v7990_v27  ;;  %v6579_v27 = vpop.f32.mrb[116].mxu0  ;;  %2678 = vst [vmem:[#allocation3 + $0x31] sm:$0xff] %v2591_v56  ;;  %v2592_v2 = vmax.f32 %v2560_v46, 0.0 }
 0x22f   : > { %v2413_v10 = vadd.f32 %v6579_v27, %v8029_v26  ;;  %v2404_v21 = vpop.f32.mrb[117].mxu0  ;;  %2676 = vst [vmem:[#allocation3 + $0x19] sm:$0xff] %v2589_v5  ;;  %v2590_v33 = vmax.f32 %v2558_v62, 0.0 }
 0x230   : > { %v8109_v48 = vadd.f32 %v5994_v37, %v7996_v0  ;;  %v2405_v0 = vadd.f32 %v2404_v21, %v8017_v49  ;;  %v6580_v3 = vpop.f32.mrb[118].mxu0  ;;  %2679 = vst [vmem:[#allocation3 + $0x39] sm:$0xff] %v2592_v2  ;;  %v2806_v57 = vpack.c.bf16 %v2592_v2, %v2591_v56 }
 0x231   : > { %v2526_v52 = vmul.f32 %v8088_v58, %v2413_v10  ;;  %v2416_v7 = vadd.f32 %v6580_v3, %v8035_v32  ;;  %v2407_v16 = vpop.f32.mrb[119].mxu0  ;;  %2677 = vst [vmem:[#allocation3 + $0x21] sm:$0xff] %v2590_v33  ;;  %v2805_v23 = vpack.c.bf16 %v2590_v33, %v2589_v5  ;;  %v2868_v3 = vpack.c.bf16 %v2837_v45, %v2836_v12 }
 0x232   : > { %v5995_v51 = vpop.f32.mrb[116].mxu1  ;;  %v2524_v26 = vmul.f32 %v8088_v58, %v2405_v0  ;;  %v2408_v25 = vadd.f32 %v2407_v16, %v8023_v4 }
 0x233   : > { %v5996_v63 = vpop.f32.mrb[117].mxu1  ;;  %v2563_v29 = vadd.f32 %v8094_v24, %v2526_v52  ;;  %v2527_v49 = vmul.f32 %v8088_v58, %v2416_v7  ;;  %4045 = vmatprep.mubr.bf16.mxu1 %v2805_v23 }
 0x234   : > { %v5997_v59 = vadd.f32 %v5996_v63, %v5995_v51  ;;  %v5998_v6 = vpop.f32.mrb[118].mxu1  ;;  %v2561_v34 = vadd.f32 %v8094_v24, %v2524_v26  ;;  %v2525_v32 = vmul.f32 %v8088_v58, %v2408_v25  ;;  %v6879_v26 = vld [vmem:[#allocation5 + $0x180] sm:$0xff]  }
 0x235   : > { %v5999_v41 = vpop.f32.mrb[119].mxu1  ;;  %v2595_v14 = vmax.f32 %v2563_v29, 0.0  ;;  %v2564_v37 = vadd.f32 %v8094_v24, %v2527_v49  ;;  %v6583_v1 = vpop.f32.mrb[120].mxu0  ;;  %v2902_v16 = vld [vmem:[#allocation3 + $0x30] sm:$0xff]  ;;  %v6882_v29 = vld [vmem:[#allocation5 + $0x1c8] sm:$0xff]  }
 0x236   : > { %v6000_v35 = vadd.f32 %v5999_v41, %v5998_v6  ;;  %v8122_v44 = vadd.f32 %v5997_v59, %v8002_v19  ;;  %v2593_v4 = vmax.f32 %v2561_v34, 0.0  ;;  %v2562_v28 = vadd.f32 %v8094_v24, %v2525_v32  ;;  %v8131_v19 = vld [vmem:[#allocation5 + $0x200] sm:$0xff]   ;;  %v2420_v62 = vpop.f32.mrb[121].mxu0 }
 0x237   : > { %2682 = vst [vmem:[#allocation3 + $0x61] sm:$0xff] %v2595_v14  ;;  %v2596_v56 = vmax.f32 %v2564_v37, 0.0  ;;  %v2429_v46 = vadd.f32 %v6583_v1, %v8053_v17  ;;  %v2421_v27 = vadd.f32 %v2420_v62, %v8041_v11  ;;  %v6584_v10 = vpop.f32.mrb[122].mxu0  ;;  %v2903_v63 = vld [vmem:[#allocation3 + $0x38] sm:$0xff]  ;;  %6605 = vmatprep.subr.bf16.mxu1 %v8131_v19 }
 0x238   : > { %v8127_v22 = vadd.f32 %v6000_v35, %v8008_v42  ;;  %2680 = vst [vmem:[#allocation3 + $0x49] sm:$0xff] %v2593_v4  ;;  %v2594_v42 = vmax.f32 %v2562_v28, 0.0  ;;  %v2432_v33 = vadd.f32 %v6584_v10, %v8059_v38  ;;  %v2423_v0 = vpop.f32.mrb[123].mxu0  ;;  %v2900_v17 = vld [vmem:[#allocation3 + $0x18] sm:$0xff]  ;;  %v2901_v6 = vld [vmem:[#allocation3 + $0x20] sm:$0xff]  ;;  %v2933_v38 = vpack.c.bf16 %v2903_v63, %v2902_v16  ;;  %v6890_v16 = vld [vmem:[#allocation5 + $0x1d8] sm:$0xff]  }
 0x239   : > { %2683 = vst [vmem:[#allocation3 + $0x69] sm:$0xff] %v2596_v56  ;;  %v2530_v21 = vmul.f32 %v8088_v58, %v2429_v46  ;;  %v2528_v52 = vmul.f32 %v8088_v58, %v2421_v27  ;;  %v2424_v11 = vadd.f32 %v2423_v0, %v8047_v36  ;;  %v2932_v41 = vpack.c.bf16 %v2901_v6, %v2900_v17  ;;  %v2838_v62 = vld [vmem:[#allocation3 + $0x1a] sm:$0xff] }
 0x23a   : > { %v6001_v54 = vpop.f32.mrb[120].mxu1  ;;  %2681 = vst [vmem:[#allocation3 + $0x51] sm:$0xff] %v2594_v42  ;;  %v2531_v25 = vmul.f32 %v8088_v58, %v2432_v33  ;;  %v2807_v23 = vpack.c.bf16 %v2594_v42, %v2593_v4  ;;  %v8146_v32 = vpack.c.bf16 %v2596_v56, %v2595_v14  ;;  %v6883_v14 = vld [vmem:[#allocation5 + $0x188] sm:$0xff]   ;;  %v6886_v42 = vld [vmem:[#allocation5 + $0x1d0] sm:$0xff]  }
 0x23b   : > { %v6002_v5 = vpop.f32.mrb[121].mxu1  ;;  %v8141_v35 = vadd.f32 %v8094_v24, %v2530_v21  ;;  %v2565_v49 = vadd.f32 %v8094_v24, %v2528_v52  ;;  %v2529_v34 = vmul.f32 %v8088_v58, %v2424_v11  ;;  %4198 = vmatprep.mubr.bf16.mxu0 %v2932_v41  ;;  %4046 = vmatmul.mubr.bf16.gmra.mrb[148].mxu1 %v2932_v41 }
 0x23c   : > { %v6003_v51 = vadd.f32 %v6002_v5, %v6001_v54  ;;  %v6004_v2 = vpop.f32.mrb[122].mxu1  ;;  %v2568_v37 = vadd.f32 %v8094_v24, %v2531_v25  ;;  %4199 = vmatmul.mubr.bf16.vlgmr.msra.gmra.mrb[144].mxu0 %v2868_v3  ;;  %4053 = vmatprep.mubr.bf16.mxu1 %v2806_v57 }
 0x23d   : > { %v6005_v59 = vpop.f32.mrb[123].mxu1  ;;  %v2599_v36 = vmax.f32 %v8141_v35, 0.0  ;;  %v2597_v54 = vmax.f32 %v2565_v49, 0.0  ;;  %v2566_v1 = vadd.f32 %v8094_v24, %v2529_v34  ;;  %v6587_v45 = vpop.f32.mrb[124].mxu0  ;;  %4206 = vmatprep.mubr.bf16.mxu0 %v2933_v38  ;;  %6398 = vmatpush3.bf16.msra.mxu0 %v6879_v26 }
 0x23e   : > { %v6006_v7 = vadd.f32 %v6005_v59, %v6004_v2  ;;  %v8151_v28 = vadd.f32 %v6003_v51, %v8014_v55  ;;  %v2600_v56 = vmax.f32 %v2568_v37, 0.0  ;;  %v2445_v46 = vadd.f32 %v6587_v45, %v8077_v47  ;;  %v2436_v57 = vpop.f32.mrb[125].mxu0  ;;  %v2839_v55 = vld [vmem:[#allocation3 + $0x22] sm:$0xff]  ;;  %6399 = vmatprep.subr.bf16.mxu0 %v6882_v29 }
 0x23f   : > { %2686 = vst [vmem:[#allocation3 + $0x91] sm:$0xff] %v2599_v36  ;;  %2684 = vst [vmem:[#allocation3 + $0x79] sm:$0xff] %v2597_v54  ;;  %v2437_v27 = vadd.f32 %v2436_v57, %v8065_v40  ;;  %v6588_v10 = vpop.f32.mrb[126].mxu0  ;;  %v8163_v3 = vpack.c.bf16 %v2839_v55, %v2838_v62  ;;  %v2904_v52 = vld [vmem:[#allocation3 + $0x48] sm:$0xff]  ;;  %v6887_v40 = vld [vmem:[#allocation5 + $0x190] sm:$0xff]  }
 0x240   : > { %v8154_v4 = vadd.f32 %v6006_v7, %v8020_v43  ;;  %v2598_v43 = vmax.f32 %v2566_v1, 0.0  ;;  %2687 = vst [vmem:[#allocation3 + $0x99] sm:$0xff] %v2600_v56  ;;  %v2534_v63 = vmul.f32 %v8088_v58, %v2445_v46  ;;  %v2448_v21 = vadd.f32 %v6588_v10, %v8083_v50  ;;  %v2439_v47 = vpop.f32.mrb[127].mxu0  ;;  %v2840_v46 = vld [vmem:[#allocation3 + $0x32] sm:$0xff] }
 0x241   : > { %v2905_v59 = vld [vmem:[#allocation3 + $0x50] sm:$0xff]  ;;  %v2532_v0 = vmul.f32 %v8088_v58, %v2437_v27  ;;  %v2440_v6 = vadd.f32 %v2439_v47, %v8071_v30  ;;  %6400 = vmatpush3.bf16.msra.mxu0 %v6883_v14 }
 0x242   : > { %v6007_v12 = vpop.f32.mrb[124].mxu1  ;;  %2685 = vst [vmem:[#allocation3 + $0x81] sm:$0xff] %v2598_v43  ;;  %v8166_v7 = vadd.f32 %v8094_v24, %v2534_v63  ;;  %v2535_v11 = vmul.f32 %v8088_v58, %v2448_v21  ;;  %v8169_v50 = vpack.c.bf16 %v2905_v59, %v2904_v52  ;;  %6401 = vmatprep.subr.bf16.mxu0 %v6886_v42  ;;  %v2907_v42 = vld [vmem:[#allocation3 + $0x68] sm:$0xff] }
 0x243   : > { %v6008_v5 = vpop.f32.mrb[125].mxu1  ;;  %v2569_v26 = vadd.f32 %v8094_v24, %v2532_v0  ;;  %v2533_v30 = vmul.f32 %v8088_v58, %v2440_v6  ;;  %4054 = vmatmul.mubr.bf16.gmra.mrb[152].mxu1 %v2933_v38  ;;  %v8179_v25 = vpack.c.bf16 %v2598_v43, %v2597_v54 }
 0x244   : > { %v6009_v51 = vadd.f32 %v6008_v5, %v6007_v12  ;;  %v6010_v2 = vpop.f32.mrb[126].mxu1  ;;  %v2603_v29 = vmax.f32 %v8166_v7, 0.0  ;;  %v2572_v49 = vadd.f32 %v8094_v24, %v2535_v11  ;;  %4207 = vmatmul.mubr.bf16.gmra.mrb[148].mxu0 %v8163_v3  ;;  %4061 = vmatprep.mubr.bf16.mxu1 %v2807_v23  ;;  %v2841_v5 = vld [vmem:[#allocation3 + $0x3a] sm:$0xff]  ;;  %v6894_v23 = vld [vmem:[#allocation5 + $0x1e0] sm:$0xff]  }
 0x245   : > { %v6011_v33 = vpop.f32.mrb[127].mxu1  ;;  %v2601_v34 = vmax.f32 %v2569_v26, 0.0  ;;  %v2570_v37 = vadd.f32 %v8094_v24, %v2533_v30  ;;  %v6591_v12 = vpop.f32.mrb[128].mxu0  ;;  %4214 = vmatprep.mubr.bf16.mxu0 %v8169_v50  ;;  %6402 = vmatpush3.bf16.msra.mxu0 %v6887_v40  ;;  %v8194_v21 = vpack.c.bf16 %v2841_v5, %v2840_v46  ;;  %v2843_v46 = vld [vmem:[#allocation3 + $0x52] sm:$0xff] }
 0x246   : > { %v6012_v17 = vadd.f32 %v6011_v33, %v6010_v2  ;;  %v8172_v41 = vadd.f32 %v6009_v51, %v8026_v53  ;;  %v8184_v53 = vpack.c.bf16 %v2600_v56, %v2599_v36  ;;  %2690 = vst [vmem:[#allocation3 + $0xc1] sm:$0xff] %v2603_v29  ;;  %v2604_v38 = vmax.f32 %v2572_v49, 0.0  ;;  %v2452_v14 = vpop.f32.mrb[129].mxu0  ;;  %6403 = vmatprep.subr.bf16.mxu0 %v6890_v16  ;;  %v2906_v33 = vld [vmem:[#allocation3 + $0x60] sm:$0xff] }
 0x247   : > { %v2461_v54 = vadd.f32 %v6591_v12, %v8122_v44  ;;  %2688 = vst [vmem:[#allocation3 + $0xa9] sm:$0xff] %v2601_v34  ;;  %v2602_v36 = vmax.f32 %v2570_v37, 0.0  ;;  %v2453_v57 = vadd.f32 %v2452_v14, %v8102_v18  ;;  %v6592_v55 = vpop.f32.mrb[130].mxu0  ;;  %v6895_v18 = vld [vmem:[#allocation5 + $0x1a0] sm:$0xff]   ;;  %v8200_v0 = vpack.c.bf16 %v2907_v42, %v2906_v33  ;;  %v2908_v42 = vld [vmem:[#allocation3 + $0x78] sm:$0xff] }
 0x248   : > { %v8177_v35 = vadd.f32 %v6012_v17, %v8032_v31  ;;  %v6891_v31 = vld [vmem:[#allocation5 + $0x198] sm:$0xff]   ;;  %2691 = vst [vmem:[#allocation3 + $0xc9] sm:$0xff] %v2604_v38  ;;  %v2464_v51 = vadd.f32 %v6592_v55, %v8127_v22  ;;  %v2455_v27 = vpop.f32.mrb[131].mxu0  ;;  %v6898_v17 = vld [vmem:[#allocation5 + $0x1e8] sm:$0xff]  }
 0x249   : > { %v2538_v43 = vmul.f32 %v8088_v58, %v2461_v54  ;;  %2689 = vst [vmem:[#allocation3 + $0xb1] sm:$0xff] %v2602_v36  ;;  %v2536_v2 = vmul.f32 %v8088_v58, %v2453_v57  ;;  %v2456_v63 = vadd.f32 %v2455_v27, %v8109_v48  ;;  %6404 = vmatpush3.bf16.msra.mxu0 %v6891_v31  ;;  %v6902_v31 = vld [vmem:[#allocation5 + $0x1f0] sm:$0xff]   ;;  %v2842_v14 = vld [vmem:[#allocation3 + $0x4a] sm:$0xff] }
 0x24a   : > { %v6013_v1 = vpop.f32.mrb[128].mxu1  ;;  %v2539_v59 = vmul.f32 %v8088_v58, %v2464_v51  ;;  %6405 = vmatprep.subr.bf16.mxu0 %v6894_v23  ;;  %v8211_v40 = vpack.c.bf16 %v2602_v36, %v2601_v34  ;;  %v2909_v5 = vld [vmem:[#allocation3 + $0x80] sm:$0xff]  ;;  %v8232_v27 = vpack.c.bf16 %v2843_v46, %v2842_v14 }
 0x24b   : > { %v6014_v45 = vpop.f32.mrb[129].mxu1  ;;  %v8197_v47 = vadd.f32 %v8094_v24, %v2538_v43  ;;  %v2573_v6 = vadd.f32 %v8094_v24, %v2536_v2  ;;  %v2537_v48 = vmul.f32 %v8088_v58, %v2456_v63  ;;  %4062 = vmatmul.mubr.bf16.gmra.mrb[156].mxu1 %v8169_v50  ;;  %v6903_v43 = vld [vmem:[#allocation5 + $0x1b0] sm:$0xff]   ;;  %v6906_v2 = vld [vmem:[#allocation5 + $0x1f8] sm:$0xff]  }
 0x24c   : > { %v6015_v56 = vadd.f32 %v6014_v45, %v6013_v1  ;;  %v6016_v62 = vpop.f32.mrb[130].mxu1  ;;  %v2576_v11 = vadd.f32 %v8094_v24, %v2539_v59  ;;  %4215 = vmatmul.mubr.bf16.gmra.mrb[152].mxu0 %v8194_v21  ;;  %4069 = vmatprep.mubr.bf16.mxu1 %v8146_v32 }
 0x24d   : > { %v6017_v44 = vpop.f32.mrb[131].mxu1  ;;  %v2607_v7 = vmax.f32 %v8197_v47, 0.0  ;;  %v2605_v16 = vmax.f32 %v2573_v6, 0.0  ;;  %v2574_v26 = vadd.f32 %v8094_v24, %v2537_v48  ;;  %v6595_v49 = vpop.f32.mrb[132].mxu0  ;;  %4222 = vmatprep.mubr.bf16.mxu0 %v8200_v0  ;;  %6406 = vmatpush3.bf16.msra.mxu0 %v6895_v18 }
 0x24e   : > { %v6018_v10 = vadd.f32 %v6017_v44, %v6016_v62  ;;  %v8203_v22 = vadd.f32 %v6015_v56, %v8038_v9  ;;  %v8217_v9 = vpack.c.bf16 %v2604_v38, %v2603_v29  ;;  %v2608_v34 = vmax.f32 %v2576_v11, 0.0  ;;  %v2468_v12 = vpop.f32.mrb[133].mxu0  ;;  %6407 = vmatprep.subr.bf16.mxu0 %v6898_v17 }
 0x24f   : > { %2694 = vst [vmem:[#allocation3 + $0xf1] sm:$0xff] %v2607_v7  ;;  %v2477_v37 = vadd.f32 %v6595_v49, %v8172_v41  ;;  %2692 = vst [vmem:[#allocation3 + $0xd9] sm:$0xff] %v2605_v16  ;;  %v2606_v32 = vmax.f32 %v2574_v26, 0.0  ;;  %v2469_v38 = vadd.f32 %v2468_v12, %v8151_v28  ;;  %v6596_v45 = vpop.f32.mrb[134].mxu0  ;;  %v2845_v12 = vld [vmem:[#allocation3 + $0x6a] sm:$0xff] }
 0x250   : > { %v8209_v52 = vadd.f32 %v6018_v10, %v8044_v15  ;;  %v6899_v15 = vld [vmem:[#allocation5 + $0x1a8] sm:$0xff]   ;;  %2695 = vst [vmem:[#allocation3 + $0xf9] sm:$0xff] %v2608_v34  ;;  %v2480_v36 = vadd.f32 %v6596_v45, %v8177_v35  ;;  %v2471_v56 = vpop.f32.mrb[135].mxu0  ;;  %v8234_v35 = vpack.c.bf16 %v2909_v5, %v2908_v42  ;;  %v8246_v47 = vpack.c.bf16 %v2608_v34, %v2607_v7  ;;  %v2910_v5 = vld [vmem:[#allocation3 + $0x90] sm:$0xff] }
 0x251   : > { %v2542_v23 = vmul.f32 %v8088_v58, %v2477_v37  ;;  %2693 = vst [vmem:[#allocation3 + $0xe1] sm:$0xff] %v2606_v32  ;;  %v2540_v57 = vmul.f32 %v8088_v58, %v2469_v38  ;;  %v2472_v55 = vadd.f32 %v2471_v56, %v8154_v4  ;;  %6408 = vmatpush3.bf16.msra.mxu0 %v6899_v15 }
 0x252   : > { %v6019_v30 = vpop.f32.mrb[132].mxu1  ;;  %v2543_v44 = vmul.f32 %v8088_v58, %v2480_v36  ;;  %6409 = vmatprep.subr.bf16.mxu0 %v6902_v31  ;;  %v8240_v63 = vpack.c.bf16 %v2606_v32, %v2605_v16  ;;  %v2911_v31 = vld [vmem:[#allocation3 + $0x98] sm:$0xff] }
 0x253   : > { %v6020_v1 = vpop.f32.mrb[133].mxu1  ;;  %v8229_v51 = vadd.f32 %v8094_v24, %v2542_v23  ;;  %v2577_v10 = vadd.f32 %v8094_v24, %v2540_v57  ;;  %v2541_v4 = vmul.f32 %v8088_v58, %v2472_v55  ;;  %4070 = vmatmul.mubr.bf16.gmra.mrb[160].mxu1 %v8200_v0  ;;  %v8264_v56 = vpack.c.bf16 %v2911_v31, %v2910_v5  ;;  %v2848_v5 = vld [vmem:[#allocation3 + $0x92] sm:$0xff] }
 0x254   : > { %v6021_v29 = vadd.f32 %v6020_v1, %v6019_v30  ;;  %v6022_v54 = vpop.f32.mrb[134].mxu1  ;;  %v2580_v18 = vadd.f32 %v8094_v24, %v2543_v44  ;;  %4223 = vmatmul.mubr.bf16.gmra.mrb[156].mxu0 %v8232_v27  ;;  %4077 = vmatprep.mubr.bf16.mxu1 %v8179_v25  ;;  %v8253_v25 = vld [vmem:[%s8874_s5] sm:$0xff]   ;;  %v2844_v1 = vld [vmem:[#allocation3 + $0x62] sm:$0xff] }
 0x255   : > { %v6023_v41 = vpop.f32.mrb[135].mxu1  ;;  %v2611_v33 = vmax.f32 %v8229_v51, 0.0  ;;  %v2609_v59 = vmax.f32 %v2577_v10, 0.0  ;;  %v2578_v17 = vadd.f32 %v8094_v24, %v2541_v4  ;;  %v6599_v48 = vpop.f32.mrb[136].mxu0  ;;  %4230 = vmatprep.mubr.bf16.mxu0 %v8234_v35  ;;  %6410 = vmatpush3.bf16.msra.mxu0 %v6903_v43 }
 0x256   : > { %v6024_v62 = vadd.f32 %v6023_v41, %v6022_v54  ;;  %v2332_v28 = vadd.f32 %v6021_v29, %v8050_v8  ;;  %v2612_v11 = vmax.f32 %v2580_v18, 0.0  ;;  %v2484_v30 = vpop.f32.mrb[137].mxu0  ;;  %6411 = vmatprep.subr.bf16.mxu0 %v6906_v2  ;;  %v8262_v41 = vpack.c.bf16 %v2845_v12, %v2844_v1 }
 0x257   : > { %2698 = vst [vmem:[#allocation3 + $0x121] sm:$0xff] %v2611_v33  ;;  %2696 = vst [vmem:[#allocation3 + $0x109] sm:$0xff] %v2609_v59  ;;  %v2610_v7 = vmax.f32 %v2578_v17, 0.0  ;;  %v2485_v15 = vadd.f32 %v2484_v30, %v8203_v22  ;;  %v6600_v37 = vpop.f32.mrb[138].mxu0 }
 0x258   : > { %v2335_v8 = vadd.f32 %v6024_v62, %v8056_v20  ;;  %v6907_v20 = vld [vmem:[#allocation5 + $0x1b8] sm:$0xff]   ;;  %v2493_v16 = vadd.f32 %v6599_v48, %v2332_v28  ;;  %2699 = vst [vmem:[#allocation3 + $0x129] sm:$0xff] %v2612_v11  ;;  %v2487_v54 = vpop.f32.mrb[139].mxu0  ;;  %v8276_v42 = vpack.c.bf16 %v2612_v11, %v2611_v33  ;;  %v2913_v48 = vld [vmem:[#allocation3 + $0xb0] sm:$0xff] }
 0x259   : > { %2697 = vst [vmem:[#allocation3 + $0x111] sm:$0xff] %v2610_v7  ;;  %v2544_v45 = vmul.f32 %v8088_v58, %v2485_v15  ;;  %v2488_v46 = vadd.f32 %v2487_v54, %v8209_v52  ;;  %6412 = vmatpush3.bf16.msra.mxu0 %v6907_v20  ;;  %v2847_v33 = vld [vmem:[#allocation3 + $0x82] sm:$0xff] }
 0x25a   : > { %v6025_v6 = vpop.f32.mrb[136].mxu1  ;;  %v2546_v32 = vmul.f32 %v8088_v58, %v2493_v16  ;;  %v2496_v29 = vadd.f32 %v6600_v37, %v2335_v8  ;;  %6653 = vmatprep.subr.bf16.mxu0 %v8253_v25  ;;  %v2912_v15 = vld [vmem:[#allocation3 + $0xa8] sm:$0xff] }
 0x25b   : > { %v6026_v26 = vpop.f32.mrb[137].mxu1  ;;  %v2581_v57 = vadd.f32 %v8094_v24, %v2544_v45  ;;  %v2545_v62 = vmul.f32 %v8088_v58, %v2488_v46  ;;  %4078 = vmatmul.mubr.bf16.gmra.mrb[164].mxu1 %v8234_v35  ;;  %v8286_v37 = vpack.c.bf16 %v2913_v48, %v2912_v15 }
 0x25c   : > { %v6027_v49 = vadd.f32 %v6026_v26, %v6025_v6  ;;  %v6028_v34 = vpop.f32.mrb[138].mxu1  ;;  %v2583_v23 = vadd.f32 %v8094_v24, %v2546_v32  ;;  %v2547_v36 = vmul.f32 %v8088_v58, %v2496_v29  ;;  %4231 = vmatmul.mubr.bf16.gmra.mrb[160].mxu0 %v8262_v41  ;;  %4085 = vmatprep.mubr.bf16.mxu1 %v8184_v53  ;;  %v2846_v53 = vld [vmem:[#allocation3 + $0x7a] sm:$0xff] }
 0x25d   : > { %v6029_v38 = vpop.f32.mrb[139].mxu1  ;;  %v2613_v43 = vmax.f32 %v2581_v57, 0.0  ;;  %v2582_v51 = vadd.f32 %v8094_v24, %v2545_v62  ;;  %v6603_v2 = vpop.f32.mrb[140].mxu0  ;;  %4238 = vmatprep.mubr.bf16.mxu0 %v8264_v56  ;;  %v2914_v62 = vld [vmem:[#allocation3 + $0xc0] sm:$0xff] }
 0x25e   : > { %v6030_v14 = vadd.f32 %v6029_v38, %v6028_v34  ;;  %v2340_v22 = vadd.f32 %v6027_v49, %v8062_v13  ;;  %v8271_v13 = vpack.c.bf16 %v2610_v7, %v2609_v59  ;;  %v2615_v55 = vmax.f32 %v2583_v23, 0.0  ;;  %v2500_v4 = vpop.f32.mrb[141].mxu0  ;;  %v2915_v23 = vld [vmem:[#allocation3 + $0xc8] sm:$0xff] }
 0x25f   : > { %v2584_v28 = vadd.f32 %v8094_v24, %v2547_v36  ;;  %2700 = vst [vmem:[#allocation3 + $0x139] sm:$0xff] %v2613_v43  ;;  %v2614_v8 = vmax.f32 %v2582_v51, 0.0  ;;  %v6604_v6 = vpop.f32.mrb[142].mxu0  ;;  %v8284_v34 = vpack.c.bf16 %v2847_v33, %v2846_v53  ;;  %v2920_v53 = vld [vmem:[#allocation3 + $0x108] sm:$0xff] }
 0x260   : > { %v2343_v52 = vadd.f32 %v6030_v14, %v8068_v61  ;;  %2702 = vst [vmem:[#allocation3 + $0x151] sm:$0xff] %v2615_v55  ;;  %v2501_v59 = vadd.f32 %v2500_v4, %v2340_v22  ;;  %v2503_v11 = vpop.f32.mrb[143].mxu0  ;;  %v2849_v22 = vld [vmem:[#allocation3 + $0x9a] sm:$0xff] }
 0x261   : > { %v2616_v61 = vmax.f32 %v2584_v28, 0.0  ;;  %2701 = vst [vmem:[#allocation3 + $0x141] sm:$0xff] %v2614_v8  ;;  %v8288_v1 = vpack.c.bf16 %v2614_v8, %v2613_v43  ;;  %v8302_v57 = vpack.c.bf16 %v2849_v22, %v2848_v5  ;;  %v8307_v28 = vpack.c.bf16 %v2915_v23, %v2914_v62  ;;  %v2917_v43 = vld [vmem:[#allocation3 + $0xe0] sm:$0xff]  ;;  %v2918_v8 = vld [vmem:[#allocation3 + $0xf0] sm:$0xff] }
 0x262   : > { %v6031_v44 = vpop.f32.mrb[140].mxu1  ;;  %v2548_v30 = vmul.f32 %v8088_v58, %v2501_v59  ;;  %v2504_v49 = vadd.f32 %v2503_v11, %v2343_v52  ;;  %v2854_v59 = vld [vmem:[#allocation3 + $0xda] sm:$0xff] }
 0x263   : > { %v6032_v10 = vpop.f32.mrb[141].mxu1  ;;  %2703 = vst [vmem:[#allocation3 + $0x159] sm:$0xff] %v2616_v61  ;;  %v8280_v16 = vpack.c.bf16 %v2616_v61, %v2615_v55  ;;  %4086 = vmatmul.mubr.bf16.gmra.mrb[168].mxu1 %v8264_v56  ;;  %v2853_v61 = vld [vmem:[#allocation3 + $0xca] sm:$0xff]  ;;  %v2857_v11 = vld [vmem:[#allocation3 + $0xfa] sm:$0xff] }
 0x264   : > { %v6033_v18 = vadd.f32 %v6032_v10, %v6031_v44  ;;  %v6034_v17 = vpop.f32.mrb[142].mxu1  ;;  %v2585_v31 = vadd.f32 %v8094_v24, %v2548_v30  ;;  %v2549_v29 = vmul.f32 %v8088_v58, %v2504_v49  ;;  %4239 = vmatmul.mubr.bf16.gmra.mrb[164].mxu0 %v8284_v34  ;;  %4093 = vmatprep.mubr.bf16.mxu1 %v8211_v40  ;;  %v2916_v44 = vld [vmem:[#allocation3 + $0xd8] sm:$0xff]  ;;  %v2923_v30 = vld [vmem:[#allocation3 + $0x128] sm:$0xff]  ;;  %v2922_v49 = vld [vmem:[#allocation3 + $0x120] sm:$0xff] }
 0x265   : > { %v6035_v20 = vpop.f32.mrb[143].mxu1  ;;  %4246 = vmatprep.mubr.bf16.mxu0 %v8286_v37  ;;  %v2919_v10 = vld [vmem:[#allocation3 + $0xf8] sm:$0xff]  ;;  %v8341_v15 = vpack.c.bf16 %v2923_v30, %v2922_v49  ;;  %v3093_v30 = vld [vmem:[#allocation3 + $0x30] sm:$0xff] }
 0x266   : > { %v2348_v26 = vadd.f32 %v6033_v18, %v8074_v60  ;;  %v6036_v7 = vadd.f32 %v6035_v20, %v6034_v17  ;;  %v2617_v38 = vmax.f32 %v2585_v31, 0.0  ;;  %v2586_v45 = vadd.f32 %v8094_v24, %v2549_v29  ;;  %v2921_v17 = vld [vmem:[#allocation3 + $0x110] sm:$0xff] }
 0x267   : > { %v8323_v18 = vpack.c.bf16 %v2919_v10, %v2918_v8  ;;  %v8331_v33 = vpack.c.bf16 %v2921_v17, %v2920_v53  ;;  %v2856_v20 = vld [vmem:[#allocation3 + $0xf2] sm:$0xff] }
 0x268   : > { %v2509_v12 = vadd.f32 %v6603_v2, %v2348_v26  ;;  %v2351_v32 = vadd.f32 %v6036_v7, %v8080_v39  ;;  %2704 = vst [vmem:[#allocation3 + $0x169] sm:$0xff] %v2617_v38  ;;  %v2618_v46 = vmax.f32 %v2586_v45, 0.0  ;;  %v8315_v2 = vpack.c.bf16 %v2917_v43, %v2916_v44  ;;  %v2859_v29 = vld [vmem:[#allocation3 + $0x112] sm:$0xff]  ;;  %v2862_v23 = vld [vmem:[#allocation3 + $0x13a] sm:$0xff] }
 0x269   : > { %v8338_v7 = vpack.c.bf16 %v2857_v11, %v2856_v20  ;;  %v2926_v5 = vld [vmem:[#allocation3 + $0x150] sm:$0xff]  ;;  %v2964_v8 = vld [vmem:[#allocation3 + $0x19] sm:$0xff] }
 0x26a   : > { %v2550_v60 = vmul.f32 %v8088_v58, %v2509_v12  ;;  %v2512_v54 = vadd.f32 %v6604_v6, %v2351_v32  ;;  %2705 = vst [vmem:[#allocation3 + $0x171] sm:$0xff] %v2618_v46  ;;  %v8304_v52 = vpack.c.bf16 %v2618_v46, %v2617_v38  ;;  %v2858_v32 = vld [vmem:[#allocation3 + $0x10a] sm:$0xff]  ;;  %v3094_v20 = vld [vmem:[#allocation3 + $0x38] sm:$0xff] }
 0x26b   : > { %4094 = vmatmul.mubr.bf16.gmra.mrb[172].mxu1 %v8286_v37  ;;  %v8348_v38 = vpack.c.bf16 %v2859_v29, %v2858_v32  ;;  %v3157_v53 = vld [vmem:[#allocation3 + $0x31] sm:$0xff]  ;;  %v3125_v49 = vpack.c.bf16 %v3094_v20, %v3093_v30  ;;  %v6914_v29 = vld [vmem:[#allocation5 + $0x218] sm:$0xff]   ;;  %v3182_v30 = vld [vmem:[#allocation3 + $0x159] sm:$0xff] }
 0x26c   : > { %v2587_v14 = vadd.f32 %v8094_v24, %v2550_v60  ;;  %v2551_v39 = vmul.f32 %v8088_v58, %v2512_v54  ;;  %4247 = vmatmul.mubr.bf16.gmra.mrb[168].mxu0 %v8302_v57  ;;  %4101 = vmatprep.mubr.bf16.mxu1 %v8217_v9  ;;  %v2850_v58 = vld [vmem:[#allocation3 + $0xaa] sm:$0xff]  ;;  %v2852_v9 = vld [vmem:[#allocation3 + $0xc2] sm:$0xff]  ;;  %v2924_v54 = vld [vmem:[#allocation3 + $0x138] sm:$0xff] }
 0x26d   : > { %4254 = vmatprep.mubr.bf16.mxu0 %v8307_v28  ;;  %v8320_v4 = vpack.c.bf16 %v2853_v61, %v2852_v9  ;;  %v2925_v60 = vld [vmem:[#allocation3 + $0x140] sm:$0xff]  ;;  %v3160_v11 = vld [vmem:[#allocation3 + $0x51] sm:$0xff] }
 0x26e   : > { %v2619_v36 = vmax.f32 %v2587_v14, 0.0  ;;  %v2588_v40 = vadd.f32 %v8094_v24, %v2551_v39  ;;  %v2851_v24 = vld [vmem:[#allocation3 + $0xb2] sm:$0xff]  ;;  %v8351_v45 = vpack.c.bf16 %v2925_v60, %v2924_v54  ;;  %v2861_v14 = vld [vmem:[#allocation3 + $0x12a] sm:$0xff]  ;;  %v2965_v61 = vld [vmem:[#allocation3 + $0x21] sm:$0xff] }
 0x26f   : > { %v8312_v51 = vpack.c.bf16 %v2851_v24, %v2850_v58  ;;  %v2927_v39 = vld [vmem:[#allocation3 + $0x158] sm:$0xff]  ;;  %v2928_v62 = vld [vmem:[#allocation3 + $0x168] sm:$0xff] }
 0x270   : > { %2706 = vst [vmem:[#allocation3 + $0x181] sm:$0xff] %v2619_v36  ;;  %v2620_v55 = vmax.f32 %v2588_v40, 0.0  ;;  %v8359_v22 = vpack.c.bf16 %v2927_v39, %v2926_v5  ;;  %v2864_v58 = vld [vmem:[#allocation3 + $0x152] sm:$0xff]  ;;  %v3162_v60 = vld [vmem:[#allocation3 + $0x69] sm:$0xff]  ;;  %v3161_v54 = vld [vmem:[#allocation3 + $0x61] sm:$0xff] }
 0x271   : > { %v2929_v36 = vld [vmem:[#allocation3 + $0x170] sm:$0xff]  ;;  %v6920_v39 = vld [vmem:[#allocation5 + $0x230] sm:$0xff]  }
 0x272   : > { %2707 = vst [vmem:[#allocation3 + $0x189] sm:$0xff] %v2620_v55  ;;  %v8367_v55 = vpack.c.bf16 %v2929_v36, %v2928_v62  ;;  %v2867_v10 = vld [vmem:[#allocation3 + $0x172] sm:$0xff]  ;;  %v3164_v5 = vld [vmem:[#allocation3 + $0x81] sm:$0xff] }
 0x273   : > { %4102 = vmatmul.mubr.bf16.gmra.mrb[176].mxu1 %v8307_v28  ;;  %v6921_v36 = vld [vmem:[%s8874_s5 + $0x30] sm:$0xff]  }
 0x274   : > { %4255 = vmatmul.mubr.bf16.gmra.mrb[172].mxu0 %v8312_v51  ;;  %4109 = vmatprep.mubr.bf16.mxu1 %v8240_v63  ;;  %v2855_v63 = vld [vmem:[#allocation3 + $0xe2] sm:$0xff]  ;;  %v3166_v62 = vld [vmem:[#allocation3 + $0x99] sm:$0xff] }
 0x275   : > { %4262 = vmatprep.mubr.bf16.mxu0 %v8315_v2  ;;  %v8328_v6 = vpack.c.bf16 %v2855_v63, %v2854_v59  ;;  %v3158_v59 = vld [vmem:[#allocation3 + $0x39] sm:$0xff]  ;;  %v2996_v63 = vpack.c.bf16 %v2965_v61, %v2964_v8  ;;  %v3170_v61 = vld [vmem:[#allocation3 + $0xc9] sm:$0xff] }
 0x277   : > { %v2930_v44 = vld [vmem:[#allocation3 + $0x180] sm:$0xff] }
 0x279   : > { %v2931_v24 = vld [vmem:[#allocation3 + $0x188] sm:$0xff] }
 0x27a   : > { %v8375_v9 = vpack.c.bf16 %v2931_v24, %v2930_v44  ;;  %v3167_v24 = vld [vmem:[#allocation3 + $0xa9] sm:$0xff] }
 0x27b   : > { %4110 = vmatmul.mubr.bf16.gmra.mrb[180].mxu1 %v8315_v2 }
 0x27c   : > { %4263 = vmatmul.mubr.bf16.gmra.mrb[176].mxu0 %v8320_v4  ;;  %4117 = vmatprep.mubr.bf16.mxu1 %v8246_v47 }
 0x27d   : > { %4270 = vmatprep.mubr.bf16.mxu0 %v8323_v18 }
 0x283   : > { %4118 = vmatmul.mubr.bf16.gmra.mrb[184].mxu1 %v8323_v18 }
 0x284   : > { %4271 = vmatmul.mubr.bf16.gmra.mrb[180].mxu0 %v8328_v6  ;;  %4125 = vmatprep.mubr.bf16.mxu1 %v8271_v13 }
 0x285   : > { %4278 = vmatprep.mubr.bf16.mxu0 %v8331_v33 }
 0x286   : > { %v6077_v48 = vpop.f32.mrb[144].mxu1 }
 0x287   : > { %v6078_v47 = vpop.f32.mrb[145].mxu1 }
 0x288   : > { %v8336_v26 = vadd.f32 %v6078_v47, %v6077_v48  ;;  %v6080_v13 = vpop.f32.mrb[146].mxu1  ;;  %v6910_v48 = vld [vmem:[#allocation5 + $0x208] sm:$0xff]   ;;  %v3189_v47 = vpack.c.bf16 %v3158_v59, %v3157_v53 }
 0x289   : > { %v6081_v12 = vpop.f32.mrb[147].mxu1 }
 0x28a   : > { %v8346_v31 = vadd.f32 %v6081_v12, %v6080_v13  ;;  %v3159_v13 = vld [vmem:[#allocation3 + $0x49] sm:$0xff]  ;;  %v6911_v12 = vld [vmem:[%s8874_s5 + $0x8] sm:$0xff]  }
 0x28b   : > { %4126 = vmatmul.mubr.bf16.gmra.mrb[188].mxu1 %v8331_v33  ;;  %v3190_v32 = vpack.c.bf16 %v3160_v11, %v3159_v13 }
 0x28c   : > { %4279 = vmatmul.mubr.bf16.gmra.mrb[184].mxu0 %v8338_v7  ;;  %4133 = vmatprep.mubr.bf16.mxu1 %v8276_v42  ;;  %v2860_v42 = vld [vmem:[#allocation3 + $0x122] sm:$0xff] }
 0x28d   : > { %4286 = vmatprep.mubr.bf16.mxu0 %v8341_v15  ;;  %v8356_v46 = vpack.c.bf16 %v2861_v14, %v2860_v42  ;;  %v3191_v42 = vpack.c.bf16 %v3162_v60, %v3161_v54  ;;  %v6917_v14 = vld [vmem:[%s8874_s5 + $0x20] sm:$0xff]  }
 0x293   : > { %4134 = vmatmul.mubr.bf16.gmra.mrb[192].mxu1 %v8341_v15 }
 0x294   : > { %4287 = vmatmul.mubr.bf16.gmra.mrb[188].mxu0 %v8348_v38  ;;  %4141 = vmatprep.mubr.bf16.mxu1 %v8288_v1  ;;  %v2863_v1 = vld [vmem:[#allocation3 + $0x142] sm:$0xff] }
 0x295   : > { %4294 = vmatprep.mubr.bf16.mxu0 %v8351_v45  ;;  %v8364_v40 = vpack.c.bf16 %v2863_v1, %v2862_v23  ;;  %v3163_v23 = vld [vmem:[#allocation3 + $0x79] sm:$0xff]  ;;  %v6922_v1 = vld [vmem:[#allocation5 + $0x238] sm:$0xff]  }
 0x29b   : > { %4142 = vmatmul.mubr.bf16.gmra.mrb[196].mxu1 %v8351_v45 }
 0x29c   : > { %4295 = vmatmul.mubr.bf16.gmra.mrb[192].mxu0 %v8356_v46  ;;  %4149 = vmatprep.mubr.bf16.mxu1 %v8280_v16  ;;  %v2865_v16 = vld [vmem:[#allocation3 + $0x15a] sm:$0xff] }
 0x29d   : > { %4302 = vmatprep.mubr.bf16.mxu0 %v8359_v22  ;;  %v8372_v43 = vpack.c.bf16 %v2865_v16, %v2864_v58  ;;  %v3165_v58 = vld [vmem:[#allocation3 + $0x91] sm:$0xff] }
 0x29e   : > { %v3168_v16 = vld [vmem:[#allocation3 + $0xb1] sm:$0xff] }
 0x29f   : > { %v3194_v44 = vpack.c.bf16 %v3168_v16, %v3167_v24 }
 0x2a3   : > { %4150 = vmatmul.mubr.bf16.gmra.mrb[200].mxu1 %v8359_v22 }
 0x2a4   : > { %4303 = vmatmul.mubr.bf16.gmra.mrb[196].mxu0 %v8364_v40  ;;  %4157 = vmatprep.mubr.bf16.mxu1 %v8304_v52  ;;  %v2866_v52 = vld [vmem:[#allocation3 + $0x16a] sm:$0xff] }
 0x2a5   : > { %4310 = vmatprep.mubr.bf16.mxu0 %v8367_v55  ;;  %v8380_v17 = vpack.c.bf16 %v2867_v10, %v2866_v52  ;;  %v3169_v52 = vld [vmem:[#allocation3 + $0xc1] sm:$0xff] }
 0x2a6   : > { %v3195_v10 = vpack.c.bf16 %v3170_v61, %v3169_v52  ;;  %v3186_v61 = vld [vmem:[#allocation3 + $0x189] sm:$0xff] }
 0x2ab   : > { %4158 = vmatmul.mubr.bf16.gmra.mrb[204].mxu1 %v8367_v55 }
 0x2ac   : > { %4311 = vmatmul.mubr.bf16.gmra.mrb[200].mxu0 %v8372_v43  ;;  %4359 = vmatprep.mubr.bf16.mxu1 %v8163_v3  ;;  %v6912_v3 = vld [vmem:[#allocation5 + $0x210] sm:$0xff]  }
 0x2ad   : > { %4318 = vmatprep.mubr.bf16.mxu0 %v8375_v9 }
 0x2b3   : > { %4360 = vmatmul.mubr.bf16.vlgmr.msra.gmra.mrb[208].mxu1 %v2996_v63 }
 0x2b4   : > { %4319 = vmatmul.mubr.bf16.gmra.mrb[204].mxu0 %v8380_v17  ;;  %4367 = vmatprep.mubr.bf16.mxu1 %v8194_v21  ;;  %v6916_v21 = vld [vmem:[#allocation5 + $0x220] sm:$0xff]  }
 0x2b5   : > { %4520 = vmatprep.mubr.bf16.mxu0 %v3189_v47  ;;  %6606 = vmatpush3.bf16.msra.mxu1 %v8131_v19  ;;  %v6913_v19 = vld [vmem:[%s8874_s5 + $0x10] sm:$0xff]  }
 0x2b6   : > { %6607 = vmatprep.subr.bf16.mxu1 %v6910_v48 }
 0x2b9   : > { %6608 = vmatpush3.bf16.msra.mxu1 %v6910_v48 }
 0x2ba   : > { %6609 = vmatprep.subr.bf16.mxu1 %v6912_v3 }
 0x2bb   : > { %4368 = vmatmul.mubr.bf16.gmra.mrb[212].mxu1 %v3189_v47 }
 0x2bc   : > { %4521 = vmatmul.mubr.bf16.vlgmr.msra.gmra.mrb[208].mxu0 %v3125_v49  ;;  %4375 = vmatprep.mubr.bf16.mxu1 %v8232_v27  ;;  %v6915_v27 = vld [vmem:[%s8874_s5 + $0x18] sm:$0xff]  }
 0x2bd   : > { %4528 = vmatprep.mubr.bf16.mxu0 %v3190_v32  ;;  %6654 = vmatpush3.bf16.msra.mxu0 %v8253_v25  ;;  %v6918_v25 = vld [vmem:[#allocation5 + $0x228] sm:$0xff]  }
 0x2be   : > { %6655 = vmatprep.subr.bf16.mxu0 %v6911_v12  ;;  %6610 = vmatpush3.bf16.msra.mxu1 %v6912_v3 }
 0x2bf   : > { %6611 = vmatprep.subr.bf16.mxu1 %v6914_v29 }
 0x2c1   : > { %6656 = vmatpush3.bf16.msra.mxu0 %v6911_v12 }
 0x2c2   : > { %6657 = vmatprep.subr.bf16.mxu0 %v6913_v19  ;;  %6612 = vmatpush3.bf16.msra.mxu1 %v6914_v29 }
 0x2c3   : > { %4376 = vmatmul.mubr.bf16.gmra.mrb[216].mxu1 %v3190_v32  ;;  %6613 = vmatprep.subr.bf16.mxu1 %v6916_v21  ;;  %v3181_v32 = vld [vmem:[#allocation3 + $0x151] sm:$0xff] }
 0x2c4   : > { %4529 = vmatmul.mubr.bf16.gmra.mrb[212].mxu0 %v8169_v50  ;;  %4383 = vmatprep.mubr.bf16.mxu1 %v8262_v41  ;;  %v6919_v50 = vld [vmem:[%s8874_s5 + $0x28] sm:$0xff]   ;;  %v3192_v41 = vpack.c.bf16 %v3164_v5, %v3163_v23 }
 0x2c5   : > { %4536 = vmatprep.mubr.bf16.mxu0 %v3191_v42  ;;  %6658 = vmatpush3.bf16.msra.mxu0 %v6913_v19 }
 0x2c6   : > { %6659 = vmatprep.subr.bf16.mxu0 %v6915_v27  ;;  %6614 = vmatpush3.bf16.msra.mxu1 %v6916_v21 }
 0x2c7   : > { %6615 = vmatprep.subr.bf16.mxu1 %v6918_v25 }
 0x2c9   : > { %6660 = vmatpush3.bf16.msra.mxu0 %v6915_v27 }
 0x2ca   : > { %6661 = vmatprep.subr.bf16.mxu0 %v6917_v14  ;;  %6616 = vmatpush3.bf16.msra.mxu1 %v6918_v25 }
 0x2cb   : > { %4384 = vmatmul.mubr.bf16.gmra.mrb[220].mxu1 %v3191_v42  ;;  %6617 = vmatprep.subr.bf16.mxu1 %v6920_v39 }
 0x2cc   : > { %4537 = vmatmul.mubr.bf16.gmra.mrb[216].mxu0 %v8200_v0  ;;  %4391 = vmatprep.mubr.bf16.mxu1 %v8284_v34  ;;  %v6923_v0 = vld [vmem:[%s8874_s5 + $0x38] sm:$0xff]   ;;  %v3193_v34 = vpack.c.bf16 %v3166_v62, %v3165_v58 }
 0x2cd   : > { %4544 = vmatprep.mubr.bf16.mxu0 %v3192_v41  ;;  %6662 = vmatpush3.bf16.msra.mxu0 %v6917_v14  ;;  %v3184_v14 = vld [vmem:[#allocation3 + $0x171] sm:$0xff] }
 0x2ce   : > { %6663 = vmatprep.subr.bf16.mxu0 %v6919_v50  ;;  %6618 = vmatpush3.bf16.msra.mxu1 %v6920_v39 }
 0x2cf   : > { %6619 = vmatprep.subr.bf16.mxu1 %v6922_v1 }
 0x2d1   : > { %6664 = vmatpush3.bf16.msra.mxu0 %v6919_v50 }
 0x2d2   : > { %6665 = vmatprep.subr.bf16.mxu0 %v6921_v36  ;;  %6620 = vmatpush3.bf16.msra.mxu1 %v6922_v1 }
 0x2d3   : > { %4392 = vmatmul.mubr.bf16.gmra.mrb[224].mxu1 %v3192_v41  ;;  %v3183_v41 = vld [vmem:[#allocation3 + $0x169] sm:$0xff] }
 0x2d4   : > { %4545 = vmatmul.mubr.bf16.gmra.mrb[220].mxu0 %v8234_v35  ;;  %4399 = vmatprep.mubr.bf16.mxu1 %v8302_v57  ;;  %v3172_v35 = vld [vmem:[#allocation3 + $0xe1] sm:$0xff]  ;;  %v3171_v57 = vld [vmem:[#allocation3 + $0xd9] sm:$0xff] }
 0x2d5   : > { %4552 = vmatprep.mubr.bf16.mxu0 %v3193_v34  ;;  %6666 = vmatpush3.bf16.msra.mxu0 %v6921_v36  ;;  %v3196_v8 = vpack.c.bf16 %v3172_v35, %v3171_v57 }
 0x2d6   : > { %6667 = vmatprep.subr.bf16.mxu0 %v6923_v0 }
 0x2d9   : > { %6668 = vmatpush3.bf16.msra.mxu0 %v6923_v0  ;;  %v3058_v0 = vld [vmem:[#allocation3 + $0x182] sm:$0xff] }
 0x2db   : > { %4400 = vmatmul.mubr.bf16.gmra.mrb[228].mxu1 %v3193_v34  ;;  %v3059_v34 = vld [vmem:[#allocation3 + $0x18a] sm:$0xff] }
 0x2dc   : > { %4553 = vmatmul.mubr.bf16.gmra.mrb[224].mxu0 %v8264_v56  ;;  %4407 = vmatprep.mubr.bf16.mxu1 %v8312_v51  ;;  %v3174_v56 = vld [vmem:[#allocation3 + $0xf9] sm:$0xff]  ;;  %v3173_v51 = vld [vmem:[#allocation3 + $0xf1] sm:$0xff] }
 0x2dd   : > { %4560 = vmatprep.mubr.bf16.mxu0 %v3194_v44  ;;  %v3197_v59 = vpack.c.bf16 %v3174_v56, %v3173_v51 }
 0x2e3   : > { %4408 = vmatmul.mubr.bf16.gmra.mrb[232].mxu1 %v3194_v44 }
 0x2e4   : > { %4561 = vmatmul.mubr.bf16.gmra.mrb[228].mxu0 %v8286_v37  ;;  %4415 = vmatprep.mubr.bf16.mxu1 %v8320_v4  ;;  %v3176_v37 = vld [vmem:[#allocation3 + $0x111] sm:$0xff]  ;;  %v3175_v4 = vld [vmem:[#allocation3 + $0x109] sm:$0xff] }
 0x2e5   : > { %4568 = vmatprep.mubr.bf16.mxu0 %v3195_v10  ;;  %v3198_v63 = vpack.c.bf16 %v3176_v37, %v3175_v4 }
 0x2eb   : > { %4416 = vmatmul.mubr.bf16.gmra.mrb[236].mxu1 %v3195_v10 }
 0x2ec   : > { %4569 = vmatmul.mubr.bf16.gmra.mrb[232].mxu0 %v8307_v28  ;;  %4423 = vmatprep.mubr.bf16.mxu1 %v8328_v6  ;;  %v3178_v28 = vld [vmem:[#allocation3 + $0x129] sm:$0xff]  ;;  %v3177_v6 = vld [vmem:[#allocation3 + $0x121] sm:$0xff] }
 0x2ed   : > { %4576 = vmatprep.mubr.bf16.mxu0 %v3196_v8  ;;  %v3199_v53 = vpack.c.bf16 %v3178_v28, %v3177_v6  ;;  %v3188_v28 = vld [vmem:[#allocation3 + $0x1a1] sm:$0xff] }
 0x2f3   : > { %4424 = vmatmul.mubr.bf16.gmra.mrb[240].mxu1 %v3196_v8 }
 0x2f4   : > { %4577 = vmatmul.mubr.bf16.gmra.mrb[236].mxu0 %v8315_v2  ;;  %4431 = vmatprep.mubr.bf16.mxu1 %v8338_v7  ;;  %v3180_v2 = vld [vmem:[#allocation3 + $0x141] sm:$0xff]  ;;  %v3179_v7 = vld [vmem:[#allocation3 + $0x139] sm:$0xff] }
 0x2f5   : > { %4584 = vmatprep.mubr.bf16.mxu0 %v3197_v59  ;;  %v3200_v48 = vpack.c.bf16 %v3180_v2, %v3179_v7  ;;  %v3221_v2 = vld [vmem:[#allocation3 + $0x32] sm:$0xff]  ;;  %v3222_v7 = vld [vmem:[#allocation3 + $0x3a] sm:$0xff] }
 0x2fb   : > { %4432 = vmatmul.mubr.bf16.gmra.mrb[244].mxu1 %v3197_v59 }
 0x2fc   : > { %4585 = vmatmul.mubr.bf16.gmra.mrb[240].mxu0 %v8323_v18  ;;  %4439 = vmatprep.mubr.bf16.mxu1 %v8348_v38 }
 0x2fd   : > { %4592 = vmatprep.mubr.bf16.mxu0 %v3198_v63 }
 0x303   : > { %4440 = vmatmul.mubr.bf16.gmra.mrb[248].mxu1 %v3198_v63  ;;  %v3187_v63 = vld [vmem:[#allocation3 + $0x199] sm:$0xff] }
 0x304   : > { %4593 = vmatmul.mubr.bf16.gmra.mrb[244].mxu0 %v8331_v33  ;;  %4447 = vmatprep.mubr.bf16.mxu1 %v8356_v46 }
 0x305   : > { %4600 = vmatprep.mubr.bf16.mxu0 %v3199_v53 }
 0x30b   : > { %4448 = vmatmul.mubr.bf16.gmra.mrb[252].mxu1 %v3199_v53 }
 0x30c   : > { %4601 = vmatmul.mubr.bf16.gmra.mrb[248].mxu0 %v8341_v15  ;;  %4455 = vmatprep.mubr.bf16.mxu1 %v8364_v40  ;;  %v3201_v40 = vpack.c.bf16 %v3182_v30, %v3181_v32 }
 0x30d   : > { %4608 = vmatprep.mubr.bf16.mxu0 %v3200_v48 }
 0x30e   : > { %v6083_v18 = vpop.f32.mrb[148].mxu1 }
 0x30f   : > { %v6189_v38 = vpop.f32.mrb[144].mxu0  ;;  %v6084_v47 = vpop.f32.mrb[149].mxu1 }
 0x310   : > { %v6085_v3 = vadd.f32 %v6084_v47, %v6083_v18  ;;  %v6190_v20 = vpop.f32.mrb[145].mxu0  ;;  %v6086_v11 = vpop.f32.mrb[150].mxu1 }
 0x311   : > { %v6191_v33 = vadd.f32 %v6190_v20, %v6189_v38  ;;  %v6192_v49 = vpop.f32.mrb[146].mxu0  ;;  %v6087_v46 = vpop.f32.mrb[151].mxu1 }
 0x312   : > { %v6088_v13 = vadd.f32 %v6087_v46, %v6086_v11  ;;  %v6193_v12 = vpop.f32.mrb[147].mxu0  ;;  %v3204_v11 = vpack.c.bf16 %v3188_v28, %v3187_v63 }
 0x313   : > { %v8429_v29 = vadd.f32 %v6191_v33, %v8336_v26  ;;  %v6194_v15 = vadd.f32 %v6193_v12, %v6192_v49  ;;  %4456 = vmatmul.mubr.bf16.gmra.mrb[0].mxu1 %v3200_v48  ;;  %v3253_v33 = vpack.c.bf16 %v3222_v7, %v3221_v2  ;;  %v3223_v12 = vld [vmem:[#allocation3 + $0x4a] sm:$0xff] }
 0x314   : > { %4609 = vmatmul.mubr.bf16.gmra.mrb[252].mxu0 %v8351_v45  ;;  %4463 = vmatprep.mubr.bf16.mxu1 %v8372_v43 }
 0x315   : > { %v8434_v19 = vadd.f32 %v6194_v15, %v8346_v31  ;;  %4616 = vmatprep.mubr.bf16.mxu0 %v3201_v40  ;;  %v3202_v31 = vpack.c.bf16 %v3184_v14, %v3183_v41  ;;  %v3224_v15 = vld [vmem:[#allocation3 + $0x52] sm:$0xff] }
 0x316   : > { %v6089_v21 = vpop.f32.mrb[152].mxu1  ;;  %v3254_v41 = vpack.c.bf16 %v3224_v15, %v3223_v12  ;;  %v3232_v12 = vld [vmem:[#allocation3 + $0xb2] sm:$0xff] }
 0x317   : > { %v6195_v60 = vpop.f32.mrb[148].mxu0  ;;  %v6090_v54 = vpop.f32.mrb[153].mxu1  ;;  %v4893_v15 = vld [vmem:[#allocation2 + $0x81] sm:$0xff] }
 0x318   : > { %v6091_v27 = vadd.f32 %v6090_v54, %v6089_v21  ;;  %v6196_v42 = vpop.f32.mrb[149].mxu0  ;;  %v6092_v25 = vpop.f32.mrb[154].mxu1  ;;  %v4885_v21 = vld [vmem:[#allocation2 + $0x21] sm:$0xff] }
 0x319   : > { %v6197_v26 = vadd.f32 %v6196_v42, %v6195_v60  ;;  %v6198_v39 = vpop.f32.mrb[150].mxu0  ;;  %v6093_v5 = vpop.f32.mrb[155].mxu1  ;;  %v3226_v42 = vld [vmem:[#allocation3 + $0x6a] sm:$0xff] }
 0x31a   : > { %v6094_v23 = vadd.f32 %v6093_v5, %v6092_v25  ;;  %v6199_v50 = vpop.f32.mrb[151].mxu0 }
 0x31b   : > { %v8436_v45 = vadd.f32 %v6197_v26, %v6085_v3  ;;  %v6200_v43 = vadd.f32 %v6199_v50, %v6198_v39  ;;  %4464 = vmatmul.mubr.bf16.gmra.mrb[4].mxu1 %v3201_v40  ;;  %v4884_v40 = vld [vmem:[#allocation2 + $0x19] sm:$0xff] }
 0x31c   : > { %4617 = vmatmul.mubr.bf16.gmra.mrb[0].mxu0 %v8359_v22  ;;  %4471 = vmatprep.mubr.bf16.mxu1 %v8380_v17  ;;  %v8442_v22 = vpack.c.bf16 %v3059_v34, %v3058_v0  ;;  %v3185_v17 = vld [vmem:[#allocation3 + $0x181] sm:$0xff]  ;;  %v6925_v39 = vld [vmem:[#allocation2] sm:$0xff] }
 0x31d   : > { %v8440_v1 = vadd.f32 %v6200_v43, %v6088_v13  ;;  %4624 = vmatprep.mubr.bf16.mxu0 %v3202_v31  ;;  %v3203_v59 = vpack.c.bf16 %v3186_v61, %v3185_v17  ;;  %v3140_v5 = vpack.c.bf16 %v6925_v39, %v6925_v39  ;;  %v4916_v43 = vpack.c.bf16 %v4885_v21, %v4884_v40  ;;  %v3229_v17 = vld [vmem:[#allocation3 + $0x92] sm:$0xff] }
 0x31e   : > { %v6095_v36 = vpop.f32.mrb[156].mxu1 }
 0x31f   : > { %v6201_v62 = vpop.f32.mrb[152].mxu0  ;;  %v6096_v58 = vpop.f32.mrb[157].mxu1 }
 0x320   : > { %v6097_v16 = vadd.f32 %v6096_v58, %v6095_v36  ;;  %v6202_v24 = vpop.f32.mrb[153].mxu0  ;;  %v6098_v44 = vpop.f32.mrb[158].mxu1 }
 0x321   : > { %v6203_v52 = vadd.f32 %v6202_v24, %v6201_v62  ;;  %v6204_v10 = vpop.f32.mrb[154].mxu0  ;;  %v6099_v35 = vpop.f32.mrb[159].mxu1  ;;  %v4886_v24 = vld [vmem:[#allocation2 + $0x31] sm:$0xff] }
 0x322   : > { %v6100_v57 = vadd.f32 %v6099_v35, %v6098_v44  ;;  %v6205_v8 = vpop.f32.mrb[155].mxu0  ;;  %v4887_v44 = vld [vmem:[#allocation2 + $0x39] sm:$0xff]  ;;  %v4889_v35 = vld [vmem:[#allocation2 + $0x51] sm:$0xff] }
 0x323   : > { %v8444_v56 = vadd.f32 %v6203_v52, %v6091_v27  ;;  %v6206_v51 = vadd.f32 %v6205_v8, %v6204_v10  ;;  %4472 = vmatmul.mubr.bf16.gmra.mrb[8].mxu1 %v3202_v31  ;;  %v3225_v27 = vld [vmem:[#allocation3 + $0x62] sm:$0xff]  ;;  %v4888_v10 = vld [vmem:[#allocation2 + $0x49] sm:$0xff]  ;;  %v4917_v28 = vpack.c.bf16 %v4887_v44, %v4886_v24 }
 0x324   : > { %4625 = vmatmul.mubr.bf16.gmra.mrb[4].mxu0 %v8367_v55  ;;  %4479 = vmatprep.mubr.bf16.mxu1 %v8442_v22  ;;  %v3255_v62 = vpack.c.bf16 %v3226_v42, %v3225_v27  ;;  %v3228_v52 = vld [vmem:[#allocation3 + $0x82] sm:$0xff] }
 0x325   : > { %v8448_v37 = vadd.f32 %v6206_v51, %v6094_v23  ;;  %4632 = vmatprep.mubr.bf16.mxu0 %v3203_v59  ;;  %v3230_v51 = vld [vmem:[#allocation3 + $0x9a] sm:$0xff]  ;;  %v4895_v24 = vld [vmem:[#allocation2 + $0x99] sm:$0xff] }
 0x326   : > { %v6101_v4 = vpop.f32.mrb[160].mxu1 }
 0x327   : > { %v6207_v6 = vpop.f32.mrb[156].mxu0  ;;  %v6102_v53 = vpop.f32.mrb[161].mxu1 }
 0x328   : > { %v6103_v48 = vadd.f32 %v6102_v53, %v6101_v4  ;;  %v6208_v18 = vpop.f32.mrb[157].mxu0  ;;  %v6104_v38 = vpop.f32.mrb[162].mxu1 }
 0x329   : > { %v6209_v47 = vadd.f32 %v6208_v18, %v6207_v6  ;;  %v6210_v3 = vpop.f32.mrb[158].mxu0  ;;  %v6105_v20 = vpop.f32.mrb[163].mxu1 }
 0x32a   : > { %v6106_v55 = vadd.f32 %v6105_v20, %v6104_v38  ;;  %v6211_v30 = vpop.f32.mrb[159].mxu0 }
 0x32b   : > { %v8450_v49 = vadd.f32 %v6209_v47, %v6097_v16  ;;  %v6212_v46 = vadd.f32 %v6211_v30, %v6210_v3  ;;  %4480 = vmatmul.mubr.bf16.gmra.mrb[12].mxu1 %v3203_v59  ;;  %v3227_v16 = vld [vmem:[#allocation3 + $0x7a] sm:$0xff]  ;;  %v3257_v47 = vpack.c.bf16 %v3230_v51, %v3229_v17  ;;  %v4890_v30 = vld [vmem:[#allocation2 + $0x61] sm:$0xff] }
 0x32c   : > { %4633 = vmatmul.mubr.bf16.gmra.mrb[8].mxu0 %v8375_v9  ;;  %6621 = vmatprep.mubr.bf16.mxu1 %v3253_v33  ;;  %v3256_v7 = vpack.c.bf16 %v3228_v52, %v3227_v16  ;;  %v4891_v33 = vld [vmem:[#allocation2 + $0x69] sm:$0xff]  ;;  %v4894_v16 = vld [vmem:[#allocation2 + $0x91] sm:$0xff] }
 0x32d   : > { %v8453_v13 = vadd.f32 %v6212_v46, %v6100_v57  ;;  %4640 = vmatprep.mubr.bf16.mxu0 %v3204_v11  ;;  %v4896_v52 = vld [vmem:[#allocation2 + $0xa9] sm:$0xff] }
 0x32e   : > { %v6107_v32 = vpop.f32.mrb[164].mxu1  ;;  %v3238_v17 = vld [vmem:[#allocation3 + $0xfa] sm:$0xff] }
 0x32f   : > { %v6213_v60 = vpop.f32.mrb[160].mxu0  ;;  %v6108_v54 = vpop.f32.mrb[165].mxu1 }
 0x330   : > { %v6109_v25 = vadd.f32 %v6108_v54, %v6107_v32  ;;  %v6214_v14 = vpop.f32.mrb[161].mxu0  ;;  %v6110_v26 = vpop.f32.mrb[166].mxu1  ;;  %v4892_v32 = vld [vmem:[#allocation2 + $0x79] sm:$0xff] }
 0x331   : > { %v6215_v23 = vadd.f32 %v6214_v14, %v6213_v60  ;;  %v6216_v9 = vpop.f32.mrb[162].mxu0  ;;  %v6111_v50 = vpop.f32.mrb[167].mxu1  ;;  %v3233_v60 = vld [vmem:[#allocation3 + $0xc2] sm:$0xff]  ;;  %v3234_v54 = vld [vmem:[#allocation3 + $0xca] sm:$0xff]  ;;  %v4919_v14 = vpack.c.bf16 %v4891_v33, %v4890_v30 }
 0x332   : > { %v6112_v31 = vadd.f32 %v6111_v50, %v6110_v26  ;;  %v6217_v36 = vpop.f32.mrb[163].mxu0  ;;  %v3239_v30 = vld [vmem:[#allocation3 + $0x10a] sm:$0xff] }
 0x333   : > { %v8455_v58 = vadd.f32 %v6215_v23, %v6103_v48  ;;  %v6218_v0 = vadd.f32 %v6217_v36, %v6216_v9  ;;  %6622 = vmatmul.mubr.bf16.vlgmr.msra.gmra.mrb[16].mxu1 %v3254_v41  ;;  %v4918_v48 = vpack.c.bf16 %v4889_v35, %v4888_v10  ;;  %v4920_v9 = vpack.c.bf16 %v4893_v15, %v4892_v32  ;;  %v4897_v10 = vld [vmem:[#allocation2 + $0xb1] sm:$0xff]  ;;  %v4898_v33 = vld [vmem:[#allocation2 + $0xc1] sm:$0xff]  ;;  %v4900_v15 = vld [vmem:[#allocation2 + $0xd9] sm:$0xff] }
 0x334   : > { %4641 = vmatmul.mubr.bf16.gmra.mrb[12].mxu0 %v3140_v5  ;;  %6625 = vmatprep.mubr.bf16.mxu1 %v3255_v62  ;;  %v3240_v32 = vld [vmem:[#allocation3 + $0x112] sm:$0xff] }
 0x335   : > { %v8457_v34 = vadd.f32 %v6218_v0, %v6106_v55  ;;  %6669 = vmatprep.mubr.bf16.mxu0 %v4916_v43  ;;  %v3231_v55 = vld [vmem:[#allocation3 + $0xaa] sm:$0xff]  ;;  %v3259_v43 = vpack.c.bf16 %v3234_v54, %v3233_v60  ;;  %v3235_v0 = vld [vmem:[#allocation3 + $0xda] sm:$0xff]  ;;  %v3241_v54 = vld [vmem:[#allocation3 + $0x122] sm:$0xff] }
 0x336   : > { %v6113_v61 = vpop.f32.mrb[168].mxu1  ;;  %v3258_v23 = vpack.c.bf16 %v3232_v12, %v3231_v55 }
 0x337   : > { %v6219_v57 = vpop.f32.mrb[164].mxu0  ;;  %v6114_v8 = vpop.f32.mrb[169].mxu1 }
 0x338   : > { %v6115_v59 = vadd.f32 %v6114_v8, %v6113_v61  ;;  %v6220_v4 = vpop.f32.mrb[165].mxu0  ;;  %v6116_v63 = vpop.f32.mrb[170].mxu1  ;;  %v3236_v61 = vld [vmem:[#allocation3 + $0xe2] sm:$0xff]  ;;  %v3237_v8 = vld [vmem:[#allocation3 + $0xf2] sm:$0xff] }
 0x339   : > { %v6221_v6 = vadd.f32 %v6220_v4, %v6219_v57  ;;  %v6222_v53 = vpop.f32.mrb[166].mxu0  ;;  %v6117_v2 = vpop.f32.mrb[171].mxu1 }
 0x33a   : > { %v6118_v18 = vadd.f32 %v6117_v2, %v6116_v63  ;;  %v6223_v38 = vpop.f32.mrb[167].mxu0  ;;  %v4921_v63 = vpack.c.bf16 %v4895_v24, %v4894_v16  ;;  %v3260_v2 = vpack.c.bf16 %v3236_v61, %v3235_v0  ;;  %v4902_v61 = vld [vmem:[#allocation2 + $0xf1] sm:$0xff] }
 0x33b   : > { %v8459_v3 = vadd.f32 %v6221_v6, %v6109_v25  ;;  %v6224_v20 = vadd.f32 %v6223_v38, %v6222_v53  ;;  %6626 = vmatmul.mubr.bf16.gmra.mrb[20].mxu1 %v3256_v7  ;;  %v4922_v7 = vpack.c.bf16 %v4897_v10, %v4896_v52  ;;  %v3261_v38 = vpack.c.bf16 %v3238_v17, %v3237_v8  ;;  %v4903_v52 = vld [vmem:[#allocation2 + $0xf9] sm:$0xff]  ;;  %v4905_v8 = vld [vmem:[#allocation2 + $0x111] sm:$0xff] }
 0x33c   : > { %6670 = vmatmul.mubr.bf16.vlgmr.msra.gmra.mrb[16].mxu0 %v4917_v28  ;;  %6629 = vmatprep.mubr.bf16.mxu1 %v3257_v47 }
 0x33d   : > { %v8461_v11 = vadd.f32 %v6224_v20, %v6112_v31  ;;  %6673 = vmatprep.mubr.bf16.mxu0 %v4918_v48 }
 0x33e   : > { %v6119_v46 = vpop.f32.mrb[172].mxu1 }
 0x33f   : > { %v6225_v40 = vpop.f32.mrb[168].mxu0  ;;  %v6120_v21 = vpop.f32.mrb[173].mxu1 }
 0x340   : > { %v6121_v27 = vadd.f32 %v6120_v21, %v6119_v46  ;;  %v6226_v42 = vpop.f32.mrb[169].mxu0  ;;  %v6122_v25 = vpop.f32.mrb[174].mxu1  ;;  %v4899_v46 = vld [vmem:[#allocation2 + $0xc9] sm:$0xff] }
 0x341   : > { %v6227_v26 = vadd.f32 %v6226_v42, %v6225_v40  ;;  %v6228_v39 = vpop.f32.mrb[170].mxu0  ;;  %v6123_v5 = vpop.f32.mrb[175].mxu1  ;;  %v4901_v40 = vld [vmem:[#allocation2 + $0xe1] sm:$0xff] }
 0x342   : > { %v6124_v50 = vadd.f32 %v6123_v5, %v6122_v25  ;;  %v6229_v41 = vpop.f32.mrb[171].mxu0  ;;  %v3242_v42 = vld [vmem:[#allocation3 + $0x12a] sm:$0xff] }
 0x343   : > { %v8463_v31 = vadd.f32 %v6227_v26, %v6115_v59  ;;  %v6230_v36 = vadd.f32 %v6229_v41, %v6228_v39  ;;  %6630 = vmatmul.mubr.bf16.gmra.mrb[24].mxu1 %v3258_v23  ;;  %v4923_v26 = vpack.c.bf16 %v4899_v46, %v4898_v33 }
 0x344   : > { %6674 = vmatmul.mubr.bf16.gmra.mrb[20].mxu0 %v4919_v14  ;;  %6633 = vmatprep.mubr.bf16.mxu1 %v3259_v43 }
 0x345   : > { %v8465_v62 = vadd.f32 %v6230_v36, %v6118_v18  ;;  %6677 = vmatprep.mubr.bf16.mxu0 %v4920_v9  ;;  %v3262_v9 = vpack.c.bf16 %v3240_v32, %v3239_v30  ;;  %v3263_v36 = vpack.c.bf16 %v3242_v42, %v3241_v54  ;;  %v3248_v54 = vld [vmem:[#allocation3 + $0x172] sm:$0xff]  ;;  %v4908_v42 = vld [vmem:[#allocation2 + $0x139] sm:$0xff] }
 0x346   : > { %v6125_v44 = vpop.f32.mrb[176].mxu1 }
 0x347   : > { %v6231_v35 = vpop.f32.mrb[172].mxu0  ;;  %v6126_v57 = vpop.f32.mrb[177].mxu1 }
 0x348   : > { %v6127_v51 = vadd.f32 %v6126_v57, %v6125_v44  ;;  %v6232_v59 = vpop.f32.mrb[173].mxu0  ;;  %v6128_v4 = vpop.f32.mrb[178].mxu1  ;;  %v3243_v44 = vld [vmem:[#allocation3 + $0x13a] sm:$0xff] }
 0x349   : > { %v6233_v28 = vadd.f32 %v6232_v59, %v6231_v35  ;;  %v6234_v6 = vpop.f32.mrb[174].mxu0  ;;  %v6129_v53 = vpop.f32.mrb[179].mxu1  ;;  %v3244_v35 = vld [vmem:[#allocation3 + $0x142] sm:$0xff]  ;;  %v4904_v57 = vld [vmem:[#allocation2 + $0x109] sm:$0xff] }
 0x34a   : > { %v6130_v48 = vadd.f32 %v6129_v53, %v6128_v4  ;;  %v6235_v18 = vpop.f32.mrb[175].mxu0  ;;  %v3245_v4 = vld [vmem:[#allocation3 + $0x152] sm:$0xff]  ;;  %v4925_v53 = vpack.c.bf16 %v4903_v52, %v4902_v61 }
 0x34b   : > { %v8467_v47 = vadd.f32 %v6233_v28, %v6121_v27  ;;  %v6236_v20 = vadd.f32 %v6235_v18, %v6234_v6  ;;  %6634 = vmatmul.mubr.bf16.gmra.mrb[28].mxu1 %v3260_v2  ;;  %v3264_v18 = vpack.c.bf16 %v3244_v35, %v3243_v44  ;;  %v3252_v35 = vld [vmem:[#allocation3 + $0x1a2] sm:$0xff] }
 0x34c   : > { %6678 = vmatmul.mubr.bf16.gmra.mrb[24].mxu0 %v4921_v63  ;;  %6637 = vmatprep.mubr.bf16.mxu1 %v3261_v38  ;;  %v3246_v63 = vld [vmem:[#allocation3 + $0x15a] sm:$0xff]  ;;  %v4926_v38 = vpack.c.bf16 %v4905_v8, %v4904_v57 }
 0x34d   : > { %v8469_v55 = vadd.f32 %v6236_v20, %v6124_v50  ;;  %6681 = vmatprep.mubr.bf16.mxu0 %v4922_v7  ;;  %v4924_v50 = vpack.c.bf16 %v4901_v40, %v4900_v15  ;;  %v3265_v33 = vpack.c.bf16 %v3246_v63, %v3245_v4  ;;  %v3247_v15 = vld [vmem:[#allocation3 + $0x16a] sm:$0xff]  ;;  %v4910_v8 = vld [vmem:[#allocation2 + $0x151] sm:$0xff]  ;;  %v4912_v4 = vld [vmem:[#allocation2 + $0x169] sm:$0xff] }
 0x34e   : > { %v6131_v12 = vpop.f32.mrb[180].mxu1  ;;  %v4906_v40 = vld [vmem:[#allocation2 + $0x121] sm:$0xff]  ;;  %v4913_v63 = vld [vmem:[#allocation2 + $0x171] sm:$0xff] }
 0x34f   : > { %v6237_v21 = vpop.f32.mrb[176].mxu0  ;;  %v6132_v60 = vpop.f32.mrb[181].mxu1 }
 0x350   : > { %v6133_v27 = vadd.f32 %v6132_v60, %v6131_v12  ;;  %v6238_v25 = vpop.f32.mrb[177].mxu0  ;;  %v6134_v14 = vpop.f32.mrb[182].mxu1 }
 0x351   : > { %v6239_v39 = vadd.f32 %v6238_v25, %v6237_v21  ;;  %v6240_v5 = vpop.f32.mrb[178].mxu0  ;;  %v6135_v23 = vpop.f32.mrb[183].mxu1  ;;  %v4907_v21 = vld [vmem:[#allocation2 + $0x129] sm:$0xff]  ;;  %v4909_v25 = vld [vmem:[#allocation2 + $0x141] sm:$0xff] }
 0x352   : > { %v6136_v41 = vadd.f32 %v6135_v23, %v6134_v14  ;;  %v6241_v43 = vpop.f32.mrb[179].mxu0  ;;  %v4927_v23 = vpack.c.bf16 %v4907_v21, %v4906_v40  ;;  %v4914_v21 = vld [vmem:[#allocation2 + $0x181] sm:$0xff] }
 0x353   : > { %v8471_v0 = vadd.f32 %v6239_v39, %v6127_v51  ;;  %v6242_v16 = vadd.f32 %v6241_v43, %v6240_v5  ;;  %6638 = vmatmul.mubr.bf16.gmra.mrb[32].mxu1 %v3262_v9 }
 0x354   : > { %6682 = vmatmul.mubr.bf16.gmra.mrb[28].mxu0 %v4923_v26  ;;  %6641 = vmatprep.mubr.bf16.mxu1 %v3263_v36  ;;  %v3266_v36 = vpack.c.bf16 %v3248_v54, %v3247_v15 }
 0x355   : > { %v8473_v24 = vadd.f32 %v6242_v16, %v6130_v48  ;;  %6685 = vmatprep.mubr.bf16.mxu0 %v4924_v50 }
 0x356   : > { %v6137_v10 = vpop.f32.mrb[184].mxu1 }
 0x357   : > { %v6243_v17 = vpop.f32.mrb[180].mxu0  ;;  %v6138_v59 = vpop.f32.mrb[185].mxu1 }
 0x358   : > { %v6139_v51 = vadd.f32 %v6138_v59, %v6137_v10  ;;  %v6244_v28 = vpop.f32.mrb[181].mxu0  ;;  %v6140_v6 = vpop.f32.mrb[186].mxu1  ;;  %v3251_v10 = vld [vmem:[#allocation3 + $0x19a] sm:$0xff] }
 0x359   : > { %v6245_v2 = vadd.f32 %v6244_v28, %v6243_v17  ;;  %v6246_v7 = vpop.f32.mrb[182].mxu0  ;;  %v6141_v48 = vpop.f32.mrb[187].mxu1  ;;  %v4911_v17 = vld [vmem:[#allocation2 + $0x159] sm:$0xff] }
 0x35a   : > { %v6142_v20 = vadd.f32 %v6141_v48, %v6140_v6  ;;  %v6247_v30 = vpop.f32.mrb[183].mxu0  ;;  %v4929_v48 = vpack.c.bf16 %v4911_v17, %v4910_v8 }
 0x35b   : > { %v8475_v46 = vadd.f32 %v6245_v2, %v6133_v27  ;;  %v6248_v12 = vadd.f32 %v6247_v30, %v6246_v7  ;;  %6642 = vmatmul.mubr.bf16.gmra.mrb[36].mxu1 %v3264_v18  ;;  %v4930_v30 = vpack.c.bf16 %v4913_v63, %v4912_v4 }
 0x35c   : > { %6686 = vmatmul.mubr.bf16.gmra.mrb[32].mxu0 %v4925_v53  ;;  %6645 = vmatprep.mubr.bf16.mxu1 %v3265_v33  ;;  %v3268_v53 = vpack.c.bf16 %v3252_v35, %v3251_v10 }
 0x35d   : > { %v8477_v32 = vadd.f32 %v6248_v12, %v6136_v41  ;;  %6689 = vmatprep.mubr.bf16.mxu0 %v4926_v38  ;;  %v4928_v41 = vpack.c.bf16 %v4909_v25, %v4908_v42 }
 0x35e   : > { %v6143_v60 = vpop.f32.mrb[188].mxu1 }
 0x35f   : > { %v6249_v14 = vpop.f32.mrb[184].mxu0  ;;  %v6144_v26 = vpop.f32.mrb[189].mxu1 }
 0x360   : > { %v6145_v39 = vadd.f32 %v6144_v26, %v6143_v60  ;;  %v6250_v5 = vpop.f32.mrb[185].mxu0  ;;  %v6146_v27 = vpop.f32.mrb[190].mxu1  ;;  %v4915_v60 = vld [vmem:[#allocation2 + $0x189] sm:$0xff] }
 0x361   : > { %v6251_v9 = vadd.f32 %v6250_v5, %v6249_v14  ;;  %v6252_v50 = vpop.f32.mrb[186].mxu0  ;;  %v6147_v43 = vpop.f32.mrb[191].mxu1 }
 0x362   : > { %v6148_v16 = vadd.f32 %v6147_v43, %v6146_v27  ;;  %v6253_v44 = vpop.f32.mrb[187].mxu0  ;;  %v4931_v27 = vpack.c.bf16 %v4915_v60, %v4914_v21 }
 0x363   : > { %v8479_v61 = vadd.f32 %v6251_v9, %v6139_v51  ;;  %v6254_v52 = vadd.f32 %v6253_v44, %v6252_v50  ;;  %6646 = vmatmul.mubr.bf16.gmra.mrb[40].mxu1 %v3266_v36 }
 0x364   : > { %6690 = vmatmul.mubr.bf16.gmra.mrb[36].mxu0 %v4927_v23  ;;  %6649 = vmatprep.mubr.bf16.mxu1 %v8442_v22 }
 0x365   : > { %v8482_v57 = vadd.f32 %v6254_v52, %v6142_v20  ;;  %6693 = vmatprep.mubr.bf16.mxu0 %v4928_v41 }
 0x366   : > { %v6149_v59 = vpop.f32.mrb[192].mxu1 }
 0x367   : > { %v6255_v28 = vpop.f32.mrb[188].mxu0  ;;  %v6150_v6 = vpop.f32.mrb[193].mxu1 }
 0x368   : > { %v6151_v51 = vadd.f32 %v6150_v6, %v6149_v59  ;;  %v6256_v2 = vpop.f32.mrb[189].mxu0  ;;  %v6152_v7 = vpop.f32.mrb[194].mxu1 }
 0x369   : > { %v6257_v18 = vadd.f32 %v6256_v2, %v6255_v28  ;;  %v6258_v38 = vpop.f32.mrb[190].mxu0  ;;  %v6153_v22 = vpop.f32.mrb[195].mxu1 }
 0x36a   : > { %v6154_v33 = vadd.f32 %v6153_v22, %v6152_v7  ;;  %v6259_v20 = vpop.f32.mrb[191].mxu0 }
 0x36b   : > { %v8484_v12 = vadd.f32 %v6257_v18, %v6145_v39  ;;  %v6260_v15 = vadd.f32 %v6259_v20, %v6258_v38  ;;  %6650 = vmatmul.mubr.bf16.gmra.mrb[44].mxu1 %v3268_v53 }
 0x36c   : > { %6694 = vmatmul.mubr.bf16.gmra.mrb[40].mxu0 %v4929_v48 }
 0x36d   : > { %v8486_v40 = vadd.f32 %v6260_v15, %v6148_v16  ;;  %6697 = vmatprep.mubr.bf16.mxu0 %v4930_v30 }
 0x36e   : > { %v6155_v54 = vpop.f32.mrb[196].mxu1 }
 0x36f   : > { %v6261_v42 = vpop.f32.mrb[192].mxu0  ;;  %v6156_v25 = vpop.f32.mrb[197].mxu1 }
 0x370   : > { %v6157_v14 = vadd.f32 %v6156_v25, %v6155_v54  ;;  %v6262_v26 = vpop.f32.mrb[193].mxu0  ;;  %v6158_v5 = vpop.f32.mrb[198].mxu1 }
 0x371   : > { %v6263_v23 = vadd.f32 %v6262_v26, %v6261_v42  ;;  %v6264_v9 = vpop.f32.mrb[194].mxu0  ;;  %v6159_v50 = vpop.f32.mrb[199].mxu1 }
 0x372   : > { %v6160_v39 = vadd.f32 %v6159_v50, %v6158_v5  ;;  %v6265_v43 = vpop.f32.mrb[195].mxu0 }
 0x373   : > { %v8488_v36 = vadd.f32 %v6263_v23, %v6151_v51  ;;  %v6266_v41 = vadd.f32 %v6265_v43, %v6264_v9 }
 0x374   : > { %6698 = vmatmul.mubr.bf16.gmra.mrb[44].mxu0 %v4931_v27 }
 0x375   : > { %v8490_v16 = vadd.f32 %v6266_v41, %v6154_v33 }
 0x376   : > { %v6161_v44 = vpop.f32.mrb[200].mxu1 }
 0x377   : > { %v6267_v52 = vpop.f32.mrb[196].mxu0  ;;  %v6162_v10 = vpop.f32.mrb[201].mxu1 }
 0x378   : > { %v6163_v35 = vadd.f32 %v6162_v10, %v6161_v44  ;;  %v6268_v8 = vpop.f32.mrb[197].mxu0  ;;  %v6164_v17 = vpop.f32.mrb[202].mxu1 }
 0x379   : > { %v6269_v59 = vadd.f32 %v6268_v8, %v6267_v52  ;;  %v6270_v4 = vpop.f32.mrb[198].mxu0  ;;  %v6165_v63 = vpop.f32.mrb[203].mxu1 }
 0x37a   : > { %v6166_v28 = vadd.f32 %v6165_v63, %v6164_v17  ;;  %v6271_v6 = vpop.f32.mrb[199].mxu0 }
 0x37b   : > { %v8492_v53 = vadd.f32 %v6269_v59, %v6157_v14  ;;  %v6272_v2 = vadd.f32 %v6271_v6, %v6270_v4 }
 0x37d   : > { %v8494_v51 = vadd.f32 %v6272_v2, %v6160_v39 }
 0x37e   : > { %v6167_v7 = vpop.f32.mrb[204].mxu1 }
 0x37f   : > { %v6273_v48 = vpop.f32.mrb[200].mxu0  ;;  %v6168_v18 = vpop.f32.mrb[205].mxu1 }
 0x380   : > { %v6169_v38 = vadd.f32 %v6168_v18, %v6167_v7  ;;  %v6274_v22 = vpop.f32.mrb[201].mxu0  ;;  %v6170_v30 = vpop.f32.mrb[206].mxu1 }
 0x381   : > { %v6275_v33 = vadd.f32 %v6274_v22, %v6273_v48  ;;  %v6276_v20 = vpop.f32.mrb[202].mxu0  ;;  %v6171_v15 = vpop.f32.mrb[207].mxu1 }
 0x382   : > { %v6172_v21 = vadd.f32 %v6171_v15, %v6170_v30  ;;  %v6277_v60 = vpop.f32.mrb[203].mxu0 }
 0x383   : > { %v8496_v54 = vadd.f32 %v6275_v33, %v6163_v35  ;;  %v6278_v42 = vadd.f32 %v6277_v60, %v6276_v20 }
 0x385   : > { %v8498_v25 = vadd.f32 %v6278_v42, %v6166_v28 }
 0x386   : > { %v6301_v14 = vpop.f32.mrb[208].mxu1 }
 0x387   : > { %v6279_v26 = vpop.f32.mrb[204].mxu0  ;;  %v6302_v5 = vpop.f32.mrb[209].mxu1 }
 0x388   : > { %v6280_v27 = vpop.f32.mrb[205].mxu0  ;;  %v6303_v23 = vadd.f32 %v6302_v5, %v6301_v14  ;;  %v6304_v9 = vpop.f32.mrb[210].mxu1 }
 0x389   : > { %v6281_v50 = vadd.f32 %v6280_v27, %v6279_v26  ;;  %v6282_v39 = vpop.f32.mrb[206].mxu0  ;;  %v6305_v43 = vpop.f32.mrb[211].mxu1 }
 0x38a   : > { %v4362_v41 = vadd.f32 %v6303_v23, %v8429_v29  ;;  %v6283_v44 = vpop.f32.mrb[207].mxu0  ;;  %v6306_v52 = vadd.f32 %v6305_v43, %v6304_v9 }
 0x38b   : > { %v8501_v10 = vadd.f32 %v6281_v50, %v6169_v38  ;;  %v6284_v35 = vadd.f32 %v6283_v44, %v6282_v39 }
 0x38c   : > { %v4365_v8 = vadd.f32 %v6306_v52, %v8434_v19 }
 0x38d   : > { %v8504_v17 = vadd.f32 %v6284_v35, %v6172_v21 }
 0x38e   : > { %v6307_v59 = vpop.f32.mrb[212].mxu1 }
 0x38f   : > { %v6413_v4 = vpop.f32.mrb[208].mxu0  ;;  %v6308_v63 = vpop.f32.mrb[213].mxu1 }
 0x390   : > { %v6309_v28 = vadd.f32 %v6308_v63, %v6307_v59  ;;  %v6414_v6 = vpop.f32.mrb[209].mxu0  ;;  %v6310_v2 = vpop.f32.mrb[214].mxu1 }
 0x391   : > { %v6415_v7 = vadd.f32 %v6414_v6, %v6413_v4  ;;  %v6416_v48 = vpop.f32.mrb[210].mxu0  ;;  %v6311_v18 = vpop.f32.mrb[215].mxu1 }
 0x392   : > { %v4370_v29 = vadd.f32 %v6309_v28, %v8436_v45  ;;  %v6312_v22 = vadd.f32 %v6311_v18, %v6310_v2  ;;  %v6417_v30 = vpop.f32.mrb[211].mxu0 }
 0x393   : > { %v6418_v38 = vadd.f32 %v6417_v30, %v6416_v48  ;;  %v8507_v33 = vadd.f32 %v6415_v7, %v4362_v41 }
 0x394   : > { %v4373_v19 = vadd.f32 %v6312_v22, %v8440_v1 }
 0x395   : > { %v8510_v20 = vadd.f32 %v6418_v38, %v4365_v8 }
 0x396   : > { %v6313_v15 = vpop.f32.mrb[216].mxu1 }
 0x397   : > { %v6419_v21 = vpop.f32.mrb[212].mxu0  ;;  %v6314_v60 = vpop.f32.mrb[217].mxu1 }
 0x398   : > { %v6315_v42 = vadd.f32 %v6314_v60, %v6313_v15  ;;  %v6420_v14 = vpop.f32.mrb[213].mxu0  ;;  %v6316_v26 = vpop.f32.mrb[218].mxu1 }
 0x399   : > { %v6421_v5 = vadd.f32 %v6420_v14, %v6419_v21  ;;  %v6422_v27 = vpop.f32.mrb[214].mxu0  ;;  %v6317_v23 = vpop.f32.mrb[219].mxu1 }
 0x39a   : > { %v4378_v45 = vadd.f32 %v6315_v42, %v8444_v56  ;;  %v6318_v9 = vadd.f32 %v6317_v23, %v6316_v26  ;;  %v6423_v50 = vpop.f32.mrb[215].mxu0 }
 0x39b   : > { %v6424_v39 = vadd.f32 %v6423_v50, %v6422_v27  ;;  %v8513_v43 = vadd.f32 %v6421_v5, %v4370_v29 }
 0x39c   : > { %v4381_v1 = vadd.f32 %v6318_v9, %v8448_v37 }
 0x39d   : > { %v8516_v41 = vadd.f32 %v6424_v39, %v4373_v19 }
 0x39e   : > { %v6319_v44 = vpop.f32.mrb[220].mxu1 }
 0x39f   : > { %v6425_v52 = vpop.f32.mrb[216].mxu0  ;;  %v6320_v35 = vpop.f32.mrb[221].mxu1 }
 0x3a0   : > { %v6321_v8 = vadd.f32 %v6320_v35, %v6319_v44  ;;  %v6426_v59 = vpop.f32.mrb[217].mxu0  ;;  %v6322_v4 = vpop.f32.mrb[222].mxu1 }
 0x3a1   : > { %v6427_v63 = vadd.f32 %v6426_v59, %v6425_v52  ;;  %v6428_v28 = vpop.f32.mrb[218].mxu0  ;;  %v6323_v6 = vpop.f32.mrb[223].mxu1 }
 0x3a2   : > { %v4386_v56 = vadd.f32 %v6321_v8, %v8450_v49  ;;  %v6324_v2 = vadd.f32 %v6323_v6, %v6322_v4  ;;  %v6429_v7 = vpop.f32.mrb[219].mxu0 }
 0x3a3   : > { %v6430_v48 = vadd.f32 %v6429_v7, %v6428_v28  ;;  %v8519_v18 = vadd.f32 %v6427_v63, %v4378_v45 }
 0x3a4   : > { %v4389_v37 = vadd.f32 %v6324_v2, %v8453_v13 }
 0x3a5   : > { %v8522_v29 = vadd.f32 %v6430_v48, %v4381_v1 }
 0x3a6   : > { %v6325_v22 = vpop.f32.mrb[224].mxu1 }
 0x3a7   : > { %v6431_v30 = vpop.f32.mrb[220].mxu0  ;;  %v6326_v38 = vpop.f32.mrb[225].mxu1 }
 0x3a8   : > { %v6327_v19 = vadd.f32 %v6326_v38, %v6325_v22  ;;  %v6432_v15 = vpop.f32.mrb[221].mxu0  ;;  %v6328_v21 = vpop.f32.mrb[226].mxu1 }
 0x3a9   : > { %v6433_v60 = vadd.f32 %v6432_v15, %v6431_v30  ;;  %v6434_v42 = vpop.f32.mrb[222].mxu0  ;;  %v6329_v14 = vpop.f32.mrb[227].mxu1 }
 0x3aa   : > { %v4394_v49 = vadd.f32 %v6327_v19, %v8455_v58  ;;  %v6330_v26 = vadd.f32 %v6329_v14, %v6328_v21  ;;  %v6435_v5 = vpop.f32.mrb[223].mxu0 }
 0x3ab   : > { %v6436_v27 = vadd.f32 %v6435_v5, %v6434_v42  ;;  %v8525_v23 = vadd.f32 %v6433_v60, %v4386_v56 }
 0x3ac   : > { %v4397_v13 = vadd.f32 %v6330_v26, %v8457_v34 }
 0x3ad   : > { %v8528_v45 = vadd.f32 %v6436_v27, %v4389_v37 }
 0x3ae   : > { %v6331_v9 = vpop.f32.mrb[228].mxu1 }
 0x3af   : > { %v6437_v50 = vpop.f32.mrb[224].mxu0  ;;  %v6332_v39 = vpop.f32.mrb[229].mxu1 }
 0x3b0   : > { %v6333_v1 = vadd.f32 %v6332_v39, %v6331_v9  ;;  %v6438_v44 = vpop.f32.mrb[225].mxu0  ;;  %v6334_v52 = vpop.f32.mrb[230].mxu1 }
 0x3b1   : > { %v6439_v35 = vadd.f32 %v6438_v44, %v6437_v50  ;;  %v6440_v8 = vpop.f32.mrb[226].mxu0  ;;  %v6335_v59 = vpop.f32.mrb[231].mxu1 }
 0x3b2   : > { %v4402_v58 = vadd.f32 %v6333_v1, %v8459_v3  ;;  %v6336_v4 = vadd.f32 %v6335_v59, %v6334_v52  ;;  %v6441_v63 = vpop.f32.mrb[227].mxu0 }
 0x3b3   : > { %v6442_v28 = vadd.f32 %v6441_v63, %v6440_v8  ;;  %v8531_v6 = vadd.f32 %v6439_v35, %v4394_v49 }
 0x3b4   : > { %v4405_v34 = vadd.f32 %v6336_v4, %v8461_v11 }
 0x3b5   : > { %v8534_v56 = vadd.f32 %v6442_v28, %v4397_v13 }
 0x3b6   : > { %v6337_v2 = vpop.f32.mrb[232].mxu1 }
 0x3b7   : > { %v6443_v7 = vpop.f32.mrb[228].mxu0  ;;  %v6338_v48 = vpop.f32.mrb[233].mxu1 }
 0x3b8   : > { %v6339_v37 = vadd.f32 %v6338_v48, %v6337_v2  ;;  %v6444_v22 = vpop.f32.mrb[229].mxu0  ;;  %v6340_v30 = vpop.f32.mrb[234].mxu1 }
 0x3b9   : > { %v6445_v38 = vadd.f32 %v6444_v22, %v6443_v7  ;;  %v6446_v19 = vpop.f32.mrb[230].mxu0  ;;  %v6341_v15 = vpop.f32.mrb[235].mxu1 }
 0x3ba   : > { %v4410_v3 = vadd.f32 %v6339_v37, %v8463_v31  ;;  %v6342_v21 = vadd.f32 %v6341_v15, %v6340_v30  ;;  %v6447_v60 = vpop.f32.mrb[231].mxu0 }
 0x3bb   : > { %v6448_v42 = vadd.f32 %v6447_v60, %v6446_v19  ;;  %v8537_v14 = vadd.f32 %v6445_v38, %v4402_v58 }
 0x3bc   : > { %v4413_v11 = vadd.f32 %v6342_v21, %v8465_v62 }
 0x3bd   : > { %v8540_v49 = vadd.f32 %v6448_v42, %v4405_v34 }
 0x3be   : > { %v6343_v26 = vpop.f32.mrb[236].mxu1 }
 0x3bf   : > { %v6449_v5 = vpop.f32.mrb[232].mxu0  ;;  %v6344_v27 = vpop.f32.mrb[237].mxu1 }
 0x3c0   : > { %v6345_v13 = vadd.f32 %v6344_v27, %v6343_v26  ;;  %v6450_v9 = vpop.f32.mrb[233].mxu0  ;;  %v6346_v50 = vpop.f32.mrb[238].mxu1 }
 0x3c1   : > { %v6451_v39 = vadd.f32 %v6450_v9, %v6449_v5  ;;  %v6452_v1 = vpop.f32.mrb[234].mxu0  ;;  %v6347_v44 = vpop.f32.mrb[239].mxu1 }
 0x3c2   : > { %v4418_v31 = vadd.f32 %v6345_v13, %v8467_v47  ;;  %v6348_v52 = vadd.f32 %v6347_v44, %v6346_v50  ;;  %v6453_v35 = vpop.f32.mrb[235].mxu0 }
 0x3c3   : > { %v6454_v8 = vadd.f32 %v6453_v35, %v6452_v1  ;;  %v8543_v59 = vadd.f32 %v6451_v39, %v4410_v3 }
 0x3c4   : > { %v4421_v62 = vadd.f32 %v6348_v52, %v8469_v55 }
 0x3c5   : > { %v8546_v58 = vadd.f32 %v6454_v8, %v4413_v11 }
 0x3c6   : > { %v6349_v4 = vpop.f32.mrb[240].mxu1 }
 0x3c7   : > { %v6455_v63 = vpop.f32.mrb[236].mxu0  ;;  %v6350_v28 = vpop.f32.mrb[241].mxu1 }
 0x3c8   : > { %v6351_v34 = vadd.f32 %v6350_v28, %v6349_v4  ;;  %v6456_v2 = vpop.f32.mrb[237].mxu0  ;;  %v6352_v7 = vpop.f32.mrb[242].mxu1 }
 0x3c9   : > { %v6457_v48 = vadd.f32 %v6456_v2, %v6455_v63  ;;  %v6458_v37 = vpop.f32.mrb[238].mxu0  ;;  %v6353_v22 = vpop.f32.mrb[243].mxu1 }
 0x3ca   : > { %v4426_v47 = vadd.f32 %v6351_v34, %v8471_v0  ;;  %v6354_v30 = vadd.f32 %v6353_v22, %v6352_v7  ;;  %v6459_v38 = vpop.f32.mrb[239].mxu0 }
 0x3cb   : > { %v6460_v19 = vadd.f32 %v6459_v38, %v6458_v37  ;;  %v8549_v15 = vadd.f32 %v6457_v48, %v4418_v31 }
 0x3cc   : > { %v4429_v55 = vadd.f32 %v6354_v30, %v8473_v24 }
 0x3cd   : > { %v8552_v3 = vadd.f32 %v6460_v19, %v4421_v62 }
 0x3ce   : > { %v6355_v21 = vpop.f32.mrb[244].mxu1 }
 0x3cf   : > { %v6461_v60 = vpop.f32.mrb[240].mxu0  ;;  %v6356_v42 = vpop.f32.mrb[245].mxu1 }
 0x3d0   : > { %v6357_v11 = vadd.f32 %v6356_v42, %v6355_v21  ;;  %v6462_v26 = vpop.f32.mrb[241].mxu0  ;;  %v6358_v5 = vpop.f32.mrb[246].mxu1 }
 0x3d1   : > { %v6463_v27 = vadd.f32 %v6462_v26, %v6461_v60  ;;  %v6464_v13 = vpop.f32.mrb[242].mxu0  ;;  %v6359_v9 = vpop.f32.mrb[247].mxu1 }
 0x3d2   : > { %v4434_v0 = vadd.f32 %v6357_v11, %v8475_v46  ;;  %v6360_v50 = vadd.f32 %v6359_v9, %v6358_v5  ;;  %v6465_v39 = vpop.f32.mrb[243].mxu0 }
 0x3d3   : > { %v6466_v1 = vadd.f32 %v6465_v39, %v6464_v13  ;;  %v8555_v44 = vadd.f32 %v6463_v27, %v4426_v47 }
 0x3d4   : > { %v4437_v24 = vadd.f32 %v6360_v50, %v8477_v32 }
 0x3d5   : > { %v8558_v31 = vadd.f32 %v6466_v1, %v4429_v55 }
 0x3d6   : > { %v6361_v52 = vpop.f32.mrb[248].mxu1 }
 0x3d7   : > { %v6467_v35 = vpop.f32.mrb[244].mxu0  ;;  %v6362_v8 = vpop.f32.mrb[249].mxu1 }
 0x3d8   : > { %v6363_v62 = vadd.f32 %v6362_v8, %v6361_v52  ;;  %v6468_v4 = vpop.f32.mrb[245].mxu0  ;;  %v6364_v63 = vpop.f32.mrb[250].mxu1 }
 0x3d9   : > { %v6469_v28 = vadd.f32 %v6468_v4, %v6467_v35  ;;  %v6470_v34 = vpop.f32.mrb[246].mxu0  ;;  %v6365_v2 = vpop.f32.mrb[251].mxu1 }
 0x3da   : > { %v4442_v46 = vadd.f32 %v6363_v62, %v8479_v61  ;;  %v6366_v7 = vadd.f32 %v6365_v2, %v6364_v63  ;;  %v6471_v48 = vpop.f32.mrb[247].mxu0 }
 0x3db   : > { %v6472_v37 = vadd.f32 %v6471_v48, %v6470_v34  ;;  %v8561_v22 = vadd.f32 %v6469_v28, %v4434_v0 }
 0x3dc   : > { %v4445_v32 = vadd.f32 %v6366_v7, %v8482_v57 }
 0x3dd   : > { %v8564_v47 = vadd.f32 %v6472_v37, %v4437_v24 }
 0x3de   : > { %v6367_v30 = vpop.f32.mrb[252].mxu1 }
 0x3df   : > { %v6473_v38 = vpop.f32.mrb[248].mxu0  ;;  %v6368_v19 = vpop.f32.mrb[253].mxu1 }
 0x3e0   : > { %v6369_v55 = vadd.f32 %v6368_v19, %v6367_v30  ;;  %v6474_v21 = vpop.f32.mrb[249].mxu0  ;;  %v6370_v60 = vpop.f32.mrb[254].mxu1 }
 0x3e1   : > { %v6475_v42 = vadd.f32 %v6474_v21, %v6473_v38  ;;  %v6476_v11 = vpop.f32.mrb[250].mxu0  ;;  %v6371_v26 = vpop.f32.mrb[255].mxu1 }
 0x3e2   : > { %v4450_v61 = vadd.f32 %v6369_v55, %v8484_v12  ;;  %v6372_v5 = vadd.f32 %v6371_v26, %v6370_v60  ;;  %v6477_v27 = vpop.f32.mrb[251].mxu0 }
 0x3e3   : > { %v6478_v13 = vadd.f32 %v6477_v27, %v6476_v11  ;;  %v8567_v9 = vadd.f32 %v6475_v42, %v4442_v46 }
 0x3e4   : > { %v4453_v57 = vadd.f32 %v6372_v5, %v8486_v40 }
 0x3e5   : > { %v8570_v0 = vadd.f32 %v6478_v13, %v4445_v32 }
 0x3e6   : > { %v6373_v50 = vpop.f32.mrb[0].mxu1 }
 0x3e7   : > { %v6479_v39 = vpop.f32.mrb[252].mxu0  ;;  %v6374_v1 = vpop.f32.mrb[1].mxu1 }
 0x3e8   : > { %v6375_v24 = vadd.f32 %v6374_v1, %v6373_v50  ;;  %v6480_v52 = vpop.f32.mrb[253].mxu0  ;;  %v6376_v35 = vpop.f32.mrb[2].mxu1 }
 0x3e9   : > { %v6481_v8 = vadd.f32 %v6480_v52, %v6479_v39  ;;  %v6482_v62 = vpop.f32.mrb[254].mxu0  ;;  %v6377_v4 = vpop.f32.mrb[3].mxu1 }
 0x3ea   : > { %v4458_v12 = vadd.f32 %v6375_v24, %v8488_v36  ;;  %v6378_v63 = vadd.f32 %v6377_v4, %v6376_v35  ;;  %v6483_v28 = vpop.f32.mrb[255].mxu0 }
 0x3eb   : > { %v6484_v34 = vadd.f32 %v6483_v28, %v6482_v62  ;;  %v8573_v2 = vadd.f32 %v6481_v8, %v4450_v61 }
 0x3ec   : > { %v4461_v40 = vadd.f32 %v6378_v63, %v8490_v16 }
 0x3ed   : > { %v8576_v46 = vadd.f32 %v6484_v34, %v4453_v57 }
 0x3ee   : > { %v6379_v7 = vpop.f32.mrb[4].mxu1 }
 0x3ef   : > { %v6485_v48 = vpop.f32.mrb[0].mxu0  ;;  %v6380_v37 = vpop.f32.mrb[5].mxu1 }
 0x3f0   : > { %v6381_v32 = vadd.f32 %v6380_v37, %v6379_v7  ;;  %v6486_v30 = vpop.f32.mrb[1].mxu0  ;;  %v6382_v38 = vpop.f32.mrb[6].mxu1 }
 0x3f1   : > { %v6487_v19 = vadd.f32 %v6486_v30, %v6485_v48  ;;  %v6488_v55 = vpop.f32.mrb[2].mxu0  ;;  %v6383_v21 = vpop.f32.mrb[7].mxu1 }
 0x3f2   : > { %v4466_v36 = vadd.f32 %v6381_v32, %v8492_v53  ;;  %v6384_v60 = vadd.f32 %v6383_v21, %v6382_v38  ;;  %v6489_v42 = vpop.f32.mrb[3].mxu0 }
 0x3f3   : > { %v6490_v11 = vadd.f32 %v6489_v42, %v6488_v55  ;;  %v8579_v26 = vadd.f32 %v6487_v19, %v4458_v12 }
 0x3f4   : > { %v4469_v16 = vadd.f32 %v6384_v60, %v8494_v51 }
 0x3f5   : > { %v8582_v61 = vadd.f32 %v6490_v11, %v4461_v40 }
 0x3f6   : > { %v6385_v5 = vpop.f32.mrb[8].mxu1 }
 0x3f7   : > { %v6491_v27 = vpop.f32.mrb[4].mxu0  ;;  %v6386_v13 = vpop.f32.mrb[9].mxu1 }
 0x3f8   : > { %v6387_v57 = vadd.f32 %v6386_v13, %v6385_v5  ;;  %v6492_v50 = vpop.f32.mrb[5].mxu0  ;;  %v6388_v39 = vpop.f32.mrb[10].mxu1 }
 0x3f9   : > { %v6493_v1 = vadd.f32 %v6492_v50, %v6491_v27  ;;  %v6494_v24 = vpop.f32.mrb[6].mxu0  ;;  %v6389_v52 = vpop.f32.mrb[11].mxu1 }
 0x3fa   : > { %v4474_v53 = vadd.f32 %v6387_v57, %v8496_v54  ;;  %v6390_v35 = vadd.f32 %v6389_v52, %v6388_v39  ;;  %v6495_v8 = vpop.f32.mrb[7].mxu0 }
 0x3fb   : > { %v6496_v62 = vadd.f32 %v6495_v8, %v6494_v24  ;;  %v8585_v4 = vadd.f32 %v6493_v1, %v4466_v36  ;;  %v8603_v24 = vld [vmem:[%s8873_s4] ss:$0 sm:$0xff] }
 0x3fc   : > { %v4477_v51 = vadd.f32 %v6390_v35, %v8498_v25 }
 0x3fd   : > { %v8588_v12 = vadd.f32 %v6496_v62, %v4469_v16 }
 0x3fe   : > { %v6391_v63 = vpop.f32.mrb[12].mxu1 }
 0x3ff   : > { %v6497_v28 = vpop.f32.mrb[8].mxu0  ;;  %v6392_v34 = vpop.f32.mrb[13].mxu1 }
 0x400   : > { %v6393_v40 = vadd.f32 %v6392_v34, %v6391_v63  ;;  %v6498_v7 = vpop.f32.mrb[9].mxu0  ;;  %v6394_v48 = vpop.f32.mrb[14].mxu1  ;;  %v8626_v63 = vld [vmem:[%s8875_s6 + $0x1] ss:$0 sm:$0xff] }
 0x401   : > { %v6499_v37 = vadd.f32 %v6498_v7, %v6497_v28  ;;  %v6500_v32 = vpop.f32.mrb[10].mxu0  ;;  %v6395_v30 = vpop.f32.mrb[15].mxu1 }
 0x402   : > { %v4482_v54 = vadd.f32 %v6393_v40, %v8501_v10  ;;  %v6396_v38 = vadd.f32 %v6395_v30, %v6394_v48  ;;  %v6501_v19 = vpop.f32.mrb[11].mxu0 }
 0x403   : > { %v6502_v55 = vadd.f32 %v6501_v19, %v6500_v32  ;;  %v8591_v21 = vadd.f32 %v6499_v37, %v4474_v53 }
 0x404   : > { %v4485_v25 = vadd.f32 %v6396_v38, %v8504_v17 }
 0x405   : > { %v8594_v36 = vadd.f32 %v6502_v55, %v4477_v51 }
 0x406   : > { %v6623_v60 = vpop.f32.mrb[16].mxu1 }
 0x407   : > { %v6503_v42 = vpop.f32.mrb[12].mxu0  ;;  %v4692_v11 = vadd.f32 %v6623_v60, %v8513_v43  ;;  %v4683_v16 = vpop.f32.mrb[17].mxu1 }
 0x408   : > { %v6504_v5 = vpop.f32.mrb[13].mxu0  ;;  %v4684_v27 = vadd.f32 %v4683_v16, %v8507_v33  ;;  %v6624_v13 = vpop.f32.mrb[18].mxu1  ;;  %v8610_v33 = vld [vmem:[%s8875_s6] ss:$0 sm:$0xff] }
 0x409   : > { %v6505_v57 = vadd.f32 %v6504_v5, %v6503_v42  ;;  %v6506_v10 = vpop.f32.mrb[14].mxu0  ;;  %v4695_v50 = vadd.f32 %v6624_v13, %v8516_v41  ;;  %v4686_v39 = vpop.f32.mrb[19].mxu1  ;;  %v4817_v41 = vmul.f32 %v8603_v24, %v4692_v11 }
 0x40a   : > { %v6507_v1 = vpop.f32.mrb[15].mxu0  ;;  %v4687_v17 = vadd.f32 %v4686_v39, %v8510_v20  ;;  %v8618_v20 = vld [vmem:[%s8873_s4 + $0x1] ss:$0 sm:$0xff]  ;;  %v4815_v8 = vmul.f32 %v8603_v24, %v4684_v27 }
 0x40b   : > { %v6508_v43 = vadd.f32 %v6507_v1, %v6506_v10  ;;  %v8605_v52 = vadd.f32 %v6505_v57, %v4482_v54  ;;  %v4818_v34 = vmul.f32 %v8603_v24, %v4695_v50  ;;  %v4854_v19 = vadd.f32 %v8618_v20, %v4817_v41 }
 0x40c   : > { %v4816_v32 = vmul.f32 %v8603_v24, %v4687_v17  ;;  %v4852_v42 = vadd.f32 %v8618_v20, %v4815_v8 }
 0x40d   : > { %v8612_v53 = vadd.f32 %v6508_v43, %v4485_v25 }
 0x40e   : > { %v6627_v35 = vpop.f32.mrb[20].mxu1  ;;  %v4853_v13 = vadd.f32 %v8618_v20, %v4816_v32 }
 0x40f   : > { %v4708_v62 = vadd.f32 %v6627_v35, %v8525_v23  ;;  %v6671_v51 = vpop.f32.mrb[16].mxu0  ;;  %v4699_v28 = vpop.f32.mrb[21].mxu1 }
 0x410   : > { %v5164_v40 = vmul.f32 %v6671_v51, %v8610_v33  ;;  %v4700_v7 = vadd.f32 %v4699_v28, %v8519_v18  ;;  %v5030_v48 = vpop.f32.mrb[17].mxu0  ;;  %v6628_v37 = vpop.f32.mrb[22].mxu1 }
 0x411   : > { %v5162_v23 = vmul.f32 %v8610_v33, %v5030_v48  ;;  %v4711_v30 = vadd.f32 %v6628_v37, %v8528_v45  ;;  %v6672_v54 = vpop.f32.mrb[18].mxu0  ;;  %v4702_v38 = vpop.f32.mrb[23].mxu1  ;;  %v4855_v45 = vadd.f32 %v8618_v20, %v4818_v34  ;;  %v4821_v50 = vmul.f32 %v8603_v24, %v4708_v62 }
 0x412   : > { %v5201_v55 = vadd.f32 %v8626_v63, %v5164_v40  ;;  %v5165_v25 = vmul.f32 %v6672_v54, %v8610_v33  ;;  %v4703_v18 = vadd.f32 %v4702_v38, %v8522_v29  ;;  %v5033_v60 = vpop.f32.mrb[19].mxu0  ;;  %v4819_v17 = vmul.f32 %v8603_v24, %v4700_v7 }
 0x413   : > { %v5199_v11 = vadd.f32 %v8626_v63, %v5162_v23  ;;  %v5163_v16 = vmul.f32 %v8610_v33, %v5033_v60  ;;  %v4822_v28 = vmul.f32 %v8603_v24, %v4711_v30  ;;  %v4858_v30 = vadd.f32 %v8618_v20, %v4821_v50 }
 0x414   : > { %v5233_v5 = vadd.f32 %v5201_v55, %v4854_v19  ;;  %v5202_v27 = vadd.f32 %v8626_v63, %v5165_v25  ;;  %v4856_v60 = vadd.f32 %v8618_v20, %v4819_v17 }
 0x415   : > { %v5231_v57 = vadd.f32 %v5199_v11, %v4852_v42  ;;  %v5200_v10 = vadd.f32 %v8626_v63, %v5163_v16 }
 0x416   : > { %v5265_v29 = vmax.f32 %v5233_v5, 0.0  ;;  %v5234_v39 = vadd.f32 %v5202_v27, %v4855_v45  ;;  %v6631_v1 = vpop.f32.mrb[24].mxu1 }
 0x417   : > { %v5263_v43 = vmax.f32 %v5231_v57, 0.0  ;;  %v5232_v41 = vadd.f32 %v5200_v10, %v4853_v13  ;;  %v4724_v35 = vadd.f32 %v6631_v1, %v8537_v14  ;;  %v6675_v8 = vpop.f32.mrb[20].mxu0  ;;  %v4715_v51 = vpop.f32.mrb[25].mxu1  ;;  %v4820_v14 = vmul.f32 %v8603_v24, %v4703_v18 }
 0x418   : > { %5297 = vst [vmem:[%s8650_s19 + $0x10] sm:$0xff] %v5265_v29  ;;  %v5266_v62 = vmax.f32 %v5234_v39, 0.0  ;;  %v5168_v34 = vmul.f32 %v6675_v8, %v8610_v33  ;;  %v4716_v40 = vadd.f32 %v4715_v51, %v8531_v6  ;;  %v5046_v7 = vpop.f32.mrb[21].mxu0  ;;  %v6632_v48 = vpop.f32.mrb[26].mxu1 }
 0x419   : > { %5295 = vst [vmem:[%s8650_s19] sm:$0xff] %v5263_v43  ;;  %v5264_v37 = vmax.f32 %v5232_v41, 0.0  ;;  %v5166_v32 = vmul.f32 %v8610_v33, %v5046_v7  ;;  %v4727_v23 = vadd.f32 %v6632_v48, %v8540_v49  ;;  %v6676_v54 = vpop.f32.mrb[22].mxu0  ;;  %v4718_v38 = vpop.f32.mrb[27].mxu1  ;;  %v4859_v49 = vadd.f32 %v8618_v20, %v4822_v28 }
 0x41a   : > { %5298 = vst [vmem:[%s8650_s19 + $0x18] sm:$0xff] %v5266_v62  ;;  %v5205_v19 = vadd.f32 %v8626_v63, %v5168_v34  ;;  %v5169_v6 = vmul.f32 %v6676_v54, %v8610_v33  ;;  %v4719_v55 = vadd.f32 %v4718_v38, %v8534_v56  ;;  %v5049_v25 = vpop.f32.mrb[23].mxu0  ;;  %v4857_v45 = vadd.f32 %v8618_v20, %v4820_v14 }
 0x41b   : > { %5296 = vst [vmem:[%s8650_s19 + $0x8] sm:$0xff] %v5264_v37  ;;  %v5203_v18 = vadd.f32 %v8626_v63, %v5166_v32  ;;  %v5167_v42 = vmul.f32 %v8610_v33, %v5049_v25  ;;  %v4825_v56 = vmul.f32 %v8603_v24, %v4724_v35  ;;  %v4823_v50 = vmul.f32 %v8603_v24, %v4716_v40 }
 0x41c   : > { %v5237_v11 = vadd.f32 %v5205_v19, %v4858_v30  ;;  %v5206_v16 = vadd.f32 %v8626_v63, %v5169_v6  ;;  %v4826_v41 = vmul.f32 %v8603_v24, %v4727_v23  ;;  %v4824_v34 = vmul.f32 %v8603_v24, %v4719_v55 }
 0x41d   : > { %v5235_v5 = vadd.f32 %v5203_v18, %v4856_v60  ;;  %v5204_v27 = vadd.f32 %v8626_v63, %v5167_v42  ;;  %v4862_v37 = vadd.f32 %v8618_v20, %v4825_v56  ;;  %v4860_v38 = vadd.f32 %v8618_v20, %v4823_v50 }
 0x41e   : > { %v5269_v13 = vmax.f32 %v5237_v11, 0.0  ;;  %v5238_v57 = vadd.f32 %v5206_v16, %v4859_v49  ;;  %v6635_v10 = vpop.f32.mrb[28].mxu1  ;;  %v4861_v25 = vadd.f32 %v8618_v20, %v4824_v34 }
 0x41f   : > { %v5267_v29 = vmax.f32 %v5235_v5, 0.0  ;;  %v5236_v39 = vadd.f32 %v5204_v27, %v4857_v45  ;;  %v4740_v1 = vadd.f32 %v6635_v10, %v8549_v15  ;;  %v6679_v17 = vpop.f32.mrb[24].mxu0  ;;  %v4731_v43 = vpop.f32.mrb[29].mxu1 }
 0x420   : > { %5301 = vst [vmem:[%s8650_s19 + $0x30] sm:$0xff] %v5269_v13  ;;  %v5270_v8 = vmax.f32 %v5238_v57, 0.0  ;;  %v5172_v51 = vmul.f32 %v6679_v17, %v8610_v33  ;;  %v4732_v35 = vadd.f32 %v4731_v43, %v8543_v59  ;;  %v5062_v28 = vpop.f32.mrb[25].mxu0  ;;  %v6636_v62 = vpop.f32.mrb[30].mxu1 }
 0x421   : > { %5299 = vst [vmem:[%s8650_s19 + $0x20] sm:$0xff] %v5267_v29  ;;  %v5268_v40 = vmax.f32 %v5236_v39, 0.0  ;;  %v5170_v15 = vmul.f32 %v8610_v33, %v5062_v28  ;;  %v4743_v7 = vadd.f32 %v6636_v62, %v8552_v3  ;;  %v6680_v48 = vpop.f32.mrb[26].mxu0  ;;  %v4734_v14 = vpop.f32.mrb[31].mxu1  ;;  %v4863_v3 = vadd.f32 %v8618_v20, %v4826_v41 }
 0x422   : > { %5302 = vst [vmem:[%s8650_s19 + $0x38] sm:$0xff] %v5270_v8  ;;  %v5209_v32 = vadd.f32 %v8626_v63, %v5172_v51  ;;  %v5173_v59 = vmul.f32 %v6680_v48, %v8610_v33  ;;  %v4735_v23 = vadd.f32 %v4734_v14, %v8546_v58  ;;  %v5065_v54 = vpop.f32.mrb[27].mxu0  ;;  %v4829_v58 = vmul.f32 %v8603_v24, %v4740_v1 }
 0x423   : > { %5300 = vst [vmem:[%s8650_s19 + $0x28] sm:$0xff] %v5268_v40  ;;  %v5207_v30 = vadd.f32 %v8626_v63, %v5170_v15  ;;  %v5171_v19 = vmul.f32 %v8610_v33, %v5065_v54  ;;  %v4827_v16 = vmul.f32 %v8603_v24, %v4732_v35  ;;  %v4830_v57 = vmul.f32 %v8603_v24, %v4743_v7 }
 0x424   : > { %v5241_v6 = vadd.f32 %v5209_v32, %v4862_v37  ;;  %v5210_v55 = vadd.f32 %v8626_v63, %v5173_v59  ;;  %v4828_v17 = vmul.f32 %v8603_v24, %v4735_v23  ;;  %v4866_v35 = vadd.f32 %v8618_v20, %v4829_v58 }
 0x425   : > { %v5239_v60 = vadd.f32 %v5207_v30, %v4860_v38  ;;  %v5208_v18 = vadd.f32 %v8626_v63, %v5171_v19  ;;  %v4864_v40 = vadd.f32 %v8618_v20, %v4827_v16 }
 0x426   : > { %v5273_v42 = vmax.f32 %v5241_v6, 0.0  ;;  %v5242_v49 = vadd.f32 %v5210_v55, %v4863_v3  ;;  %v6639_v11 = vpop.f32.mrb[32].mxu1  ;;  %v4865_v37 = vadd.f32 %v8618_v20, %v4828_v17 }
 0x427   : > { %v5271_v45 = vmax.f32 %v5239_v60, 0.0  ;;  %v5240_v5 = vadd.f32 %v5208_v18, %v4861_v25  ;;  %v4756_v27 = vadd.f32 %v6639_v11, %v8561_v22  ;;  %v6683_v56 = vpop.f32.mrb[28].mxu0  ;;  %v4747_v13 = vpop.f32.mrb[33].mxu1 }
 0x428   : > { %5305 = vst [vmem:[%s8650_s19 + $0x50] sm:$0xff] %v5273_v42  ;;  %v5274_v10 = vmax.f32 %v5242_v49, 0.0  ;;  %v5176_v50 = vmul.f32 %v6683_v56, %v8610_v33  ;;  %v4748_v29 = vadd.f32 %v4747_v13, %v8555_v44  ;;  %v5078_v39 = vpop.f32.mrb[29].mxu0  ;;  %v6640_v1 = vpop.f32.mrb[34].mxu1 }
 0x429   : > { %5303 = vst [vmem:[%s8650_s19 + $0x40] sm:$0xff] %v5271_v45  ;;  %v5272_v43 = vmax.f32 %v5240_v5, 0.0  ;;  %v5174_v22 = vmul.f32 %v8610_v33, %v5078_v39  ;;  %v4759_v41 = vadd.f32 %v6640_v1, %v8564_v47  ;;  %v6684_v8 = vpop.f32.mrb[30].mxu0  ;;  %v4750_v51 = vpop.f32.mrb[35].mxu1  ;;  %v4867_v47 = vadd.f32 %v8618_v20, %v4830_v57 }
 0x42a   : > { %5306 = vst [vmem:[%s8650_s19 + $0x58] sm:$0xff] %v5274_v10  ;;  %v5213_v28 = vadd.f32 %v8626_v63, %v5176_v50  ;;  %v5177_v44 = vmul.f32 %v6684_v8, %v8610_v33  ;;  %v4751_v62 = vadd.f32 %v4750_v51, %v8558_v31  ;;  %v5081_v34 = vpop.f32.mrb[31].mxu0  ;;  %v4833_v31 = vmul.f32 %v8603_v24, %v4756_v27 }
 0x42b   : > { %5304 = vst [vmem:[%s8650_s19 + $0x48] sm:$0xff] %v5272_v43  ;;  %v5211_v15 = vadd.f32 %v8626_v63, %v5174_v22  ;;  %v5175_v7 = vmul.f32 %v8610_v33, %v5081_v34  ;;  %v4831_v30 = vmul.f32 %v8603_v24, %v4748_v29  ;;  %v4834_v60 = vmul.f32 %v8603_v24, %v4759_v41 }
 0x42c   : > { %v5245_v48 = vadd.f32 %v5213_v28, %v4866_v35  ;;  %v5214_v14 = vadd.f32 %v8626_v63, %v5177_v44  ;;  %v4832_v16 = vmul.f32 %v8603_v24, %v4751_v62  ;;  %v4870_v13 = vadd.f32 %v8618_v20, %v4833_v31 }
 0x42d   : > { %v5243_v32 = vadd.f32 %v5211_v15, %v4864_v40  ;;  %v5212_v59 = vadd.f32 %v8626_v63, %v5175_v7  ;;  %v4868_v29 = vadd.f32 %v8618_v20, %v4831_v30 }
 0x42e   : > { %v5277_v23 = vmax.f32 %v5245_v48, 0.0  ;;  %v5246_v54 = vadd.f32 %v5214_v14, %v4867_v47  ;;  %v6643_v38 = vpop.f32.mrb[36].mxu1  ;;  %v4869_v22 = vadd.f32 %v8618_v20, %v4832_v16 }
 0x42f   : > { %v5275_v19 = vmax.f32 %v5243_v32, 0.0  ;;  %v5244_v3 = vadd.f32 %v5212_v59, %v4865_v37  ;;  %v4772_v6 = vadd.f32 %v6643_v38, %v8573_v2  ;;  %v6687_v55 = vpop.f32.mrb[32].mxu0  ;;  %v4763_v25 = vpop.f32.mrb[37].mxu1 }
 0x430   : > { %5309 = vst [vmem:[%s8650_s19 + $0x70] sm:$0xff] %v5277_v23  ;;  %v5278_v18 = vmax.f32 %v5246_v54, 0.0  ;;  %v5180_v58 = vmul.f32 %v6687_v55, %v8610_v33  ;;  %v4764_v42 = vadd.f32 %v4763_v25, %v8567_v9  ;;  %v5094_v49 = vpop.f32.mrb[33].mxu0  ;;  %v6644_v11 = vpop.f32.mrb[38].mxu1 }
 0x431   : > { %5307 = vst [vmem:[%s8650_s19 + $0x60] sm:$0xff] %v5275_v19  ;;  %v5276_v45 = vmax.f32 %v5244_v3, 0.0  ;;  %v5178_v2 = vmul.f32 %v8610_v33, %v5094_v49  ;;  %v4775_v5 = vadd.f32 %v6644_v11, %v8576_v46  ;;  %v6688_v27 = vpop.f32.mrb[34].mxu0  ;;  %v4766_v56 = vpop.f32.mrb[39].mxu1  ;;  %v4871_v46 = vadd.f32 %v8618_v20, %v4834_v60 }
 0x432   : > { %5310 = vst [vmem:[%s8650_s19 + $0x78] sm:$0xff] %v5278_v18  ;;  %v5217_v57 = vadd.f32 %v8626_v63, %v5180_v58  ;;  %v5181_v9 = vmul.f32 %v6688_v27, %v8610_v33  ;;  %v4767_v10 = vadd.f32 %v4766_v56, %v8570_v0  ;;  %v5097_v50 = vpop.f32.mrb[35].mxu0  ;;  %v4837_v0 = vmul.f32 %v8603_v24, %v4772_v6 }
 0x433   : > { %5308 = vst [vmem:[%s8650_s19 + $0x68] sm:$0xff] %v5276_v45  ;;  %v5215_v39 = vadd.f32 %v8626_v63, %v5178_v2  ;;  %v5179_v1 = vmul.f32 %v8610_v33, %v5097_v50  ;;  %v4835_v44 = vmul.f32 %v8603_v24, %v4764_v42  ;;  %v4838_v47 = vmul.f32 %v8603_v24, %v4775_v5 }
 0x434   : > { %v5249_v17 = vadd.f32 %v5217_v57, %v4870_v13  ;;  %v5218_v43 = vadd.f32 %v8626_v63, %v5181_v9  ;;  %v4836_v31 = vmul.f32 %v8603_v24, %v4767_v10  ;;  %v4874_v19 = vadd.f32 %v8618_v20, %v4837_v0 }
 0x435   : > { %v5247_v41 = vadd.f32 %v5215_v39, %v4868_v29  ;;  %v5216_v8 = vadd.f32 %v8626_v63, %v5179_v1  ;;  %v4872_v25 = vadd.f32 %v8618_v20, %v4835_v44 }
 0x436   : > { %v5281_v51 = vmax.f32 %v5249_v17, 0.0  ;;  %v5250_v35 = vadd.f32 %v5218_v43, %v4871_v46  ;;  %v6647_v28 = vpop.f32.mrb[40].mxu1  ;;  %v4873_v49 = vadd.f32 %v8618_v20, %v4836_v31 }
 0x437   : > { %v5279_v62 = vmax.f32 %v5247_v41, 0.0  ;;  %v5248_v34 = vadd.f32 %v5216_v8, %v4869_v22  ;;  %v4788_v40 = vadd.f32 %v6647_v28, %v8585_v4  ;;  %v6691_v15 = vpop.f32.mrb[36].mxu0  ;;  %v4779_v7 = vpop.f32.mrb[41].mxu1 }
 0x438   : > { %5313 = vst [vmem:[%s8650_s19 + $0x90] sm:$0xff] %v5281_v51  ;;  %v5282_v48 = vmax.f32 %v5250_v35, 0.0  ;;  %v5184_v14 = vmul.f32 %v6691_v15, %v8610_v33  ;;  %v4780_v37 = vadd.f32 %v4779_v7, %v8579_v26  ;;  %v5110_v32 = vpop.f32.mrb[37].mxu0  ;;  %v6648_v59 = vpop.f32.mrb[42].mxu1 }
 0x439   : > { %5311 = vst [vmem:[%s8650_s19 + $0x80] sm:$0xff] %v5279_v62  ;;  %v5280_v23 = vmax.f32 %v5248_v34, 0.0  ;;  %v5182_v4 = vmul.f32 %v8610_v33, %v5110_v32  ;;  %v4791_v54 = vadd.f32 %v6648_v59, %v8588_v12  ;;  %v6692_v38 = vpop.f32.mrb[38].mxu0  ;;  %v4782_v30 = vpop.f32.mrb[43].mxu1  ;;  %v4875_v12 = vadd.f32 %v8618_v20, %v4838_v47 }
 0x43a   : > { %5314 = vst [vmem:[%s8650_s19 + $0x98] sm:$0xff] %v5282_v48  ;;  %v5221_v3 = vadd.f32 %v8626_v63, %v5184_v14  ;;  %v5185_v26 = vmul.f32 %v6692_v38, %v8610_v33  ;;  %v4783_v6 = vadd.f32 %v4782_v30, %v8582_v61  ;;  %v5113_v55 = vpop.f32.mrb[39].mxu0  ;;  %v4841_v61 = vmul.f32 %v8603_v24, %v4788_v40 }
 0x43b   : > { %5312 = vst [vmem:[%s8650_s19 + $0x88] sm:$0xff] %v5280_v23  ;;  %v5219_v60 = vadd.f32 %v8626_v63, %v5182_v4  ;;  %v5183_v18 = vmul.f32 %v8610_v33, %v5113_v55  ;;  %v4839_v27 = vmul.f32 %v8603_v24, %v4780_v37  ;;  %v4842_v50 = vmul.f32 %v8603_v24, %v4791_v54 }
 0x43c   : > { %v5253_v58 = vadd.f32 %v5221_v3, %v4874_v19  ;;  %v5222_v42 = vadd.f32 %v8626_v63, %v5185_v26  ;;  %v4840_v43 = vmul.f32 %v8603_v24, %v4783_v6  ;;  %v4878_v51 = vadd.f32 %v8618_v20, %v4841_v61 }
 0x43d   : > { %v5251_v11 = vadd.f32 %v5219_v60, %v4872_v25  ;;  %v5220_v16 = vadd.f32 %v8626_v63, %v5183_v18  ;;  %v4876_v62 = vadd.f32 %v8618_v20, %v4839_v27  ;;  %v4879_v40 = vadd.f32 %v8618_v20, %v4842_v50 }
 0x43e   : > { %v5285_v45 = vmax.f32 %v5253_v58, 0.0  ;;  %v5254_v2 = vadd.f32 %v5222_v42, %v4875_v12  ;;  %v6651_v5 = vpop.f32.mrb[44].mxu1  ;;  %v4877_v47 = vadd.f32 %v8618_v20, %v4840_v43 }
 0x43f   : > { %v5283_v56 = vmax.f32 %v5251_v11, 0.0  ;;  %v5252_v13 = vadd.f32 %v5220_v16, %v4873_v49  ;;  %v4804_v57 = vadd.f32 %v6651_v5, %v8605_v52  ;;  %v6695_v9 = vpop.f32.mrb[40].mxu0  ;;  %v4795_v10 = vpop.f32.mrb[45].mxu1 }
 0x440   : > { %5317 = vst [vmem:[%s8650_s19 + $0xb0] sm:$0xff] %v5285_v45  ;;  %v5286_v29 = vmax.f32 %v5254_v2, 0.0  ;;  %v5188_v39 = vmul.f32 %v6695_v9, %v8610_v33  ;;  %v4796_v1 = vadd.f32 %v4795_v10, %v8591_v21  ;;  %v5126_v46 = vpop.f32.mrb[41].mxu0  ;;  %v6652_v17 = vpop.f32.mrb[46].mxu1 }
 0x441   : > { %5315 = vst [vmem:[%s8650_s19 + $0xa0] sm:$0xff] %v5283_v56  ;;  %v5284_v22 = vmax.f32 %v5252_v13, 0.0  ;;  %v5186_v52 = vmul.f32 %v8610_v33, %v5126_v46  ;;  %v4807_v41 = vadd.f32 %v6652_v17, %v8612_v53  ;;  %v6696_v8 = vpop.f32.mrb[42].mxu0  ;;  %v4798_v0 = vpop.f32.mrb[47].mxu1  ;;  %v4845_v14 = vmul.f32 %v8603_v24, %v4804_v57 }
 0x442   : > { %5318 = vst [vmem:[%s8650_s19 + $0xb8] sm:$0xff] %v5286_v29  ;;  %v5225_v35 = vadd.f32 %v8626_v63, %v5188_v39  ;;  %v5189_v21 = vmul.f32 %v6696_v8, %v8610_v33  ;;  %v4799_v28 = vadd.f32 %v4798_v0, %v8594_v36  ;;  %v5129_v44 = vpop.f32.mrb[43].mxu0  ;;  %v4843_v59 = vmul.f32 %v8603_v24, %v4796_v1 }
 0x443   : > { %5316 = vst [vmem:[%s8650_s19 + $0xa8] sm:$0xff] %v5284_v22  ;;  %v5223_v34 = vadd.f32 %v8626_v63, %v5186_v52  ;;  %v5187_v53 = vmul.f32 %v8610_v33, %v5129_v44  ;;  %v4846_v54 = vmul.f32 %v8603_v24, %v4807_v41  ;;  %v4882_v25 = vadd.f32 %v8618_v20, %v4845_v14 }
 0x444   : > { %v5257_v15 = vadd.f32 %v5225_v35, %v4878_v51  ;;  %v5226_v7 = vadd.f32 %v8626_v63, %v5189_v21  ;;  %v4844_v3 = vmul.f32 %v8603_v24, %v4799_v28  ;;  %v4880_v58 = vadd.f32 %v8618_v20, %v4843_v59 }
 0x445   : > { %v5255_v48 = vadd.f32 %v5223_v34, %v4876_v62  ;;  %v5224_v36 = vadd.f32 %v8626_v63, %v5187_v53  ;;  %v4883_v49 = vadd.f32 %v8618_v20, %v4846_v54 }
 0x446   : > { %v5289_v37 = vmax.f32 %v5257_v15, 0.0  ;;  %v5258_v32 = vadd.f32 %v5226_v7, %v4879_v40  ;;  %v4881_v61 = vadd.f32 %v8618_v20, %v4844_v3 }
 0x447   : > { %v5287_v31 = vmax.f32 %v5255_v48, 0.0  ;;  %v5256_v23 = vadd.f32 %v5224_v36, %v4877_v47  ;;  %v6699_v4 = vpop.f32.mrb[44].mxu0 }
 0x448   : > { %5321 = vst [vmem:[%s8650_s19 + $0xd0] sm:$0xff] %v5289_v37  ;;  %v5290_v38 = vmax.f32 %v5258_v32, 0.0  ;;  %v5192_v30 = vmul.f32 %v6699_v4, %v8610_v33  ;;  %v5142_v19 = vpop.f32.mrb[45].mxu0 }
 0x449   : > { %5319 = vst [vmem:[%s8650_s19 + $0xc0] sm:$0xff] %v5287_v31  ;;  %v5288_v26 = vmax.f32 %v5256_v23, 0.0  ;;  %v5190_v6 = vmul.f32 %v8610_v33, %v5142_v19  ;;  %v6700_v55 = vpop.f32.mrb[46].mxu0 }
 0x44a   : > { %5322 = vst [vmem:[%s8650_s19 + $0xd8] sm:$0xff] %v5290_v38  ;;  %v5229_v60 = vadd.f32 %v8626_v63, %v5192_v30  ;;  %v5193_v18 = vmul.f32 %v6700_v55, %v8610_v33  ;;  %v5145_v12 = vpop.f32.mrb[47].mxu0 }
 0x44b   : > { %5320 = vst [vmem:[%s8650_s19 + $0xc8] sm:$0xff] %v5288_v26  ;;  %v5227_v24 = vadd.f32 %v8626_v63, %v5190_v6  ;;  %v5191_v42 = vmul.f32 %v8610_v33, %v5145_v12 }
 0x44c   : > { %v5261_v11 = vadd.f32 %v5229_v60, %v4882_v25  ;;  %v5230_v16 = vadd.f32 %v8626_v63, %v5193_v18 }
 0x44d   : > { %v5259_v45 = vadd.f32 %v5227_v24, %v4880_v58  ;;  %v5228_v2 = vadd.f32 %v8626_v63, %v5191_v42 }
 0x44e   : > { %v5293_v5 = vmax.f32 %v5261_v11, 0.0  ;;  %v5262_v27 = vadd.f32 %v5230_v16, %v4883_v49 }
 0x44f   : > { %v5291_v33 = vmax.f32 %v5259_v45, 0.0  ;;  %v5260_v56 = vadd.f32 %v5228_v2, %v4881_v61 }
 0x450   : > { %5325 = vst [vmem:[%s8650_s19 + $0xf0] sm:$0xff] %v5293_v5  ;;  %v5294_v13 = vmax.f32 %v5262_v27, 0.0 }
 0x451   : > { %5323 = vst [vmem:[%s8650_s19 + $0xe0] sm:$0xff] %v5291_v33  ;;  %v5292_v20 = vmax.f32 %v5260_v56, 0.0 }
 0x452   : > { %5326 = vst [vmem:[%s8650_s19 + $0xf8] sm:$0xff] %v5294_v13 }
 0x453   : > { %5324 = vst [vmem:[%s8650_s19 + $0xe8] sm:$0xff] %v5292_v20 }
 0x454   : > { %6967 = shalt.err (!%p6964_p7)
}
 0x455   : > { %s6968_s13 = scalar_lea.hbm %s8819_s9, 4096  ;;  %s6972_s18 = scalar_lea.hbm %s8876_s7, 8192 }
 0x456   : > { %p6969_p8 = scmp.ne.s32.totalorder %s8819_s9, %s6968_s13  ;;  %p6973_p1 = scmp.lt.u32.totalorder %s8819_s9, %s8876_s7 }
 0x457   : > { %p6974_p0 = scmp.lt.u32.totalorder %s6972_s18, %s6968_s13  ;;  %p6976_p6 = scmp.lt.u32.totalorder %s6968_s13, %s8819_s9 }
 0x458   : > { %p6970_p11 = pnand %p6969_p8, %p8887_p9 }
 0x459   : > { %p6975_p5 = por %p6974_p0, %p6973_p1 }
 0x45a   : > { %p6971_p13 = pneg %p6970_p11 }
 0x45b   : > { %p6977_p10 = por %p6976_p6, %p6975_p5 }
 0x45d   : > { %p6978_p12 = pnand %p6977_p10, %p6971_p13 }
 0x45f   : > { %6981 = shalt.err (!%p6978_p12)
}
 0x460   : > { %s7028_s22 = smov 128   ;;  %s7029_s29 = smov 8  }
 0x461   : > { %6721 = dma.vmem_to_hbm [thread:$0]  (%p8887_p9), %s8821_s21, 4096, %s8819_s9, %s8828_s28, %s7028_s22, %s7028_s22, %s7029_s29  }
 0x462 PF: > { %p6733_p2 = scmp.ge.s32.totalorder %s7020_s27, 2  ;;  %s5356_s23 = sand.u32 1, %s7008_s24  }
 0x463   : > { %p8888_p3 = scmp.ne.s32.totalorder %s8881_s12, 0  ;;  %s5357_s8 = scalar_lea.sflag [#allocation7], %s5356_s23 }
 0x465   : > { %p6728_p4 = pnand %p6733_p2, %p8888_p3 }
 0x467   : > { %7003 = dma.done.wait (!%p6728_p4), %s5357_s8, 4096  }
 0x468   : > { %7005 = vsyncadd (!%p6728_p4), %s5357_s8, 4294963200  ;;  %p18_p7 = scmp.ge.s32.totalorder %s7095_s30, 4   ;;  %s8889_s24 = smov %s7012_s25 }
 0x469   : > { %s8890_s25 = smov %s7016_s26  ;;  %s8891_s26 = smov %s7106_s10 }
 0x46a   : > { %s8892_s27 = smov %s7095_s30  ;;  %20 = sbr.rel (!%p18_p7) target bundleno = 4 (0x4), region = 92 }
 0x471   :  { %5362 = vsyncpa [#allocation6], 1 }
 0x472   :  { %5364 = vsyncpa [#allocation6 + $0x1], 1 }
 0x473   :  { %5365 = vsyncpa [#allocation7], 1 }
 0x474   :  { %5367 = vsyncpa [#allocation7 + $0x1], 1 }

</bundles_post_ra>
